<compile_context>
chip_gen: v7x
topology: tpu7x:2x2x1
jax: 0.10.0
libtpu: 0.0.40
codegen_flags: <defaults>
</compile_context>

<pallas_src>
import functools

import numpy as np

import jax
import jax.numpy as jnp
from jax.experimental import pallas as pl
from jax.experimental.pallas import tpu as pltpu

PAD = 2          # enough for the largest (5x5) kernel; shared by all paths
NEG = -1.0e30    # stands in for -inf maxpool padding (finite, column-local)


# ---------------------------------------------------------------------------
# Fused Inception kernel (one batch element per grid step)
# ---------------------------------------------------------------------------
def _inception_kernel(x_ref, negadd_ref, maskq_ref,
                      w1_ref, b1_ref, w22_ref, b22_ref,
                      w32_ref, b32_ref, w4_ref, b4_ref,
                      o_ref, xpad_ref, a2pad_ref, a3pad_ref,
                      *, H, W, Wp, BASE, c1, c2m, c2o, c3m, c3o, c4o):
    """Flattened padded-spatial layout: column q = h*Wp + w, BASE % 128 == 0.

    x_ref:      (1, Cin, H*W)   bf16 unpadded input (lane-dense)
    negadd_ref: (1, LF)         bf16, 0 on valid pixels, NEG on padding
    maskq_ref:  (1, Q)          f32, 1 on valid output columns, 0 on pad cols
    w1_ref:     (c1+c2m+c3m, Cin) bf16 fused 1x1 weights (p1_1 | p2_1 | p3_1)
    w22_ref:    (9, c2o, c2m)   bf16 3x3 weights, tap-major (kh*3+kw)
    w32_ref:    (25, c3o, c3m)  bf16 5x5 weights, tap-major (kh*5+kw)
    w4_ref:     (c4o, Cin)      bf16 1x1 weights of path 4
    o_ref:      (1, Ctot, Q)    f32 output in the padded stride-Wp layout
    xpad_ref / a2pad_ref / a3pad_ref: (C, LF) bf16 VMEM scratches
    """
    bf = jnp.bfloat16
    Q = H * Wp
    LF = xpad_ref.shape[1]
    Cin = x_ref.shape[1]
    f32 = jnp.float32

    # ---- build the padded x layout in VMEM (no wrapper-side pad pass) ------
    # Halo ([0,BASE) and [BASE+Q,LF)) and the per-row gap columns are zeroed
    # EVERY grid step (scratch persists across iterations / per-core splits);
    # the valid interior rows are overwritten below.
    x = x_ref[0]                                             # (Cin, H*W) bf16
    xpad_ref[:, 0:BASE] = jnp.zeros((Cin, BASE), bf)
    xpad_ref[:, BASE + Q:LF] = jnp.zeros((Cin, LF - BASE - Q), bf)
    zgap = jnp.zeros((Cin, Wp - W), bf)
    for h in range(H):
        r0 = BASE + h * Wp
        xpad_ref[:, r0:r0 + W] = x[:, h * W:(h + 1) * W]
        xpad_ref[:, r0 + W:r0 + Wp] = zgap

    # ---- fused 1x1 convs for paths 1, 2, 3: one MXU dot over the shared x --
    xq = xpad_ref[:, BASE:BASE + Q]                          # aligned (Cin, Q)
    a1 = jnp.dot(w1_ref[...], xq, preferred_element_type=f32)
    a1 = jnp.maximum(a1 + b1_ref[...], 0.0)                  # bias + ReLU (f32)
    o_ref[0, 0:c1, :] = a1[0:c1]                             # path-1 output

    maskq = maskq_ref[...]                                   # (1, Q) f32
    a2 = (a1[c1:c1 + c2m] * maskq).astype(bf)                # zero stride-pad cols
    a3 = (a1[c1 + c2m:c1 + c2m + c3m] * maskq).astype(bf)

    # Halo-only zeroing of the intermediates' scratches; interior (incl. the
    # maskq-zeroed pad columns) is fully refreshed by one aligned store.
    a2pad_ref[:, 0:BASE] = jnp.zeros((c2m, BASE), bf)
    a2pad_ref[:, BASE + Q:LF] = jnp.zeros((c2m, LF - BASE - Q), bf)
    a2pad_ref[:, BASE:BASE + Q] = a2
    a3pad_ref[:, 0:BASE] = jnp.zeros((c3m, BASE), bf)
    a3pad_ref[:, BASE + Q:LF] = jnp.zeros((c3m, LF - BASE - Q), bf)
    a3pad_ref[:, BASE:BASE + Q] = a3

    # ---- path 2: 3x3 conv (pad 1) as 9 per-tap accumulated matmuls ---------
    acc2 = None
    for kh in range(3):
        for kw in range(3):
            off = BASE + (kh - 1) * Wp + (kw - 1)
            d = jnp.dot(w22_ref[kh * 3 + kw], a2pad_ref[:, off:off + Q],
                        preferred_element_type=f32)
            acc2 = d if acc2 is None else acc2 + d
    p2 = jnp.maximum(acc2 + b22_ref[...], 0.0)
    o_ref[0, c1:c1 + c2o, :] = p2

    # ---- path 3: 5x5 conv (pad 2) as 25 per-tap accumulated matmuls --------
    acc3 = None
    for kh in range(5):
        for kw in range(5):
            off = BASE + (kh - 2) * Wp + (kw - 2)
            d = jnp.dot(w32_ref[kh * 5 + kw], a3pad_ref[:, off:off + Q],
                        preferred_element_type=f32)
            acc3 = d if acc3 is None else acc3 + d
    p3 = jnp.maximum(acc3 + b32_ref[...], 0.0)
    o_ref[0, c1 + c2o:c1 + c2o + c3o, :] = p3

    # ---- path 4: separable 3x3/s1/p1 maxpool (-inf padding) + 1x1 conv -----
    # (bf16 elementwise; Mosaic legalizes to f32 on v5e automatically.)
    S = BASE - Wp - 1
    Lw = Q + 2 * Wp + 2                       # window covering all 9 taps
    xwin = xpad_ref[:, S:S + Lw] + negadd_ref[:, S:S + Lw]
    Lr = Q + 2 * Wp
    rmax = jnp.maximum(jnp.maximum(xwin[:, 0:Lr], xwin[:, 1:1 + Lr]),
                       xwin[:, 2:2 + Lr])                    # horizontal pass
    pooled = jnp.maximum(jnp.maximum(rmax[:, 0:Q], rmax[:, Wp:Wp + Q]),
                         rmax[:, 2 * Wp:2 * Wp + Q])         # vertical pass
    p4 = jnp.dot(w4_ref[...], pooled, preferred_element_type=f32)
    p4 = jnp.maximum(p4 + b4_ref[...], 0.0)
    o_ref[0, c1 + c2o + c3o:c1 + c2o + c3o + c4o, :] = p4


# ---------------------------------------------------------------------------
# Wrapper
# ---------------------------------------------------------------------------
@jax.jit
def inception_forward(params, x_nchw):
    N, Cin, H, W = x_nchw.shape

    w1, b1 = params["p1_1"]
    w21, b21 = params["p2_1"]
    w22, b22 = params["p2_2"]
    w31, b31 = params["p3_1"]
    w32, b32 = params["p3_2"]
    w4, b4 = params["p4_2"]
    c1, c2_0, c2_1 = w1.shape[0], w21.shape[0], w22.shape[0]
    c3_0, c3_1, c4 = w31.shape[0], w32.shape[0], w4.shape[0]
    Cf = c1 + c2_0 + c3_0
    Ctot = c1 + c2_1 + c3_1 + c4

    # Flattened padded-spatial layout constants.
    Wp = W + 2 * PAD
    BASE0 = PAD * Wp + PAD
    LEAD = (-BASE0) % 128              # align pixel (0,0) to a 128-lane boundary
    BASE = LEAD + BASE0
    Hp = H + 2 * PAD + 1               # extra bottom row keeps all taps in-bounds
    LF = LEAD + Hp * Wp
    Q = H * Wp
    HW = H * W

    # Kernel input: unpadded, lane-dense, bf16 (in a real network the producer
    # would already emit bf16, making this cast a no-op).
    x_in = x_nchw.reshape(N, Cin, HW).astype(jnp.bfloat16)

    # Static masks (tiny constants, built at trace time).
    negadd_np = np.full((Hp, Wp), NEG, np.float32)
    negadd_np[PAD:PAD + H, PAD:PAD + W] = 0.0
    negadd_np = np.concatenate(
        [np.full((LEAD,), NEG, np.float32), negadd_np.reshape(-1)])
    negadd = jnp.asarray(negadd_np.reshape(1, LF), dtype=jnp.bfloat16)

    maskq_np = np.zeros((H, Wp), np.float32)
    maskq_np[:, :W] = 1.0
    maskq = jnp.asarray(maskq_np.reshape(1, Q))

    # Matmul-ready weight layouts (tiny, one-time XLA ops), bf16 operands.
    bf = jnp.bfloat16
    w1x1 = jnp.concatenate([w1.reshape(c1, Cin), w21.reshape(c2_0, Cin),
                            w31.reshape(c3_0, Cin)], axis=0).astype(bf)
    b1x1 = jnp.concatenate([b1, b21, b31]).reshape(Cf, 1).astype(jnp.float32)
    w22t = jnp.transpose(w22, (2, 3, 0, 1)).reshape(9, c2_1, c2_0).astype(bf)
    w32t = jnp.transpose(w32, (2, 3, 0, 1)).reshape(25, c3_1, c3_0).astype(bf)
    w4m = w4.reshape(c4, Cin).astype(bf)
    b22m = b22.reshape(c2_1, 1).astype(jnp.float32)
    b32m = b32.reshape(c3_1, 1).astype(jnp.float32)
    b4m = b4.reshape(c4, 1).astype(jnp.float32)

    # Working-set estimate -> explicit scoped-VMEM limit (v5e defaults to 16MiB).
    est = (2 * Cin * HW * 2                      # x block, double-buffered
           + 2 * Ctot * Q * 4                    # out block, double-buffered
           + (Cin + c2_0 + c3_0) * LF * 2        # padded scratches (bf16)
           + (Cf + c2_1 + c3_1 + c4) * Q * 4     # a1 + accumulators + p4 (f32)
           + 3 * Cin * (Q + 2 * Wp + 2) * 2      # maxpool window temporaries
           + 2 * max(c2_0, c3_0) * Q * 2         # per-tap shifted slices
           + 2 * (Cf * Cin + 9 * c2_1 * c2_0 + 25 * c3_1 * c3_0 + c4 * Cin) * 2)
    vmem_limit = int(min(64 * 2**20, max(32 * 2**20, 2 * est)))

    kernel = functools.partial(_inception_kernel, H=H, W=W, Wp=Wp, BASE=BASE,
                               c1=c1, c2m=c2_0, c2o=c2_1,
                               c3m=c3_0, c3o=c3_1, c4o=c4)

    out = pl.pallas_call(
        kernel,
        out_shape=jax.ShapeDtypeStruct((N, Ctot, Q), jnp.float32),
        grid=(N,),
        in_specs=[
            pl.BlockSpec((1, Cin, HW), lambda n: (n, 0, 0)),
            pl.BlockSpec((1, LF), lambda n: (0, 0)),
            pl.BlockSpec((1, Q), lambda n: (0, 0)),
            pl.BlockSpec((Cf, Cin), lambda n: (0, 0)),
            pl.BlockSpec((Cf, 1), lambda n: (0, 0)),
            pl.BlockSpec((9, c2_1, c2_0), lambda n: (0, 0, 0)),
            pl.BlockSpec((c2_1, 1), lambda n: (0, 0)),
            pl.BlockSpec((25, c3_1, c3_0), lambda n: (0, 0, 0)),
            pl.BlockSpec((c3_1, 1), lambda n: (0, 0)),
            pl.BlockSpec((c4, Cin), lambda n: (0, 0)),
            pl.BlockSpec((c4, 1), lambda n: (0, 0)),
        ],
        out_specs=pl.BlockSpec((1, Ctot, Q), lambda n: (n, 0, 0)),
        scratch_shapes=[pltpu.VMEM((Cin, LF), jnp.bfloat16),
                        pltpu.VMEM((c2_0, LF), jnp.bfloat16),
                        pltpu.VMEM((c3_0, LF), jnp.bfloat16)],
        compiler_params=pltpu.CompilerParams(
            dimension_semantics=("parallel",),
            vmem_limit_bytes=vmem_limit),
    )(x_in, negadd, maskq, w1x1, b1x1, w22t, b22m, w32t, b32m, w4m, b4m)

    # Drop the stride-pad columns in the wrapper (lane-dense in-kernel stores);
    # a consumer that accepts the padded layout could skip this entirely.
    return out.reshape(N, Ctot, H, Wp)[:, :, :, :W]


# ---------------------------------------------------------------------------
# Parameters (PyTorch nn.Conv2d layout: weight (Cout, Cin, KH, KW))
# ---------------------------------------------------------------------------
def init_inception_params(key, in_channels, c1, c2, c3, c4):
    def conv_params(k, cout, cin, kh, kw):
        kw_, kb_ = jax.random.split(k)
        scale = 1.0 / jnp.sqrt(cin * kh * kw)
        w = jax.random.uniform(kw_, (cout, cin, kh, kw), jnp.float32, -scale, scale)
        b = jax.random.uniform(kb_, (cout,), jnp.float32, -scale, scale)
        return w, b

    keys = jax.random.split(key, 6)
    return {
        "p1_1": conv_params(keys[0], c1, in_channels, 1, 1),
        "p2_1": conv_params(keys[1], c2[0], in_channels, 1, 1),
        "p2_2": conv_params(keys[2], c2[1], c2[0], 3, 3),
        "p3_1": conv_params(keys[3], c3[0], in_channels, 1, 1),
        "p3_2": conv_params(keys[4], c3[1], c3[0], 5, 5),
        "p4_2": conv_params(keys[5], c4, in_channels, 1, 1),
    }


# ---------------------------------------------------------------------------
# Pure-JAX reference (PyTorch semantics, f32)
# ---------------------------------------------------------------------------
def _reference_forward(params, x):
    def conv(z, w, b, pad):
        y = jax.lax.conv_general_dilated(
            z, w, (1, 1), [(pad, pad), (pad, pad)],
            dimension_numbers=("NCHW", "OIHW", "NCHW"))
        return jax.nn.relu(y + b.reshape(1, -1, 1, 1))

    p1 = conv(x, *params["p1_1"], 0)
    p2 = conv(conv(x, *params["p2_1"], 0), *params["p2_2"], 1)
    p3 = conv(conv(x, *params["p3_1"], 0), *params["p3_2"], 2)
    pooled = jax.lax.reduce_window(
        x, -jnp.inf, jax.lax.max, (1, 1, 3, 3), (1, 1, 1, 1),
        ((0, 0), (0, 0), (1, 1), (1, 1)))
    p4 = conv(pooled, *params["p4_2"], 0)
    return jnp.concatenate([p1, p2, p3, p4], axis=1)


if __name__ == "__main__":
    key = jax.random.PRNGKey(0)
    k_param, k_x = jax.random.split(key)

    # Small shapes: batch=2, in_channels=4, spatial=16x16.
    in_channels, c1, c2, c3, c4 = 4, 4, (4, 8), (2, 4), 4
    params = init_inception_params(k_param, in_channels, c1, c2, c3, c4)

    x = jax.random.normal(k_x, (2, in_channels, 16, 16), jnp.float32)  # NCHW

    out = inception_forward(params, x)
    out = jax.block_until_ready(out)

    expected_channels = c1 + c2[1] + c3[1] + c4
    assert out.shape == (2, expected_channels, 16, 16), out.shape

    ref = _reference_forward(params, x)
    np.testing.assert_allclose(np.asarray(out), np.asarray(ref),
                               rtol=5e-2, atol=6e-2)

    print("KERNEL_OK")
</pallas_src>

<mosaic_0001>
module attributes {stable_mosaic.version = 11 : i64} {
  func.func @_inception_kernel(%arg0: i32, %arg1: memref<1x4x256xbf16, #tpu.memory_space<vmem>>, %arg2: memref<1x506xbf16, #tpu.memory_space<vmem>>, %arg3: memref<1x320xf32, #tpu.memory_space<vmem>>, %arg4: memref<10x4xbf16, #tpu.memory_space<vmem>>, %arg5: memref<10x1xf32, #tpu.memory_space<vmem>>, %arg6: memref<9x8x4xbf16, #tpu.memory_space<vmem>>, %arg7: memref<8x1xf32, #tpu.memory_space<vmem>>, %arg8: memref<25x4x2xbf16, #tpu.memory_space<vmem>>, %arg9: memref<4x1xf32, #tpu.memory_space<vmem>>, %arg10: memref<4x4xbf16, #tpu.memory_space<vmem>>, %arg11: memref<4x1xf32, #tpu.memory_space<vmem>>, %arg12: memref<1x20x320xf32, #tpu.memory_space<vmem>>, %arg13: memref<4x506xbf16, #tpu.memory_space<vmem>>, %arg14: memref<4x506xbf16, #tpu.memory_space<vmem>>, %arg15: memref<2x506xbf16, #tpu.memory_space<vmem>>) attributes {dimension_semantics = [#tpu.dimension_semantics<parallel>], iteration_bounds = array<i64: 2>, scalar_prefetch = 0 : i64, scratch_operands = 3 : i64, tpu.core_type = #tpu.core_type<tc>, window_params = [{transform_indices = @transform_0, window_bounds = array<i64: 1, 4, 256>}, {pipeline_mode = #tpu.pipeline_mode<synchronous>, transform_indices = @transform_1, window_bounds = array<i64: 1, 506>}, {pipeline_mode = #tpu.pipeline_mode<synchronous>, transform_indices = @transform_2, window_bounds = array<i64: 1, 320>}, {pipeline_mode = #tpu.pipeline_mode<synchronous>, transform_indices = @transform_3, window_bounds = array<i64: 10, 4>}, {pipeline_mode = #tpu.pipeline_mode<synchronous>, transform_indices = @transform_4, window_bounds = array<i64: 10, 1>}, {pipeline_mode = #tpu.pipeline_mode<synchronous>, transform_indices = @transform_5, window_bounds = array<i64: 9, 8, 4>}, {pipeline_mode = #tpu.pipeline_mode<synchronous>, transform_indices = @transform_6, window_bounds = array<i64: 8, 1>}, {pipeline_mode = #tpu.pipeline_mode<synchronous>, transform_indices = @transform_7, window_bounds = array<i64: 25, 4, 2>}, {pipeline_mode = #tpu.pipeline_mode<synchronous>, transform_indices = @transform_8, window_bounds = array<i64: 4, 1>}, {pipeline_mode = #tpu.pipeline_mode<synchronous>, transform_indices = @transform_9, window_bounds = array<i64: 4, 4>}, {pipeline_mode = #tpu.pipeline_mode<synchronous>, transform_indices = @transform_10, window_bounds = array<i64: 4, 1>}, {transform_indices = @transform_11, window_bounds = array<i64: 1, 20, 320>}]} {
    %c0 = arith.constant 0 : index
    %c0_0 = arith.constant 0 : index
    %c0_1 = arith.constant 0 : index
    %0 = vector.load %arg1[%c0, %c0_0, %c0_1] : memref<1x4x256xbf16, #tpu.memory_space<vmem>>, vector<1x4x256xbf16>
    %1 = vector.shape_cast %0 : vector<1x4x256xbf16> to vector<4x256xbf16>
    %cst = arith.constant 0.000000e+00 : bf16
    %2 = vector.broadcast %cst : bf16 to vector<4x128xbf16>
    %c0_2 = arith.constant 0 : index
    %c0_3 = arith.constant 0 : index
    %3 = vector.load %arg13[%c0_2, %c0_3] : memref<4x506xbf16, #tpu.memory_space<vmem>>, vector<4x128xbf16>
    tpu.vector_store %arg13[%c0_2, %c0_3], %2 {strides = array<i32>} : memref<4x506xbf16, #tpu.memory_space<vmem>>, vector<4x128xbf16>,
    %cst_4 = arith.constant 0.000000e+00 : bf16
    %4 = vector.broadcast %cst_4 : bf16 to vector<4x58xbf16>
    %c0_5 = arith.constant 0 : index
    %c448 = arith.constant 448 : index
    %5 = vector.load %arg13[%c0_5, %c448] : memref<4x506xbf16, #tpu.memory_space<vmem>>, vector<4x58xbf16>
    tpu.vector_store %arg13[%c0_5, %c448], %4 {strides = array<i32>} : memref<4x506xbf16, #tpu.memory_space<vmem>>, vector<4x58xbf16>,
    %cst_6 = arith.constant 0.000000e+00 : bf16
    %6 = vector.broadcast %cst_6 : bf16 to vector<4x4xbf16>
    %7 = vector.extract_strided_slice %1 {offsets = [0, 0], sizes = [4, 16], strides = [1, 1]} : vector<4x256xbf16> to vector<4x16xbf16>
    %c0_7 = arith.constant 0 : index
    %c128 = arith.constant 128 : index
    %8 = vector.load %arg13[%c0_7, %c128] : memref<4x506xbf16, #tpu.memory_space<vmem>>, vector<4x16xbf16>
    tpu.vector_store %arg13[%c0_7, %c128], %7 {strides = array<i32>} : memref<4x506xbf16, #tpu.memory_space<vmem>>, vector<4x16xbf16>,
    %c0_8 = arith.constant 0 : index
    %c144 = arith.constant 144 : index
    %9 = vector.load %arg13[%c0_8, %c144] : memref<4x506xbf16, #tpu.memory_space<vmem>>, vector<4x4xbf16>
    tpu.vector_store %arg13[%c0_8, %c144], %6 {strides = array<i32>} : memref<4x506xbf16, #tpu.memory_space<vmem>>, vector<4x4xbf16>,
    %10 = vector.extract_strided_slice %1 {offsets = [0, 16], sizes = [4, 16], strides = [1, 1]} : vector<4x256xbf16> to vector<4x16xbf16>
    %c0_9 = arith.constant 0 : index
    %c148 = arith.constant 148 : index
    %11 = vector.load %arg13[%c0_9, %c148] : memref<4x506xbf16, #tpu.memory_space<vmem>>, vector<4x16xbf16>
    tpu.vector_store %arg13[%c0_9, %c148], %10 {strides = array<i32>} : memref<4x506xbf16, #tpu.memory_space<vmem>>, vector<4x16xbf16>,
    %c0_10 = arith.constant 0 : index
    %c164 = arith.constant 164 : index
    %12 = vector.load %arg13[%c0_10, %c164] : memref<4x506xbf16, #tpu.memory_space<vmem>>, vector<4x4xbf16>
    tpu.vector_store %arg13[%c0_10, %c164], %6 {strides = array<i32>} : memref<4x506xbf16, #tpu.memory_space<vmem>>, vector<4x4xbf16>,
    %13 = vector.extract_strided_slice %1 {offsets = [0, 32], sizes = [4, 16], strides = [1, 1]} : vector<4x256xbf16> to vector<4x16xbf16>
    %c0_11 = arith.constant 0 : index
    %c168 = arith.constant 168 : index
    %14 = vector.load %arg13[%c0_11, %c168] : memref<4x506xbf16, #tpu.memory_space<vmem>>, vector<4x16xbf16>
    tpu.vector_store %arg13[%c0_11, %c168], %13 {strides = array<i32>} : memref<4x506xbf16, #tpu.memory_space<vmem>>, vector<4x16xbf16>,
    %c0_12 = arith.constant 0 : index
    %c184 = arith.constant 184 : index
    %15 = vector.load %arg13[%c0_12, %c184] : memref<4x506xbf16, #tpu.memory_space<vmem>>, vector<4x4xbf16>
    tpu.vector_store %arg13[%c0_12, %c184], %6 {strides = array<i32>} : memref<4x506xbf16, #tpu.memory_space<vmem>>, vector<4x4xbf16>,
    %16 = vector.extract_strided_slice %1 {offsets = [0, 48], sizes = [4, 16], strides = [1, 1]} : vector<4x256xbf16> to vector<4x16xbf16>
    %c0_13 = arith.constant 0 : index
    %c188 = arith.constant 188 : index
    %17 = vector.load %arg13[%c0_13, %c188] : memref<4x506xbf16, #tpu.memory_space<vmem>>, vector<4x16xbf16>
    tpu.vector_store %arg13[%c0_13, %c188], %16 {strides = array<i32>} : memref<4x506xbf16, #tpu.memory_space<vmem>>, vector<4x16xbf16>,
    %c0_14 = arith.constant 0 : index
    %c204 = arith.constant 204 : index
    %18 = vector.load %arg13[%c0_14, %c204] : memref<4x506xbf16, #tpu.memory_space<vmem>>, vector<4x4xbf16>
    tpu.vector_store %arg13[%c0_14, %c204], %6 {strides = array<i32>} : memref<4x506xbf16, #tpu.memory_space<vmem>>, vector<4x4xbf16>,
    %19 = vector.extract_strided_slice %1 {offsets = [0, 64], sizes = [4, 16], strides = [1, 1]} : vector<4x256xbf16> to vector<4x16xbf16>
    %c0_15 = arith.constant 0 : index
    %c208 = arith.constant 208 : index
    %20 = vector.load %arg13[%c0_15, %c208] : memref<4x506xbf16, #tpu.memory_space<vmem>>, vector<4x16xbf16>
    tpu.vector_store %arg13[%c0_15, %c208], %19 {strides = array<i32>} : memref<4x506xbf16, #tpu.memory_space<vmem>>, vector<4x16xbf16>,
    %c0_16 = arith.constant 0 : index
    %c224 = arith.constant 224 : index
    %21 = vector.load %arg13[%c0_16, %c224] : memref<4x506xbf16, #tpu.memory_space<vmem>>, vector<4x4xbf16>
    tpu.vector_store %arg13[%c0_16, %c224], %6 {strides = array<i32>} : memref<4x506xbf16, #tpu.memory_space<vmem>>, vector<4x4xbf16>,
    %22 = vector.extract_strided_slice %1 {offsets = [0, 80], sizes = [4, 16], strides = [1, 1]} : vector<4x256xbf16> to vector<4x16xbf16>
    %c0_17 = arith.constant 0 : index
    %c228 = arith.constant 228 : index
    %23 = vector.load %arg13[%c0_17, %c228] : memref<4x506xbf16, #tpu.memory_space<vmem>>, vector<4x16xbf16>
    tpu.vector_store %arg13[%c0_17, %c228], %22 {strides = array<i32>} : memref<4x506xbf16, #tpu.memory_space<vmem>>, vector<4x16xbf16>,
    %c0_18 = arith.constant 0 : index
    %c244 = arith.constant 244 : index
    %24 = vector.load %arg13[%c0_18, %c244] : memref<4x506xbf16, #tpu.memory_space<vmem>>, vector<4x4xbf16>
    tpu.vector_store %arg13[%c0_18, %c244], %6 {strides = array<i32>} : memref<4x506xbf16, #tpu.memory_space<vmem>>, vector<4x4xbf16>,
    %25 = vector.extract_strided_slice %1 {offsets = [0, 96], sizes = [4, 16], strides = [1, 1]} : vector<4x256xbf16> to vector<4x16xbf16>
    %c0_19 = arith.constant 0 : index
    %c248 = arith.constant 248 : index
    %26 = vector.load %arg13[%c0_19, %c248] : memref<4x506xbf16, #tpu.memory_space<vmem>>, vector<4x16xbf16>
    tpu.vector_store %arg13[%c0_19, %c248], %25 {strides = array<i32>} : memref<4x506xbf16, #tpu.memory_space<vmem>>, vector<4x16xbf16>,
    %c0_20 = arith.constant 0 : index
    %c264 = arith.constant 264 : index
    %27 = vector.load %arg13[%c0_20, %c264] : memref<4x506xbf16, #tpu.memory_space<vmem>>, vector<4x4xbf16>
    tpu.vector_store %arg13[%c0_20, %c264], %6 {strides = array<i32>} : memref<4x506xbf16, #tpu.memory_space<vmem>>, vector<4x4xbf16>,
    %28 = vector.extract_strided_slice %1 {offsets = [0, 112], sizes = [4, 16], strides = [1, 1]} : vector<4x256xbf16> to vector<4x16xbf16>
    %c0_21 = arith.constant 0 : index
    %c268 = arith.constant 268 : index
    %29 = vector.load %arg13[%c0_21, %c268] : memref<4x506xbf16, #tpu.memory_space<vmem>>, vector<4x16xbf16>
    tpu.vector_store %arg13[%c0_21, %c268], %28 {strides = array<i32>} : memref<4x506xbf16, #tpu.memory_space<vmem>>, vector<4x16xbf16>,
    %c0_22 = arith.constant 0 : index
    %c284 = arith.constant 284 : index
    %30 = vector.load %arg13[%c0_22, %c284] : memref<4x506xbf16, #tpu.memory_space<vmem>>, vector<4x4xbf16>
    tpu.vector_store %arg13[%c0_22, %c284], %6 {strides = array<i32>} : memref<4x506xbf16, #tpu.memory_space<vmem>>, vector<4x4xbf16>,
    %31 = vector.extract_strided_slice %1 {offsets = [0, 128], sizes = [4, 16], strides = [1, 1]} : vector<4x256xbf16> to vector<4x16xbf16>
    %c0_23 = arith.constant 0 : index
    %c288 = arith.constant 288 : index
    %32 = vector.load %arg13[%c0_23, %c288] : memref<4x506xbf16, #tpu.memory_space<vmem>>, vector<4x16xbf16>
    tpu.vector_store %arg13[%c0_23, %c288], %31 {strides = array<i32>} : memref<4x506xbf16, #tpu.memory_space<vmem>>, vector<4x16xbf16>,
    %c0_24 = arith.constant 0 : index
    %c304 = arith.constant 304 : index
    %33 = vector.load %arg13[%c0_24, %c304] : memref<4x506xbf16, #tpu.memory_space<vmem>>, vector<4x4xbf16>
    tpu.vector_store %arg13[%c0_24, %c304], %6 {strides = array<i32>} : memref<4x506xbf16, #tpu.memory_space<vmem>>, vector<4x4xbf16>,
    %34 = vector.extract_strided_slice %1 {offsets = [0, 144], sizes = [4, 16], strides = [1, 1]} : vector<4x256xbf16> to vector<4x16xbf16>
    %c0_25 = arith.constant 0 : index
    %c308 = arith.constant 308 : index
    %35 = vector.load %arg13[%c0_25, %c308] : memref<4x506xbf16, #tpu.memory_space<vmem>>, vector<4x16xbf16>
    tpu.vector_store %arg13[%c0_25, %c308], %34 {strides = array<i32>} : memref<4x506xbf16, #tpu.memory_space<vmem>>, vector<4x16xbf16>,
    %c0_26 = arith.constant 0 : index
    %c324 = arith.constant 324 : index
    %36 = vector.load %arg13[%c0_26, %c324] : memref<4x506xbf16, #tpu.memory_space<vmem>>, vector<4x4xbf16>
    tpu.vector_store %arg13[%c0_26, %c324], %6 {strides = array<i32>} : memref<4x506xbf16, #tpu.memory_space<vmem>>, vector<4x4xbf16>,
    %37 = vector.extract_strided_slice %1 {offsets = [0, 160], sizes = [4, 16], strides = [1, 1]} : vector<4x256xbf16> to vector<4x16xbf16>
    %c0_27 = arith.constant 0 : index
    %c328 = arith.constant 328 : index
    %38 = vector.load %arg13[%c0_27, %c328] : memref<4x506xbf16, #tpu.memory_space<vmem>>, vector<4x16xbf16>
    tpu.vector_store %arg13[%c0_27, %c328], %37 {strides = array<i32>} : memref<4x506xbf16, #tpu.memory_space<vmem>>, vector<4x16xbf16>,
    %c0_28 = arith.constant 0 : index
    %c344 = arith.constant 344 : index
    %39 = vector.load %arg13[%c0_28, %c344] : memref<4x506xbf16, #tpu.memory_space<vmem>>, vector<4x4xbf16>
    tpu.vector_store %arg13[%c0_28, %c344], %6 {strides = array<i32>} : memref<4x506xbf16, #tpu.memory_space<vmem>>, vector<4x4xbf16>,
    %40 = vector.extract_strided_slice %1 {offsets = [0, 176], sizes = [4, 16], strides = [1, 1]} : vector<4x256xbf16> to vector<4x16xbf16>
    %c0_29 = arith.constant 0 : index
    %c348 = arith.constant 348 : index
    %41 = vector.load %arg13[%c0_29, %c348] : memref<4x506xbf16, #tpu.memory_space<vmem>>, vector<4x16xbf16>
    tpu.vector_store %arg13[%c0_29, %c348], %40 {strides = array<i32>} : memref<4x506xbf16, #tpu.memory_space<vmem>>, vector<4x16xbf16>,
    %c0_30 = arith.constant 0 : index
    %c364 = arith.constant 364 : index
    %42 = vector.load %arg13[%c0_30, %c364] : memref<4x506xbf16, #tpu.memory_space<vmem>>, vector<4x4xbf16>
    tpu.vector_store %arg13[%c0_30, %c364], %6 {strides = array<i32>} : memref<4x506xbf16, #tpu.memory_space<vmem>>, vector<4x4xbf16>,
    %43 = vector.extract_strided_slice %1 {offsets = [0, 192], sizes = [4, 16], strides = [1, 1]} : vector<4x256xbf16> to vector<4x16xbf16>
    %c0_31 = arith.constant 0 : index
    %c368 = arith.constant 368 : index
    %44 = vector.load %arg13[%c0_31, %c368] : memref<4x506xbf16, #tpu.memory_space<vmem>>, vector<4x16xbf16>
    tpu.vector_store %arg13[%c0_31, %c368], %43 {strides = array<i32>} : memref<4x506xbf16, #tpu.memory_space<vmem>>, vector<4x16xbf16>,
    %c0_32 = arith.constant 0 : index
    %c384 = arith.constant 384 : index
    %45 = vector.load %arg13[%c0_32, %c384] : memref<4x506xbf16, #tpu.memory_space<vmem>>, vector<4x4xbf16>
    tpu.vector_store %arg13[%c0_32, %c384], %6 {strides = array<i32>} : memref<4x506xbf16, #tpu.memory_space<vmem>>, vector<4x4xbf16>,
    %46 = vector.extract_strided_slice %1 {offsets = [0, 208], sizes = [4, 16], strides = [1, 1]} : vector<4x256xbf16> to vector<4x16xbf16>
    %c0_33 = arith.constant 0 : index
    %c388 = arith.constant 388 : index
    %47 = vector.load %arg13[%c0_33, %c388] : memref<4x506xbf16, #tpu.memory_space<vmem>>, vector<4x16xbf16>
    tpu.vector_store %arg13[%c0_33, %c388], %46 {strides = array<i32>} : memref<4x506xbf16, #tpu.memory_space<vmem>>, vector<4x16xbf16>,
    %c0_34 = arith.constant 0 : index
    %c404 = arith.constant 404 : index
    %48 = vector.load %arg13[%c0_34, %c404] : memref<4x506xbf16, #tpu.memory_space<vmem>>, vector<4x4xbf16>
    tpu.vector_store %arg13[%c0_34, %c404], %6 {strides = array<i32>} : memref<4x506xbf16, #tpu.memory_space<vmem>>, vector<4x4xbf16>,
    %49 = vector.extract_strided_slice %1 {offsets = [0, 224], sizes = [4, 16], strides = [1, 1]} : vector<4x256xbf16> to vector<4x16xbf16>
    %c0_35 = arith.constant 0 : index
    %c408 = arith.constant 408 : index
    %50 = vector.load %arg13[%c0_35, %c408] : memref<4x506xbf16, #tpu.memory_space<vmem>>, vector<4x16xbf16>
    tpu.vector_store %arg13[%c0_35, %c408], %49 {strides = array<i32>} : memref<4x506xbf16, #tpu.memory_space<vmem>>, vector<4x16xbf16>,
    %c0_36 = arith.constant 0 : index
    %c424 = arith.constant 424 : index
    %51 = vector.load %arg13[%c0_36, %c424] : memref<4x506xbf16, #tpu.memory_space<vmem>>, vector<4x4xbf16>
    tpu.vector_store %arg13[%c0_36, %c424], %6 {strides = array<i32>} : memref<4x506xbf16, #tpu.memory_space<vmem>>, vector<4x4xbf16>,
    %52 = vector.extract_strided_slice %1 {offsets = [0, 240], sizes = [4, 16], strides = [1, 1]} : vector<4x256xbf16> to vector<4x16xbf16>
    %c0_37 = arith.constant 0 : index
    %c428 = arith.constant 428 : index
    %53 = vector.load %arg13[%c0_37, %c428] : memref<4x506xbf16, #tpu.memory_space<vmem>>, vector<4x16xbf16>
    tpu.vector_store %arg13[%c0_37, %c428], %52 {strides = array<i32>} : memref<4x506xbf16, #tpu.memory_space<vmem>>, vector<4x16xbf16>,
    %c0_38 = arith.constant 0 : index
    %c444 = arith.constant 444 : index
    %54 = vector.load %arg13[%c0_38, %c444] : memref<4x506xbf16, #tpu.memory_space<vmem>>, vector<4x4xbf16>
    tpu.vector_store %arg13[%c0_38, %c444], %6 {strides = array<i32>} : memref<4x506xbf16, #tpu.memory_space<vmem>>, vector<4x4xbf16>,
    %c0_39 = arith.constant 0 : index
    %c128_40 = arith.constant 128 : index
    %55 = vector.load %arg13[%c0_39, %c128_40] : memref<4x506xbf16, #tpu.memory_space<vmem>>, vector<4x320xbf16>
    %c0_41 = arith.constant 0 : index
    %c0_42 = arith.constant 0 : index
    %56 = vector.load %arg4[%c0_41, %c0_42] : memref<10x4xbf16, #tpu.memory_space<vmem>>, vector<10x4xbf16>
    %cst_43 = arith.constant dense<0.000000e+00> : vector<10x320xf32>
    %57 = tpu.matmul %56, %55, %cst_43 {dimension_numbers = #tpu.dot_dimension_numbers<[1], [0], [0], [1], [0, 0, 1, 1], [], []>} : vector<10x4xbf16>, vector<4x320xbf16>, vector<10x320xf32> -> vector<10x320xf32>
    %c0_44 = arith.constant 0 : index
    %c0_45 = arith.constant 0 : index
    %58 = vector.load %arg5[%c0_44, %c0_45] : memref<10x1xf32, #tpu.memory_space<vmem>>, vector<10x1xf32>
    %59 = vector.broadcast %58 : vector<10x1xf32> to vector<10x320xf32>
    %60 = arith.addf %57, %59 : vector<10x320xf32>
    %cst_46 = arith.constant 0.000000e+00 : f32
    %61 = vector.broadcast %cst_46 : f32 to vector<10x320xf32>
    %62 = arith.maximumf %60, %61 : vector<10x320xf32>
    %63 = vector.extract_strided_slice %62 {offsets = [0, 0], sizes = [4, 320], strides = [1, 1]} : vector<10x320xf32> to vector<4x320xf32>
    %c0_47 = arith.constant 0 : index
    %c0_48 = arith.constant 0 : index
    %c0_49 = arith.constant 0 : index
    %64 = vector.load %arg12[%c0_47, %c0_48, %c0_49] : memref<1x20x320xf32, #tpu.memory_space<vmem>>, vector<1x4x320xf32>
    %65 = vector.shape_cast %64 : vector<1x4x320xf32> to vector<4x320xf32>
    %66 = vector.shape_cast %63 : vector<4x320xf32> to vector<1x4x320xf32>
    tpu.vector_store %arg12[%c0_47, %c0_48, %c0_49], %66 {strides = array<i32>} : memref<1x20x320xf32, #tpu.memory_space<vmem>>, vector<1x4x320xf32>,
    %c0_50 = arith.constant 0 : index
    %c0_51 = arith.constant 0 : index
    %67 = vector.load %arg3[%c0_50, %c0_51] : memref<1x320xf32, #tpu.memory_space<vmem>>, vector<1x320xf32>
    %68 = vector.extract_strided_slice %62 {offsets = [4, 0], sizes = [4, 320], strides = [1, 1]} : vector<10x320xf32> to vector<4x320xf32>
    %69 = vector.broadcast %67 : vector<1x320xf32> to vector<4x320xf32>
    %70 = arith.mulf %68, %69 : vector<4x320xf32>
    %71 = arith.truncf %70 : vector<4x320xf32> to vector<4x320xbf16>
    %72 = vector.extract_strided_slice %62 {offsets = [8, 0], sizes = [2, 320], strides = [1, 1]} : vector<10x320xf32> to vector<2x320xf32>
    %73 = vector.broadcast %67 : vector<1x320xf32> to vector<2x320xf32>
    %74 = arith.mulf %72, %73 : vector<2x320xf32>
    %75 = arith.truncf %74 : vector<2x320xf32> to vector<2x320xbf16>
    %cst_52 = arith.constant 0.000000e+00 : bf16
    %76 = vector.broadcast %cst_52 : bf16 to vector<4x128xbf16>
    %c0_53 = arith.constant 0 : index
    %c0_54 = arith.constant 0 : index
    %77 = vector.load %arg14[%c0_53, %c0_54] : memref<4x506xbf16, #tpu.memory_space<vmem>>, vector<4x128xbf16>
    tpu.vector_store %arg14[%c0_53, %c0_54], %76 {strides = array<i32>} : memref<4x506xbf16, #tpu.memory_space<vmem>>, vector<4x128xbf16>,
    %cst_55 = arith.constant 0.000000e+00 : bf16
    %78 = vector.broadcast %cst_55 : bf16 to vector<4x58xbf16>
    %c0_56 = arith.constant 0 : index
    %c448_57 = arith.constant 448 : index
    %79 = vector.load %arg14[%c0_56, %c448_57] : memref<4x506xbf16, #tpu.memory_space<vmem>>, vector<4x58xbf16>
    tpu.vector_store %arg14[%c0_56, %c448_57], %78 {strides = array<i32>} : memref<4x506xbf16, #tpu.memory_space<vmem>>, vector<4x58xbf16>,
    %c0_58 = arith.constant 0 : index
    %c128_59 = arith.constant 128 : index
    %80 = vector.load %arg14[%c0_58, %c128_59] : memref<4x506xbf16, #tpu.memory_space<vmem>>, vector<4x320xbf16>
    tpu.vector_store %arg14[%c0_58, %c128_59], %71 {strides = array<i32>} : memref<4x506xbf16, #tpu.memory_space<vmem>>, vector<4x320xbf16>,
    %cst_60 = arith.constant 0.000000e+00 : bf16
    %81 = vector.broadcast %cst_60 : bf16 to vector<2x128xbf16>
    %c0_61 = arith.constant 0 : index
    %c0_62 = arith.constant 0 : index
    %82 = vector.load %arg15[%c0_61, %c0_62] : memref<2x506xbf16, #tpu.memory_space<vmem>>, vector<2x128xbf16>
    tpu.vector_store %arg15[%c0_61, %c0_62], %81 {strides = array<i32>} : memref<2x506xbf16, #tpu.memory_space<vmem>>, vector<2x128xbf16>,
    %cst_63 = arith.constant 0.000000e+00 : bf16
    %83 = vector.broadcast %cst_63 : bf16 to vector<2x58xbf16>
    %c0_64 = arith.constant 0 : index
    %c448_65 = arith.constant 448 : index
    %84 = vector.load %arg15[%c0_64, %c448_65] : memref<2x506xbf16, #tpu.memory_space<vmem>>, vector<2x58xbf16>
    tpu.vector_store %arg15[%c0_64, %c448_65], %83 {strides = array<i32>} : memref<2x506xbf16, #tpu.memory_space<vmem>>, vector<2x58xbf16>,
    %c0_66 = arith.constant 0 : index
    %c128_67 = arith.constant 128 : index
    %85 = vector.load %arg15[%c0_66, %c128_67] : memref<2x506xbf16, #tpu.memory_space<vmem>>, vector<2x320xbf16>
    tpu.vector_store %arg15[%c0_66, %c128_67], %75 {strides = array<i32>} : memref<2x506xbf16, #tpu.memory_space<vmem>>, vector<2x320xbf16>,
    %c0_68 = arith.constant 0 : index
    %c0_69 = arith.constant 0 : index
    %c0_70 = arith.constant 0 : index
    %86 = vector.load %arg6[%c0_68, %c0_69, %c0_70] : memref<9x8x4xbf16, #tpu.memory_space<vmem>>, vector<1x8x4xbf16>
    %87 = vector.shape_cast %86 : vector<1x8x4xbf16> to vector<8x4xbf16>
    %c0_71 = arith.constant 0 : index
    %c107 = arith.constant 107 : index
    %88 = vector.load %arg14[%c0_71, %c107] : memref<4x506xbf16, #tpu.memory_space<vmem>>, vector<4x320xbf16>
    %cst_72 = arith.constant dense<0.000000e+00> : vector<8x320xf32>
    %89 = tpu.matmul %87, %88, %cst_72 {dimension_numbers = #tpu.dot_dimension_numbers<[1], [0], [0], [1], [0, 0, 1, 1], [], []>} : vector<8x4xbf16>, vector<4x320xbf16>, vector<8x320xf32> -> vector<8x320xf32>
    %c1 = arith.constant 1 : index
    %c0_73 = arith.constant 0 : index
    %c0_74 = arith.constant 0 : index
    %90 = vector.load %arg6[%c1, %c0_73, %c0_74] : memref<9x8x4xbf16, #tpu.memory_space<vmem>>, vector<1x8x4xbf16>
    %91 = vector.shape_cast %90 : vector<1x8x4xbf16> to vector<8x4xbf16>
    %c0_75 = arith.constant 0 : index
    %c108 = arith.constant 108 : index
    %92 = vector.load %arg14[%c0_75, %c108] : memref<4x506xbf16, #tpu.memory_space<vmem>>, vector<4x320xbf16>
    %cst_76 = arith.constant dense<0.000000e+00> : vector<8x320xf32>
    %93 = tpu.matmul %91, %92, %cst_76 {dimension_numbers = #tpu.dot_dimension_numbers<[1], [0], [0], [1], [0, 0, 1, 1], [], []>} : vector<8x4xbf16>, vector<4x320xbf16>, vector<8x320xf32> -> vector<8x320xf32>
    %94 = arith.addf %89, %93 : vector<8x320xf32>
    %c2 = arith.constant 2 : index
    %c0_77 = arith.constant 0 : index
    %c0_78 = arith.constant 0 : index
    %95 = vector.load %arg6[%c2, %c0_77, %c0_78] : memref<9x8x4xbf16, #tpu.memory_space<vmem>>, vector<1x8x4xbf16>
    %96 = vector.shape_cast %95 : vector<1x8x4xbf16> to vector<8x4xbf16>
    %c0_79 = arith.constant 0 : index
    %c109 = arith.constant 109 : index
    %97 = vector.load %arg14[%c0_79, %c109] : memref<4x506xbf16, #tpu.memory_space<vmem>>, vector<4x320xbf16>
    %cst_80 = arith.constant dense<0.000000e+00> : vector<8x320xf32>
    %98 = tpu.matmul %96, %97, %cst_80 {dimension_numbers = #tpu.dot_dimension_numbers<[1], [0], [0], [1], [0, 0, 1, 1], [], []>} : vector<8x4xbf16>, vector<4x320xbf16>, vector<8x320xf32> -> vector<8x320xf32>
    %99 = arith.addf %94, %98 : vector<8x320xf32>
    %c3 = arith.constant 3 : index
    %c0_81 = arith.constant 0 : index
    %c0_82 = arith.constant 0 : index
    %100 = vector.load %arg6[%c3, %c0_81, %c0_82] : memref<9x8x4xbf16, #tpu.memory_space<vmem>>, vector<1x8x4xbf16>
    %101 = vector.shape_cast %100 : vector<1x8x4xbf16> to vector<8x4xbf16>
    %c0_83 = arith.constant 0 : index
    %c127 = arith.constant 127 : index
    %102 = vector.load %arg14[%c0_83, %c127] : memref<4x506xbf16, #tpu.memory_space<vmem>>, vector<4x320xbf16>
    %cst_84 = arith.constant dense<0.000000e+00> : vector<8x320xf32>
    %103 = tpu.matmul %101, %102, %cst_84 {dimension_numbers = #tpu.dot_dimension_numbers<[1], [0], [0], [1], [0, 0, 1, 1], [], []>} : vector<8x4xbf16>, vector<4x320xbf16>, vector<8x320xf32> -> vector<8x320xf32>
    %104 = arith.addf %99, %103 : vector<8x320xf32>
    %c4 = arith.constant 4 : index
    %c0_85 = arith.constant 0 : index
    %c0_86 = arith.constant 0 : index
    %105 = vector.load %arg6[%c4, %c0_85, %c0_86] : memref<9x8x4xbf16, #tpu.memory_space<vmem>>, vector<1x8x4xbf16>
    %106 = vector.shape_cast %105 : vector<1x8x4xbf16> to vector<8x4xbf16>
    %c0_87 = arith.constant 0 : index
    %c128_88 = arith.constant 128 : index
    %107 = vector.load %arg14[%c0_87, %c128_88] : memref<4x506xbf16, #tpu.memory_space<vmem>>, vector<4x320xbf16>
    %cst_89 = arith.constant dense<0.000000e+00> : vector<8x320xf32>
    %108 = tpu.matmul %106, %107, %cst_89 {dimension_numbers = #tpu.dot_dimension_numbers<[1], [0], [0], [1], [0, 0, 1, 1], [], []>} : vector<8x4xbf16>, vector<4x320xbf16>, vector<8x320xf32> -> vector<8x320xf32>
    %109 = arith.addf %104, %108 : vector<8x320xf32>
    %c5 = arith.constant 5 : index
    %c0_90 = arith.constant 0 : index
    %c0_91 = arith.constant 0 : index
    %110 = vector.load %arg6[%c5, %c0_90, %c0_91] : memref<9x8x4xbf16, #tpu.memory_space<vmem>>, vector<1x8x4xbf16>
    %111 = vector.shape_cast %110 : vector<1x8x4xbf16> to vector<8x4xbf16>
    %c0_92 = arith.constant 0 : index
    %c129 = arith.constant 129 : index
    %112 = vector.load %arg14[%c0_92, %c129] : memref<4x506xbf16, #tpu.memory_space<vmem>>, vector<4x320xbf16>
    %cst_93 = arith.constant dense<0.000000e+00> : vector<8x320xf32>
    %113 = tpu.matmul %111, %112, %cst_93 {dimension_numbers = #tpu.dot_dimension_numbers<[1], [0], [0], [1], [0, 0, 1, 1], [], []>} : vector<8x4xbf16>, vector<4x320xbf16>, vector<8x320xf32> -> vector<8x320xf32>
    %114 = arith.addf %109, %113 : vector<8x320xf32>
    %c6 = arith.constant 6 : index
    %c0_94 = arith.constant 0 : index
    %c0_95 = arith.constant 0 : index
    %115 = vector.load %arg6[%c6, %c0_94, %c0_95] : memref<9x8x4xbf16, #tpu.memory_space<vmem>>, vector<1x8x4xbf16>
    %116 = vector.shape_cast %115 : vector<1x8x4xbf16> to vector<8x4xbf16>
    %c0_96 = arith.constant 0 : index
    %c147 = arith.constant 147 : index
    %117 = vector.load %arg14[%c0_96, %c147] : memref<4x506xbf16, #tpu.memory_space<vmem>>, vector<4x320xbf16>
    %cst_97 = arith.constant dense<0.000000e+00> : vector<8x320xf32>
    %118 = tpu.matmul %116, %117, %cst_97 {dimension_numbers = #tpu.dot_dimension_numbers<[1], [0], [0], [1], [0, 0, 1, 1], [], []>} : vector<8x4xbf16>, vector<4x320xbf16>, vector<8x320xf32> -> vector<8x320xf32>
    %119 = arith.addf %114, %118 : vector<8x320xf32>
    %c7 = arith.constant 7 : index
    %c0_98 = arith.constant 0 : index
    %c0_99 = arith.constant 0 : index
    %120 = vector.load %arg6[%c7, %c0_98, %c0_99] : memref<9x8x4xbf16, #tpu.memory_space<vmem>>, vector<1x8x4xbf16>
    %121 = vector.shape_cast %120 : vector<1x8x4xbf16> to vector<8x4xbf16>
    %c0_100 = arith.constant 0 : index
    %c148_101 = arith.constant 148 : index
    %122 = vector.load %arg14[%c0_100, %c148_101] : memref<4x506xbf16, #tpu.memory_space<vmem>>, vector<4x320xbf16>
    %cst_102 = arith.constant dense<0.000000e+00> : vector<8x320xf32>
    %123 = tpu.matmul %121, %122, %cst_102 {dimension_numbers = #tpu.dot_dimension_numbers<[1], [0], [0], [1], [0, 0, 1, 1], [], []>} : vector<8x4xbf16>, vector<4x320xbf16>, vector<8x320xf32> -> vector<8x320xf32>
    %124 = arith.addf %119, %123 : vector<8x320xf32>
    %c8 = arith.constant 8 : index
    %c0_103 = arith.constant 0 : index
    %c0_104 = arith.constant 0 : index
    %125 = vector.load %arg6[%c8, %c0_103, %c0_104] : memref<9x8x4xbf16, #tpu.memory_space<vmem>>, vector<1x8x4xbf16>
    %126 = vector.shape_cast %125 : vector<1x8x4xbf16> to vector<8x4xbf16>
    %c0_105 = arith.constant 0 : index
    %c149 = arith.constant 149 : index
    %127 = vector.load %arg14[%c0_105, %c149] : memref<4x506xbf16, #tpu.memory_space<vmem>>, vector<4x320xbf16>
    %cst_106 = arith.constant dense<0.000000e+00> : vector<8x320xf32>
    %128 = tpu.matmul %126, %127, %cst_106 {dimension_numbers = #tpu.dot_dimension_numbers<[1], [0], [0], [1], [0, 0, 1, 1], [], []>} : vector<8x4xbf16>, vector<4x320xbf16>, vector<8x320xf32> -> vector<8x320xf32>
    %129 = arith.addf %124, %128 : vector<8x320xf32>
    %c0_107 = arith.constant 0 : index
    %c0_108 = arith.constant 0 : index
    %130 = vector.load %arg7[%c0_107, %c0_108] : memref<8x1xf32, #tpu.memory_space<vmem>>, vector<8x1xf32>
    %131 = vector.broadcast %130 : vector<8x1xf32> to vector<8x320xf32>
    %132 = arith.addf %129, %131 : vector<8x320xf32>
    %cst_109 = arith.constant 0.000000e+00 : f32
    %133 = vector.broadcast %cst_109 : f32 to vector<8x320xf32>
    %134 = arith.maximumf %132, %133 : vector<8x320xf32>
    %c0_110 = arith.constant 0 : index
    %c4_111 = arith.constant 4 : index
    %c0_112 = arith.constant 0 : index
    %135 = vector.load %arg12[%c0_110, %c4_111, %c0_112] : memref<1x20x320xf32, #tpu.memory_space<vmem>>, vector<1x8x320xf32>
    %136 = vector.shape_cast %135 : vector<1x8x320xf32> to vector<8x320xf32>
    %137 = vector.shape_cast %134 : vector<8x320xf32> to vector<1x8x320xf32>
    tpu.vector_store %arg12[%c0_110, %c4_111, %c0_112], %137 {strides = array<i32>} : memref<1x20x320xf32, #tpu.memory_space<vmem>>, vector<1x8x320xf32>,
    %c0_113 = arith.constant 0 : index
    %c0_114 = arith.constant 0 : index
    %c0_115 = arith.constant 0 : index
    %138 = vector.load %arg8[%c0_113, %c0_114, %c0_115] : memref<25x4x2xbf16, #tpu.memory_space<vmem>>, vector<1x4x2xbf16>
    %139 = vector.shape_cast %138 : vector<1x4x2xbf16> to vector<4x2xbf16>
    %c0_116 = arith.constant 0 : index
    %c86 = arith.constant 86 : index
    %140 = vector.load %arg15[%c0_116, %c86] : memref<2x506xbf16, #tpu.memory_space<vmem>>, vector<2x320xbf16>
    %cst_117 = arith.constant dense<0.000000e+00> : vector<4x320xf32>
    %141 = tpu.matmul %139, %140, %cst_117 {dimension_numbers = #tpu.dot_dimension_numbers<[1], [0], [0], [1], [0, 0, 1, 1], [], []>} : vector<4x2xbf16>, vector<2x320xbf16>, vector<4x320xf32> -> vector<4x320xf32>
    %c1_118 = arith.constant 1 : index
    %c0_119 = arith.constant 0 : index
    %c0_120 = arith.constant 0 : index
    %142 = vector.load %arg8[%c1_118, %c0_119, %c0_120] : memref<25x4x2xbf16, #tpu.memory_space<vmem>>, vector<1x4x2xbf16>
    %143 = vector.shape_cast %142 : vector<1x4x2xbf16> to vector<4x2xbf16>
    %c0_121 = arith.constant 0 : index
    %c87 = arith.constant 87 : index
    %144 = vector.load %arg15[%c0_121, %c87] : memref<2x506xbf16, #tpu.memory_space<vmem>>, vector<2x320xbf16>
    %cst_122 = arith.constant dense<0.000000e+00> : vector<4x320xf32>
    %145 = tpu.matmul %143, %144, %cst_122 {dimension_numbers = #tpu.dot_dimension_numbers<[1], [0], [0], [1], [0, 0, 1, 1], [], []>} : vector<4x2xbf16>, vector<2x320xbf16>, vector<4x320xf32> -> vector<4x320xf32>
    %146 = arith.addf %141, %145 : vector<4x320xf32>
    %c2_123 = arith.constant 2 : index
    %c0_124 = arith.constant 0 : index
    %c0_125 = arith.constant 0 : index
    %147 = vector.load %arg8[%c2_123, %c0_124, %c0_125] : memref<25x4x2xbf16, #tpu.memory_space<vmem>>, vector<1x4x2xbf16>
    %148 = vector.shape_cast %147 : vector<1x4x2xbf16> to vector<4x2xbf16>
    %c0_126 = arith.constant 0 : index
    %c88 = arith.constant 88 : index
    %149 = vector.load %arg15[%c0_126, %c88] : memref<2x506xbf16, #tpu.memory_space<vmem>>, vector<2x320xbf16>
    %cst_127 = arith.constant dense<0.000000e+00> : vector<4x320xf32>
    %150 = tpu.matmul %148, %149, %cst_127 {dimension_numbers = #tpu.dot_dimension_numbers<[1], [0], [0], [1], [0, 0, 1, 1], [], []>} : vector<4x2xbf16>, vector<2x320xbf16>, vector<4x320xf32> -> vector<4x320xf32>
    %151 = arith.addf %146, %150 : vector<4x320xf32>
    %c3_128 = arith.constant 3 : index
    %c0_129 = arith.constant 0 : index
    %c0_130 = arith.constant 0 : index
    %152 = vector.load %arg8[%c3_128, %c0_129, %c0_130] : memref<25x4x2xbf16, #tpu.memory_space<vmem>>, vector<1x4x2xbf16>
    %153 = vector.shape_cast %152 : vector<1x4x2xbf16> to vector<4x2xbf16>
    %c0_131 = arith.constant 0 : index
    %c89 = arith.constant 89 : index
    %154 = vector.load %arg15[%c0_131, %c89] : memref<2x506xbf16, #tpu.memory_space<vmem>>, vector<2x320xbf16>
    %cst_132 = arith.constant dense<0.000000e+00> : vector<4x320xf32>
    %155 = tpu.matmul %153, %154, %cst_132 {dimension_numbers = #tpu.dot_dimension_numbers<[1], [0], [0], [1], [0, 0, 1, 1], [], []>} : vector<4x2xbf16>, vector<2x320xbf16>, vector<4x320xf32> -> vector<4x320xf32>
    %156 = arith.addf %151, %155 : vector<4x320xf32>
    %c4_133 = arith.constant 4 : index
    %c0_134 = arith.constant 0 : index
    %c0_135 = arith.constant 0 : index
    %157 = vector.load %arg8[%c4_133, %c0_134, %c0_135] : memref<25x4x2xbf16, #tpu.memory_space<vmem>>, vector<1x4x2xbf16>
    %158 = vector.shape_cast %157 : vector<1x4x2xbf16> to vector<4x2xbf16>
    %c0_136 = arith.constant 0 : index
    %c90 = arith.constant 90 : index
    %159 = vector.load %arg15[%c0_136, %c90] : memref<2x506xbf16, #tpu.memory_space<vmem>>, vector<2x320xbf16>
    %cst_137 = arith.constant dense<0.000000e+00> : vector<4x320xf32>
    %160 = tpu.matmul %158, %159, %cst_137 {dimension_numbers = #tpu.dot_dimension_numbers<[1], [0], [0], [1], [0, 0, 1, 1], [], []>} : vector<4x2xbf16>, vector<2x320xbf16>, vector<4x320xf32> -> vector<4x320xf32>
    %161 = arith.addf %156, %160 : vector<4x320xf32>
    %c5_138 = arith.constant 5 : index
    %c0_139 = arith.constant 0 : index
    %c0_140 = arith.constant 0 : index
    %162 = vector.load %arg8[%c5_138, %c0_139, %c0_140] : memref<25x4x2xbf16, #tpu.memory_space<vmem>>, vector<1x4x2xbf16>
    %163 = vector.shape_cast %162 : vector<1x4x2xbf16> to vector<4x2xbf16>
    %c0_141 = arith.constant 0 : index
    %c106 = arith.constant 106 : index
    %164 = vector.load %arg15[%c0_141, %c106] : memref<2x506xbf16, #tpu.memory_space<vmem>>, vector<2x320xbf16>
    %cst_142 = arith.constant dense<0.000000e+00> : vector<4x320xf32>
    %165 = tpu.matmul %163, %164, %cst_142 {dimension_numbers = #tpu.dot_dimension_numbers<[1], [0], [0], [1], [0, 0, 1, 1], [], []>} : vector<4x2xbf16>, vector<2x320xbf16>, vector<4x320xf32> -> vector<4x320xf32>
    %166 = arith.addf %161, %165 : vector<4x320xf32>
    %c6_143 = arith.constant 6 : index
    %c0_144 = arith.constant 0 : index
    %c0_145 = arith.constant 0 : index
    %167 = vector.load %arg8[%c6_143, %c0_144, %c0_145] : memref<25x4x2xbf16, #tpu.memory_space<vmem>>, vector<1x4x2xbf16>
    %168 = vector.shape_cast %167 : vector<1x4x2xbf16> to vector<4x2xbf16>
    %c0_146 = arith.constant 0 : index
    %c107_147 = arith.constant 107 : index
    %169 = vector.load %arg15[%c0_146, %c107_147] : memref<2x506xbf16, #tpu.memory_space<vmem>>, vector<2x320xbf16>
    %cst_148 = arith.constant dense<0.000000e+00> : vector<4x320xf32>
    %170 = tpu.matmul %168, %169, %cst_148 {dimension_numbers = #tpu.dot_dimension_numbers<[1], [0], [0], [1], [0, 0, 1, 1], [], []>} : vector<4x2xbf16>, vector<2x320xbf16>, vector<4x320xf32> -> vector<4x320xf32>
    %171 = arith.addf %166, %170 : vector<4x320xf32>
    %c7_149 = arith.constant 7 : index
    %c0_150 = arith.constant 0 : index
    %c0_151 = arith.constant 0 : index
    %172 = vector.load %arg8[%c7_149, %c0_150, %c0_151] : memref<25x4x2xbf16, #tpu.memory_space<vmem>>, vector<1x4x2xbf16>
    %173 = vector.shape_cast %172 : vector<1x4x2xbf16> to vector<4x2xbf16>
    %c0_152 = arith.constant 0 : index
    %c108_153 = arith.constant 108 : index
    %174 = vector.load %arg15[%c0_152, %c108_153] : memref<2x506xbf16, #tpu.memory_space<vmem>>, vector<2x320xbf16>
    %cst_154 = arith.constant dense<0.000000e+00> : vector<4x320xf32>
    %175 = tpu.matmul %173, %174, %cst_154 {dimension_numbers = #tpu.dot_dimension_numbers<[1], [0], [0], [1], [0, 0, 1, 1], [], []>} : vector<4x2xbf16>, vector<2x320xbf16>, vector<4x320xf32> -> vector<4x320xf32>
    %176 = arith.addf %171, %175 : vector<4x320xf32>
    %c8_155 = arith.constant 8 : index
    %c0_156 = arith.constant 0 : index
    %c0_157 = arith.constant 0 : index
    %177 = vector.load %arg8[%c8_155, %c0_156, %c0_157] : memref<25x4x2xbf16, #tpu.memory_space<vmem>>, vector<1x4x2xbf16>
    %178 = vector.shape_cast %177 : vector<1x4x2xbf16> to vector<4x2xbf16>
    %c0_158 = arith.constant 0 : index
    %c109_159 = arith.constant 109 : index
    %179 = vector.load %arg15[%c0_158, %c109_159] : memref<2x506xbf16, #tpu.memory_space<vmem>>, vector<2x320xbf16>
    %cst_160 = arith.constant dense<0.000000e+00> : vector<4x320xf32>
    %180 = tpu.matmul %178, %179, %cst_160 {dimension_numbers = #tpu.dot_dimension_numbers<[1], [0], [0], [1], [0, 0, 1, 1], [], []>} : vector<4x2xbf16>, vector<2x320xbf16>, vector<4x320xf32> -> vector<4x320xf32>
    %181 = arith.addf %176, %180 : vector<4x320xf32>
    %c9 = arith.constant 9 : index
    %c0_161 = arith.constant 0 : index
    %c0_162 = arith.constant 0 : index
    %182 = vector.load %arg8[%c9, %c0_161, %c0_162] : memref<25x4x2xbf16, #tpu.memory_space<vmem>>, vector<1x4x2xbf16>
    %183 = vector.shape_cast %182 : vector<1x4x2xbf16> to vector<4x2xbf16>
    %c0_163 = arith.constant 0 : index
    %c110 = arith.constant 110 : index
    %184 = vector.load %arg15[%c0_163, %c110] : memref<2x506xbf16, #tpu.memory_space<vmem>>, vector<2x320xbf16>
    %cst_164 = arith.constant dense<0.000000e+00> : vector<4x320xf32>
    %185 = tpu.matmul %183, %184, %cst_164 {dimension_numbers = #tpu.dot_dimension_numbers<[1], [0], [0], [1], [0, 0, 1, 1], [], []>} : vector<4x2xbf16>, vector<2x320xbf16>, vector<4x320xf32> -> vector<4x320xf32>
    %186 = arith.addf %181, %185 : vector<4x320xf32>
    %c10 = arith.constant 10 : index
    %c0_165 = arith.constant 0 : index
    %c0_166 = arith.constant 0 : index
    %187 = vector.load %arg8[%c10, %c0_165, %c0_166] : memref<25x4x2xbf16, #tpu.memory_space<vmem>>, vector<1x4x2xbf16>
    %188 = vector.shape_cast %187 : vector<1x4x2xbf16> to vector<4x2xbf16>
    %c0_167 = arith.constant 0 : index
    %c126 = arith.constant 126 : index
    %189 = vector.load %arg15[%c0_167, %c126] : memref<2x506xbf16, #tpu.memory_space<vmem>>, vector<2x320xbf16>
    %cst_168 = arith.constant dense<0.000000e+00> : vector<4x320xf32>
    %190 = tpu.matmul %188, %189, %cst_168 {dimension_numbers = #tpu.dot_dimension_numbers<[1], [0], [0], [1], [0, 0, 1, 1], [], []>} : vector<4x2xbf16>, vector<2x320xbf16>, vector<4x320xf32> -> vector<4x320xf32>
    %191 = arith.addf %186, %190 : vector<4x320xf32>
    %c11 = arith.constant 11 : index
    %c0_169 = arith.constant 0 : index
    %c0_170 = arith.constant 0 : index
    %192 = vector.load %arg8[%c11, %c0_169, %c0_170] : memref<25x4x2xbf16, #tpu.memory_space<vmem>>, vector<1x4x2xbf16>
    %193 = vector.shape_cast %192 : vector<1x4x2xbf16> to vector<4x2xbf16>
    %c0_171 = arith.constant 0 : index
    %c127_172 = arith.constant 127 : index
    %194 = vector.load %arg15[%c0_171, %c127_172] : memref<2x506xbf16, #tpu.memory_space<vmem>>, vector<2x320xbf16>
    %cst_173 = arith.constant dense<0.000000e+00> : vector<4x320xf32>
    %195 = tpu.matmul %193, %194, %cst_173 {dimension_numbers = #tpu.dot_dimension_numbers<[1], [0], [0], [1], [0, 0, 1, 1], [], []>} : vector<4x2xbf16>, vector<2x320xbf16>, vector<4x320xf32> -> vector<4x320xf32>
    %196 = arith.addf %191, %195 : vector<4x320xf32>
    %c12 = arith.constant 12 : index
    %c0_174 = arith.constant 0 : index
    %c0_175 = arith.constant 0 : index
    %197 = vector.load %arg8[%c12, %c0_174, %c0_175] : memref<25x4x2xbf16, #tpu.memory_space<vmem>>, vector<1x4x2xbf16>
    %198 = vector.shape_cast %197 : vector<1x4x2xbf16> to vector<4x2xbf16>
    %c0_176 = arith.constant 0 : index
    %c128_177 = arith.constant 128 : index
    %199 = vector.load %arg15[%c0_176, %c128_177] : memref<2x506xbf16, #tpu.memory_space<vmem>>, vector<2x320xbf16>
    %cst_178 = arith.constant dense<0.000000e+00> : vector<4x320xf32>
    %200 = tpu.matmul %198, %199, %cst_178 {dimension_numbers = #tpu.dot_dimension_numbers<[1], [0], [0], [1], [0, 0, 1, 1], [], []>} : vector<4x2xbf16>, vector<2x320xbf16>, vector<4x320xf32> -> vector<4x320xf32>
    %201 = arith.addf %196, %200 : vector<4x320xf32>
    %c13 = arith.constant 13 : index
    %c0_179 = arith.constant 0 : index
    %c0_180 = arith.constant 0 : index
    %202 = vector.load %arg8[%c13, %c0_179, %c0_180] : memref<25x4x2xbf16, #tpu.memory_space<vmem>>, vector<1x4x2xbf16>
    %203 = vector.shape_cast %202 : vector<1x4x2xbf16> to vector<4x2xbf16>
    %c0_181 = arith.constant 0 : index
    %c129_182 = arith.constant 129 : index
    %204 = vector.load %arg15[%c0_181, %c129_182] : memref<2x506xbf16, #tpu.memory_space<vmem>>, vector<2x320xbf16>
    %cst_183 = arith.constant dense<0.000000e+00> : vector<4x320xf32>
    %205 = tpu.matmul %203, %204, %cst_183 {dimension_numbers = #tpu.dot_dimension_numbers<[1], [0], [0], [1], [0, 0, 1, 1], [], []>} : vector<4x2xbf16>, vector<2x320xbf16>, vector<4x320xf32> -> vector<4x320xf32>
    %206 = arith.addf %201, %205 : vector<4x320xf32>
    %c14 = arith.constant 14 : index
    %c0_184 = arith.constant 0 : index
    %c0_185 = arith.constant 0 : index
    %207 = vector.load %arg8[%c14, %c0_184, %c0_185] : memref<25x4x2xbf16, #tpu.memory_space<vmem>>, vector<1x4x2xbf16>
    %208 = vector.shape_cast %207 : vector<1x4x2xbf16> to vector<4x2xbf16>
    %c0_186 = arith.constant 0 : index
    %c130 = arith.constant 130 : index
    %209 = vector.load %arg15[%c0_186, %c130] : memref<2x506xbf16, #tpu.memory_space<vmem>>, vector<2x320xbf16>
    %cst_187 = arith.constant dense<0.000000e+00> : vector<4x320xf32>
    %210 = tpu.matmul %208, %209, %cst_187 {dimension_numbers = #tpu.dot_dimension_numbers<[1], [0], [0], [1], [0, 0, 1, 1], [], []>} : vector<4x2xbf16>, vector<2x320xbf16>, vector<4x320xf32> -> vector<4x320xf32>
    %211 = arith.addf %206, %210 : vector<4x320xf32>
    %c15 = arith.constant 15 : index
    %c0_188 = arith.constant 0 : index
    %c0_189 = arith.constant 0 : index
    %212 = vector.load %arg8[%c15, %c0_188, %c0_189] : memref<25x4x2xbf16, #tpu.memory_space<vmem>>, vector<1x4x2xbf16>
    %213 = vector.shape_cast %212 : vector<1x4x2xbf16> to vector<4x2xbf16>
    %c0_190 = arith.constant 0 : index
    %c146 = arith.constant 146 : index
    %214 = vector.load %arg15[%c0_190, %c146] : memref<2x506xbf16, #tpu.memory_space<vmem>>, vector<2x320xbf16>
    %cst_191 = arith.constant dense<0.000000e+00> : vector<4x320xf32>
    %215 = tpu.matmul %213, %214, %cst_191 {dimension_numbers = #tpu.dot_dimension_numbers<[1], [0], [0], [1], [0, 0, 1, 1], [], []>} : vector<4x2xbf16>, vector<2x320xbf16>, vector<4x320xf32> -> vector<4x320xf32>
    %216 = arith.addf %211, %215 : vector<4x320xf32>
    %c16 = arith.constant 16 : index
    %c0_192 = arith.constant 0 : index
    %c0_193 = arith.constant 0 : index
    %217 = vector.load %arg8[%c16, %c0_192, %c0_193] : memref<25x4x2xbf16, #tpu.memory_space<vmem>>, vector<1x4x2xbf16>
    %218 = vector.shape_cast %217 : vector<1x4x2xbf16> to vector<4x2xbf16>
    %c0_194 = arith.constant 0 : index
    %c147_195 = arith.constant 147 : index
    %219 = vector.load %arg15[%c0_194, %c147_195] : memref<2x506xbf16, #tpu.memory_space<vmem>>, vector<2x320xbf16>
    %cst_196 = arith.constant dense<0.000000e+00> : vector<4x320xf32>
    %220 = tpu.matmul %218, %219, %cst_196 {dimension_numbers = #tpu.dot_dimension_numbers<[1], [0], [0], [1], [0, 0, 1, 1], [], []>} : vector<4x2xbf16>, vector<2x320xbf16>, vector<4x320xf32> -> vector<4x320xf32>
    %221 = arith.addf %216, %220 : vector<4x320xf32>
    %c17 = arith.constant 17 : index
    %c0_197 = arith.constant 0 : index
    %c0_198 = arith.constant 0 : index
    %222 = vector.load %arg8[%c17, %c0_197, %c0_198] : memref<25x4x2xbf16, #tpu.memory_space<vmem>>, vector<1x4x2xbf16>
    %223 = vector.shape_cast %222 : vector<1x4x2xbf16> to vector<4x2xbf16>
    %c0_199 = arith.constant 0 : index
    %c148_200 = arith.constant 148 : index
    %224 = vector.load %arg15[%c0_199, %c148_200] : memref<2x506xbf16, #tpu.memory_space<vmem>>, vector<2x320xbf16>
    %cst_201 = arith.constant dense<0.000000e+00> : vector<4x320xf32>
    %225 = tpu.matmul %223, %224, %cst_201 {dimension_numbers = #tpu.dot_dimension_numbers<[1], [0], [0], [1], [0, 0, 1, 1], [], []>} : vector<4x2xbf16>, vector<2x320xbf16>, vector<4x320xf32> -> vector<4x320xf32>
    %226 = arith.addf %221, %225 : vector<4x320xf32>
    %c18 = arith.constant 18 : index
    %c0_202 = arith.constant 0 : index
    %c0_203 = arith.constant 0 : index
    %227 = vector.load %arg8[%c18, %c0_202, %c0_203] : memref<25x4x2xbf16, #tpu.memory_space<vmem>>, vector<1x4x2xbf16>
    %228 = vector.shape_cast %227 : vector<1x4x2xbf16> to vector<4x2xbf16>
    %c0_204 = arith.constant 0 : index
    %c149_205 = arith.constant 149 : index
    %229 = vector.load %arg15[%c0_204, %c149_205] : memref<2x506xbf16, #tpu.memory_space<vmem>>, vector<2x320xbf16>
    %cst_206 = arith.constant dense<0.000000e+00> : vector<4x320xf32>
    %230 = tpu.matmul %228, %229, %cst_206 {dimension_numbers = #tpu.dot_dimension_numbers<[1], [0], [0], [1], [0, 0, 1, 1], [], []>} : vector<4x2xbf16>, vector<2x320xbf16>, vector<4x320xf32> -> vector<4x320xf32>
    %231 = arith.addf %226, %230 : vector<4x320xf32>
    %c19 = arith.constant 19 : index
    %c0_207 = arith.constant 0 : index
    %c0_208 = arith.constant 0 : index
    %232 = vector.load %arg8[%c19, %c0_207, %c0_208] : memref<25x4x2xbf16, #tpu.memory_space<vmem>>, vector<1x4x2xbf16>
    %233 = vector.shape_cast %232 : vector<1x4x2xbf16> to vector<4x2xbf16>
    %c0_209 = arith.constant 0 : index
    %c150 = arith.constant 150 : index
    %234 = vector.load %arg15[%c0_209, %c150] : memref<2x506xbf16, #tpu.memory_space<vmem>>, vector<2x320xbf16>
    %cst_210 = arith.constant dense<0.000000e+00> : vector<4x320xf32>
    %235 = tpu.matmul %233, %234, %cst_210 {dimension_numbers = #tpu.dot_dimension_numbers<[1], [0], [0], [1], [0, 0, 1, 1], [], []>} : vector<4x2xbf16>, vector<2x320xbf16>, vector<4x320xf32> -> vector<4x320xf32>
    %236 = arith.addf %231, %235 : vector<4x320xf32>
    %c20 = arith.constant 20 : index
    %c0_211 = arith.constant 0 : index
    %c0_212 = arith.constant 0 : index
    %237 = vector.load %arg8[%c20, %c0_211, %c0_212] : memref<25x4x2xbf16, #tpu.memory_space<vmem>>, vector<1x4x2xbf16>
    %238 = vector.shape_cast %237 : vector<1x4x2xbf16> to vector<4x2xbf16>
    %c0_213 = arith.constant 0 : index
    %c166 = arith.constant 166 : index
    %239 = vector.load %arg15[%c0_213, %c166] : memref<2x506xbf16, #tpu.memory_space<vmem>>, vector<2x320xbf16>
    %cst_214 = arith.constant dense<0.000000e+00> : vector<4x320xf32>
    %240 = tpu.matmul %238, %239, %cst_214 {dimension_numbers = #tpu.dot_dimension_numbers<[1], [0], [0], [1], [0, 0, 1, 1], [], []>} : vector<4x2xbf16>, vector<2x320xbf16>, vector<4x320xf32> -> vector<4x320xf32>
    %241 = arith.addf %236, %240 : vector<4x320xf32>
    %c21 = arith.constant 21 : index
    %c0_215 = arith.constant 0 : index
    %c0_216 = arith.constant 0 : index
    %242 = vector.load %arg8[%c21, %c0_215, %c0_216] : memref<25x4x2xbf16, #tpu.memory_space<vmem>>, vector<1x4x2xbf16>
    %243 = vector.shape_cast %242 : vector<1x4x2xbf16> to vector<4x2xbf16>
    %c0_217 = arith.constant 0 : index
    %c167 = arith.constant 167 : index
    %244 = vector.load %arg15[%c0_217, %c167] : memref<2x506xbf16, #tpu.memory_space<vmem>>, vector<2x320xbf16>
    %cst_218 = arith.constant dense<0.000000e+00> : vector<4x320xf32>
    %245 = tpu.matmul %243, %244, %cst_218 {dimension_numbers = #tpu.dot_dimension_numbers<[1], [0], [0], [1], [0, 0, 1, 1], [], []>} : vector<4x2xbf16>, vector<2x320xbf16>, vector<4x320xf32> -> vector<4x320xf32>
    %246 = arith.addf %241, %245 : vector<4x320xf32>
    %c22 = arith.constant 22 : index
    %c0_219 = arith.constant 0 : index
    %c0_220 = arith.constant 0 : index
    %247 = vector.load %arg8[%c22, %c0_219, %c0_220] : memref<25x4x2xbf16, #tpu.memory_space<vmem>>, vector<1x4x2xbf16>
    %248 = vector.shape_cast %247 : vector<1x4x2xbf16> to vector<4x2xbf16>
    %c0_221 = arith.constant 0 : index
    %c168_222 = arith.constant 168 : index
    %249 = vector.load %arg15[%c0_221, %c168_222] : memref<2x506xbf16, #tpu.memory_space<vmem>>, vector<2x320xbf16>
    %cst_223 = arith.constant dense<0.000000e+00> : vector<4x320xf32>
    %250 = tpu.matmul %248, %249, %cst_223 {dimension_numbers = #tpu.dot_dimension_numbers<[1], [0], [0], [1], [0, 0, 1, 1], [], []>} : vector<4x2xbf16>, vector<2x320xbf16>, vector<4x320xf32> -> vector<4x320xf32>
    %251 = arith.addf %246, %250 : vector<4x320xf32>
    %c23 = arith.constant 23 : index
    %c0_224 = arith.constant 0 : index
    %c0_225 = arith.constant 0 : index
    %252 = vector.load %arg8[%c23, %c0_224, %c0_225] : memref<25x4x2xbf16, #tpu.memory_space<vmem>>, vector<1x4x2xbf16>
    %253 = vector.shape_cast %252 : vector<1x4x2xbf16> to vector<4x2xbf16>
    %c0_226 = arith.constant 0 : index
    %c169 = arith.constant 169 : index
    %254 = vector.load %arg15[%c0_226, %c169] : memref<2x506xbf16, #tpu.memory_space<vmem>>, vector<2x320xbf16>
    %cst_227 = arith.constant dense<0.000000e+00> : vector<4x320xf32>
    %255 = tpu.matmul %253, %254, %cst_227 {dimension_numbers = #tpu.dot_dimension_numbers<[1], [0], [0], [1], [0, 0, 1, 1], [], []>} : vector<4x2xbf16>, vector<2x320xbf16>, vector<4x320xf32> -> vector<4x320xf32>
    %256 = arith.addf %251, %255 : vector<4x320xf32>
    %c24 = arith.constant 24 : index
    %c0_228 = arith.constant 0 : index
    %c0_229 = arith.constant 0 : index
    %257 = vector.load %arg8[%c24, %c0_228, %c0_229] : memref<25x4x2xbf16, #tpu.memory_space<vmem>>, vector<1x4x2xbf16>
    %258 = vector.shape_cast %257 : vector<1x4x2xbf16> to vector<4x2xbf16>
    %c0_230 = arith.constant 0 : index
    %c170 = arith.constant 170 : index
    %259 = vector.load %arg15[%c0_230, %c170] : memref<2x506xbf16, #tpu.memory_space<vmem>>, vector<2x320xbf16>
    %cst_231 = arith.constant dense<0.000000e+00> : vector<4x320xf32>
    %260 = tpu.matmul %258, %259, %cst_231 {dimension_numbers = #tpu.dot_dimension_numbers<[1], [0], [0], [1], [0, 0, 1, 1], [], []>} : vector<4x2xbf16>, vector<2x320xbf16>, vector<4x320xf32> -> vector<4x320xf32>
    %261 = arith.addf %256, %260 : vector<4x320xf32>
    %c0_232 = arith.constant 0 : index
    %c0_233 = arith.constant 0 : index
    %262 = vector.load %arg9[%c0_232, %c0_233] : memref<4x1xf32, #tpu.memory_space<vmem>>, vector<4x1xf32>
    %263 = vector.broadcast %262 : vector<4x1xf32> to vector<4x320xf32>
    %264 = arith.addf %261, %263 : vector<4x320xf32>
    %cst_234 = arith.constant 0.000000e+00 : f32
    %265 = vector.broadcast %cst_234 : f32 to vector<4x320xf32>
    %266 = arith.maximumf %264, %265 : vector<4x320xf32>
    %c0_235 = arith.constant 0 : index
    %c12_236 = arith.constant 12 : index
    %c0_237 = arith.constant 0 : index
    %267 = vector.load %arg12[%c0_235, %c12_236, %c0_237] : memref<1x20x320xf32, #tpu.memory_space<vmem>>, vector<1x4x320xf32>
    %268 = vector.shape_cast %267 : vector<1x4x320xf32> to vector<4x320xf32>
    %269 = vector.shape_cast %266 : vector<4x320xf32> to vector<1x4x320xf32>
    tpu.vector_store %arg12[%c0_235, %c12_236, %c0_237], %269 {strides = array<i32>} : memref<1x20x320xf32, #tpu.memory_space<vmem>>, vector<1x4x320xf32>,
    %c0_238 = arith.constant 0 : index
    %c107_239 = arith.constant 107 : index
    %270 = vector.load %arg13[%c0_238, %c107_239] : memref<4x506xbf16, #tpu.memory_space<vmem>>, vector<4x362xbf16>
    %c0_240 = arith.constant 0 : index
    %c107_241 = arith.constant 107 : index
    %271 = vector.load %arg2[%c0_240, %c107_241] : memref<1x506xbf16, #tpu.memory_space<vmem>>, vector<1x362xbf16>
    %272 = vector.broadcast %271 : vector<1x362xbf16> to vector<4x362xbf16>
    %273 = arith.addf %270, %272 : vector<4x362xbf16>
    %274 = vector.extract_strided_slice %273 {offsets = [0, 0], sizes = [4, 360], strides = [1, 1]} : vector<4x362xbf16> to vector<4x360xbf16>
    %275 = vector.extract_strided_slice %273 {offsets = [0, 1], sizes = [4, 360], strides = [1, 1]} : vector<4x362xbf16> to vector<4x360xbf16>
    %276 = arith.maximumf %274, %275 : vector<4x360xbf16>
    %277 = vector.extract_strided_slice %273 {offsets = [0, 2], sizes = [4, 360], strides = [1, 1]} : vector<4x362xbf16> to vector<4x360xbf16>
    %278 = arith.maximumf %276, %277 : vector<4x360xbf16>
    %279 = vector.extract_strided_slice %278 {offsets = [0, 0], sizes = [4, 320], strides = [1, 1]} : vector<4x360xbf16> to vector<4x320xbf16>
    %280 = vector.extract_strided_slice %278 {offsets = [0, 20], sizes = [4, 320], strides = [1, 1]} : vector<4x360xbf16> to vector<4x320xbf16>
    %281 = arith.maximumf %279, %280 : vector<4x320xbf16>
    %282 = vector.extract_strided_slice %278 {offsets = [0, 40], sizes = [4, 320], strides = [1, 1]} : vector<4x360xbf16> to vector<4x320xbf16>
    %283 = arith.maximumf %281, %282 : vector<4x320xbf16>
    %c0_242 = arith.constant 0 : index
    %c0_243 = arith.constant 0 : index
    %284 = vector.load %arg10[%c0_242, %c0_243] : memref<4x4xbf16, #tpu.memory_space<vmem>>, vector<4x4xbf16>
    %cst_244 = arith.constant dense<0.000000e+00> : vector<4x320xf32>
    %285 = tpu.matmul %284, %283, %cst_244 {dimension_numbers = #tpu.dot_dimension_numbers<[1], [0], [0], [1], [0, 0, 1, 1], [], []>} : vector<4x4xbf16>, vector<4x320xbf16>, vector<4x320xf32> -> vector<4x320xf32>
    %c0_245 = arith.constant 0 : index
    %c0_246 = arith.constant 0 : index
    %286 = vector.load %arg11[%c0_245, %c0_246] : memref<4x1xf32, #tpu.memory_space<vmem>>, vector<4x1xf32>
    %287 = vector.broadcast %286 : vector<4x1xf32> to vector<4x320xf32>
    %288 = arith.addf %285, %287 : vector<4x320xf32>
    %cst_247 = arith.constant 0.000000e+00 : f32
    %289 = vector.broadcast %cst_247 : f32 to vector<4x320xf32>
    %290 = arith.maximumf %288, %289 : vector<4x320xf32>
    %c0_248 = arith.constant 0 : index
    %c16_249 = arith.constant 16 : index
    %c0_250 = arith.constant 0 : index
    %291 = vector.load %arg12[%c0_248, %c16_249, %c0_250] : memref<1x20x320xf32, #tpu.memory_space<vmem>>, vector<1x4x320xf32>
    %292 = vector.shape_cast %291 : vector<1x4x320xf32> to vector<4x320xf32>
    %293 = vector.shape_cast %290 : vector<4x320xf32> to vector<1x4x320xf32>
    tpu.vector_store %arg12[%c0_248, %c16_249, %c0_250], %293 {strides = array<i32>} : memref<1x20x320xf32, #tpu.memory_space<vmem>>, vector<1x4x320xf32>,
    return
  }
  func.func @transform_0(%arg0: i32) -> (i32, i32, i32) {
    %c0_i32 = arith.constant 0 : i32
    %c0_i32_0 = arith.constant 0 : i32
    %c0_i32_1 = arith.constant 0 : i32
    return %arg0, %c0_i32, %c0_i32_0 : i32, i32, i32
  }
  func.func @transform_1(%arg0: i32) -> (i32, i32) {
    %c0_i32 = arith.constant 0 : i32
    %c0_i32_0 = arith.constant 0 : i32
    %c0_i32_1 = arith.constant 0 : i32
    return %c0_i32, %c0_i32_0 : i32, i32
  }
  func.func @transform_2(%arg0: i32) -> (i32, i32) {
    %c0_i32 = arith.constant 0 : i32
    %c0_i32_0 = arith.constant 0 : i32
    %c0_i32_1 = arith.constant 0 : i32
    return %c0_i32, %c0_i32_0 : i32, i32
  }
  func.func @transform_3(%arg0: i32) -> (i32, i32) {
    %c0_i32 = arith.constant 0 : i32
    %c0_i32_0 = arith.constant 0 : i32
    %c0_i32_1 = arith.constant 0 : i32
    return %c0_i32, %c0_i32_0 : i32, i32
  }
  func.func @transform_4(%arg0: i32) -> (i32, i32) {
    %c0_i32 = arith.constant 0 : i32
    %c0_i32_0 = arith.constant 0 : i32
    %c0_i32_1 = arith.constant 0 : i32
    return %c0_i32, %c0_i32_0 : i32, i32
  }
  func.func @transform_5(%arg0: i32) -> (i32, i32, i32) {
    %c0_i32 = arith.constant 0 : i32
    %c0_i32_0 = arith.constant 0 : i32
    %c0_i32_1 = arith.constant 0 : i32
    %c0_i32_2 = arith.constant 0 : i32
    return %c0_i32, %c0_i32_0, %c0_i32_1 : i32, i32, i32
  }
  func.func @transform_6(%arg0: i32) -> (i32, i32) {
    %c0_i32 = arith.constant 0 : i32
    %c0_i32_0 = arith.constant 0 : i32
    %c0_i32_1 = arith.constant 0 : i32
    return %c0_i32, %c0_i32_0 : i32, i32
  }
  func.func @transform_7(%arg0: i32) -> (i32, i32, i32) {
    %c0_i32 = arith.constant 0 : i32
    %c0_i32_0 = arith.constant 0 : i32
    %c0_i32_1 = arith.constant 0 : i32
    %c0_i32_2 = arith.constant 0 : i32
    return %c0_i32, %c0_i32_0, %c0_i32_1 : i32, i32, i32
  }
  func.func @transform_8(%arg0: i32) -> (i32, i32) {
    %c0_i32 = arith.constant 0 : i32
    %c0_i32_0 = arith.constant 0 : i32
    %c0_i32_1 = arith.constant 0 : i32
    return %c0_i32, %c0_i32_0 : i32, i32
  }
  func.func @transform_9(%arg0: i32) -> (i32, i32) {
    %c0_i32 = arith.constant 0 : i32
    %c0_i32_0 = arith.constant 0 : i32
    %c0_i32_1 = arith.constant 0 : i32
    return %c0_i32, %c0_i32_0 : i32, i32
  }
  func.func @transform_10(%arg0: i32) -> (i32, i32) {
    %c0_i32 = arith.constant 0 : i32
    %c0_i32_0 = arith.constant 0 : i32
    %c0_i32_1 = arith.constant 0 : i32
    return %c0_i32, %c0_i32_0 : i32, i32
  }
  func.func @transform_11(%arg0: i32) -> (i32, i32, i32) {
    %c0_i32 = arith.constant 0 : i32
    %c0_i32_0 = arith.constant 0 : i32
    %c0_i32_1 = arith.constant 0 : i32
    return %arg0, %c0_i32, %c0_i32_0 : i32, i32, i32
  }
}

</mosaic_0001>

<bundles_post_ra>
// kernel: inception_forward.1
= control target key start
LH: loop header
LB: loop body
LE: loop exit
PB: predicated region body
PF: predicated region fallthrough
CT: control target
= control target key end

     0   :  { %s6150_s17 = smov 0   ;;  %s7012_s0 = inlined_call_operand.vmem [shape: bf16[2,4,256], index: 0, kind: input, shape index: {}]   ;;  %s7013_s1 = inlined_call_operand.vmem [shape: bf16[1,506], index: 1, kind: input, shape index: {}]   ;;  %s7014_s2 = inlined_call_operand.vmem [shape: f32[1,320], index: 2, kind: input, shape index: {}]   ;;  %s7015_s3 = inlined_call_operand.vmem [shape: bf16[10,4], index: 3, kind: input, shape index: {}]   ;;  %s7016_s4 = inlined_call_operand.vmem [shape: f32[10,1], index: 4, kind: input, shape index: {}]   ;;  %s7017_s5 = inlined_call_operand.vmem [shape: bf16[9,8,4], index: 5, kind: input, shape index: {}]   ;;  %s7018_s6 = inlined_call_operand.vmem [shape: f32[8,1], index: 6, kind: input, shape index: {}]   ;;  %s7019_s7 = inlined_call_operand.vmem [shape: bf16[25,4,2], index: 7, kind: input, shape index: {}]   ;;  %s7020_s8 = inlined_call_operand.vmem [shape: f32[4,1], index: 8, kind: input, shape index: {}]   ;;  %s7021_s9 = inlined_call_operand.vmem [shape: bf16[4,4], index: 9, kind: input, shape index: {}]   ;;  %s7022_s10 = inlined_call_operand.vmem [shape: f32[4,1], index: 10, kind: input, shape index: {}]   ;;  %s7023_s11 = inlined_call_operand.vmem [shape: f32[2,20,320], index: 11, kind: output, shape index: {}]  }
   0x1 LB: > { %s5512_s18 = sadd.s32 4294967295, %s6046_s17   ;;  %p5516_p0 = scmp.ge.s32.totalorder %s6046_s17, 1  ;;  %s6046_s17 = sphi %s6150_s17, %s21_s17  }
   0x2   : > { %p337_p1 = scmp.lt.s32.totalorder %s6046_s17, 3 }
   0x4   : > { %p338_p2 = pnand %p5516_p0, %p337_p1 }
   0x5   : > { %p377_p3 = scmp.lt.s32.totalorder (!%p338_p2), %s5512_s18, 1  ;;  %v6048_v0 = vmov (!%p338_p2), 0   ;;  %vm392_vm0 = vcmask (!%p338_p2), 123904   ;;  %vm394_vm1 = vcmask (!%p338_p2), 156800   ;;  %s6049_s23 = smov (!%p338_p2), 4   ;;  %vm390_vm2 = vcmask (!%p338_p2), 992768  }
   0x6   : > { %341 = sbr.rel (%p338_p2) target bundleno = 1131 (0x46b), region = 64  ;;  %389 = vst [vmem:[#allocation2] sm:$0x3] (!%p338_p2), %v6048_v0  ;;  %699 = vst [vmem:[#allocation3] sm:$0x3] (!%p338_p2), %v6048_v0  ;;  %608 = vmatprep.mubr.bf16.mxu0 (!%p338_p2), %v6048_v0  ;;  %6030 = vset.pattern.permute.xlu1 (!%p338_p2), %v6048_v0  ;;  %s6050_s24 = smov (!%p338_p2), 12   ;;  %v550_v37 = vlaneseq (!%p338_p2) }
   0x7   : > { %726 = vst [vmem:[#allocation4] sm:$0x1] (!%p338_p2), %v6048_v0  ;;  %6031 = vset.pattern.permute.xlu0 (!%p338_p2), %v6048_v0  ;;  %s6051_s25 = smov (!%p338_p2), 8   ;;  %s6052_s26 = smov (!%p338_p2), 16   ;;  %391 = vst.msk [vmem:[#allocation2 + $0x6] sm:$0x3] (!%p338_p2), %vm390_vm2, %v6048_v0 }
   0x8   : > { %vm499_vm3 = vcmask (!%p338_p2), 25600   ;;  %700 = vst.msk [vmem:[#allocation3 + $0x6] sm:$0x3] (!%p338_p2), %vm390_vm2, %v6048_v0  ;;  %s6053_s27 = smov (!%p338_p2), 24   ;;  %s6054_s28 = smov (!%p338_p2), 20   ;;  %v6064_v2 = vmov (!%p338_p2), 0.0  }
   0x9   : > { %500 = vst.msk [vmem:[#allocation2 + $0x6] sm:$0x3] (!%p338_p2), %vm499_vm3, %v6048_v0  ;;  %s6055_s29 = smov (!%p338_p2), 32   ;;  %s6056_s30 = smov (!%p338_p2), 28   ;;  %5763 = vmatprep.subr.bf16.mxu1 (!%p338_p2), %v6064_v2  ;;  %vm6065_vm4 = vmmov (!%p338_p2), 0   ;;  %v528_v3 = vld [vmem:[%s7016_s4] sm:$0xff] (!%p338_p2) }
   0xa   : > { %s6057_s12 = smov (!%p338_p2), 36   ;;  %s6058_s13 = smov (!%p338_p2), 40   ;;  %5765 = vmatprep.mubr.msk.bf16.mxu1 (!%p338_p2), %vm6065_vm4, %v6064_v2  ;;  %v529_v4 = vld [vmem:[%s7016_s4 + $0x8] sm:$0x3] (!%p338_p2)  ;;  %vm400_vm5 = vcmask (!%p338_p2), 287904   ;;  %vm402_vm6 = vcmask (!%p338_p2), 320800  }
   0xb   : > { %s6059_s14 = smov (!%p338_p2), 52   ;;  %s6060_s15 = smov (!%p338_p2), 44   ;;  %vm407_vm7 = vcmask (!%p338_p2), 451904   ;;  %vm409_vm8 = vcmask (!%p338_p2), 484800   ;;  %vm414_vm9 = vcmask (!%p338_p2), 615904   ;;  %vm416_vm10 = vcmask (!%p338_p2), 648800  }
   0xc   : > { %s6061_s16 = smov (!%p338_p2), 56   ;;  %s6063_s20 = smov (!%p338_p2), 60   ;;  %vm421_vm11 = vcmask (!%p338_p2), 779904   ;;  %vm423_vm12 = vcmask (!%p338_p2), 812800   ;;  %vm438_vm13 = vcmask (!%p338_p2), 1042368   ;;  %vm439_vm14 = vcmask (!%p338_p2), 60418  }
   0xd   : > { %s7025_s18 = smov (!%p377_p3, %s5512_s18), 1  ;;  %vm435_vm15 = vcmask 195584   ;;  %vm440_vm2 = vmor %vm439_vm14, %vm438_vm13  ;;  %vm442_vm3 = vcmask 91200   ;;  %vm469_vm13 = vcmask 583200   ;;  %vm477_vm14 = vcmask 714304   ;;  %s6072_s21 = smov 109  }
   0xe   : > { %s5690_s19 = sshll.u32 %s7025_s18, 2  ;;  %v6066_v35 = vmov 1983009808   ;;  %v6200_v39 = vshrl.u32 %v550_v37, 7  ;;  %v6033_v48 = vld [vmem:[%s7015_s3] sm:$0x1f]  }
   0xf   : > { %s381_s22 = scalar_lea.vmem %s7012_s0, %s5690_s19  ;;  %s6062_s19 = smov 48   ;;  %v548_v36 = vunpack.c.l.s4 %v6066_v35  ;;  %v670_v51 = vld [vmem:[%s7014_s2] sm:$0x7]  ;;  %v6067_v55 = vmov 1966171168  }
  0x10   : > { %v388_v1 = vld [vmem:[%s381_s22] sm:$0xf]  ;;  %v682_v49 = vsub.s32 2, %v6200_v39  ;;  %v678_v52 = vsub.s32 1, %v6200_v39  ;;  %v6227_v53 = vsub.s32 0, %v6200_v39  ;;  %v734_v56 = vunpack.c.l.s4 %v6067_v55  ;;  %s6073_s22 = smov 108  }
  0x11   : > { %397 = vrot.lane.b32.xlu0 %v388_v1, %s6049_s23  ;;  %411 = vrot.lane.b32.xlu1 %v388_v1, %s6050_s24  ;;  %393 = vst.msk [vmem:[#allocation2 + $0x2] sm:$0x3] %vm392_vm0, %v388_v1  ;;  %vm428_vm0 = vcmask 943904   ;;  %v549_v38 = vunpack.c.0.s8 %v548_v36  ;;  %s6074_s23 = smov 107   ;;  %s6075_s24 = smov 41  }
  0x12   : > { %395 = vst.msk [vmem:[#allocation2 + $0x2] sm:$0x3] %vm394_vm1, %v6048_v0  ;;  %vm430_vm1 = vcmask 976800   ;;  %v675_v60 = vrot.slane %v670_v51, %v6227_v53  ;;  %v683_v62 = vrot.slane %v670_v51, %v682_v49 }
  0x13   : > { %v6203_v40 = vsub.s32 %v549_v38, %v6200_v39 }
  0x15   : > { %404 = vrot.lane.b32.xlu0 %v388_v1, %s6051_s25  ;;  %418 = vrot.lane.b32.xlu1 %v388_v1, %s6052_s26  ;;  %s6076_s25 = smov 42   ;;  %s6077_s26 = smov 39  }
  0x19   : > { %432 = vrot.lane.b32.xlu0 %v388_v1, %s6053_s27  ;;  %425 = vrot.lane.b32.xlu1 %v388_v1, %s6054_s28  ;;  %s5979_s27 = smul.u32 72, %s7025_s18  ;;  %s6079_s18 = smov 22  }
  0x1d   : > { %451 = vrot.lane.b32.xlu0 %v388_v1, %s6055_s29  ;;  %444 = vrot.lane.b32.xlu1 %v388_v1, %s6056_s30  ;;  %s6082_s29 = smov 2  }
  0x21   : > { %461 = vrot.lane.b32.xlu0 %v388_v1, %s6057_s12  ;;  %471 = vrot.lane.b32.xlu1 %v388_v1, %s6058_s13 }
  0x25   : > { %501 = vrot.lane.b32.xlu0 %v388_v1, %s6059_s14  ;;  %481 = vrot.lane.b32.xlu1 %v388_v1, %s6060_s15  ;;  %s6233_s14 = scalar_lea.vmem %s7023_s11, %s5979_s27  ;;  %s6068_s15 = smov 21  }
  0x26   : > { %s6078_s27 = smov 38  }
  0x29   : > { %509 = vrot.lane.b32.xlu0 %v388_v1, %s6061_s16  ;;  %491 = vrot.lane.b32.xlu1 %v388_v1, %s6062_s19  ;;  %s6069_s16 = smov 19   ;;  %s6070_s19 = smov 1  }
  0x2d   : > { %517 = vrot.lane.b32.xlu0 %v388_v1, %s6063_s20  ;;  %532 = vperm.xlu1 %6030, %v528_v3   ;;  %s6071_s20 = smov 127  }
  0x31   : > { %537 = vperm.xlu0 %6031, %v529_v4   ;;  %v679_v4 = vrot.slane %v670_v51, %v678_v52 }
  0x83   : > { %v398_v5 = vpop.permute.xlu0 %397  ;;  %v412_v6 = vpop.permute.xlu1 %411 }
  0x84   : > { %401 = vst.msk [vmem:[#allocation2 + $0x2] sm:$0x3] %vm400_vm5, %v398_v5  ;;  %vm454_vm5 = vcmask 261120  }
  0x85   : > { %403 = vst.msk [vmem:[#allocation2 + $0x2] sm:$0x3] %vm402_vm6, %v6048_v0  ;;  %vm447_vm6 = vcmask 222304  }
  0x87   : > { %v405_v7 = vpop.permute.xlu0 %404  ;;  %v419_v8 = vpop.permute.xlu1 %418 }
  0x88   : > { %408 = vst.msk [vmem:[#allocation2 + $0x2] sm:$0x3] %vm407_vm7, %v405_v7  ;;  %vm449_vm7 = vcmask 255200  }
  0x89   : > { %410 = vst.msk [vmem:[#allocation2 + $0x2] sm:$0x3] %vm409_vm8, %v6048_v0  ;;  %vm457_vm8 = vcmask 386304  }
  0x8a   : > { %415 = vst.msk [vmem:[#allocation2 + $0x2] sm:$0x3] %vm414_vm9, %v412_v6  ;;  %vm459_vm9 = vcmask 419200  }
  0x8b   : > { %417 = vst.msk [vmem:[#allocation2 + $0x2] sm:$0x3] %vm416_vm10, %v6048_v0  ;;  %v433_v9 = vpop.permute.xlu0 %432  ;;  %v426_v10 = vpop.permute.xlu1 %425  ;;  %vm464_vm10 = vcmask 293888  }
  0x8c   : > { %422 = vst.msk [vmem:[#allocation2 + $0x2] sm:$0x3] %vm421_vm11, %v419_v8  ;;  %v434_v11 = vrot.slane %v433_v9, 6  ;;  %vm474_vm11 = vcmask 326656  }
  0x8d   : > { %424 = vst.msk [vmem:[#allocation2 + $0x2] sm:$0x3] %vm423_vm12, %v6048_v0  ;;  %vm467_vm12 = vcmask 550304  }
  0x8e   : > { %v436_v12 = vsel %vm435_vm15, %v434_v11, %v433_v9  ;;  %429 = vst.msk [vmem:[#allocation2 + $0x2] sm:$0x3] %vm428_vm0, %v426_v10  ;;  %vm505_vm15 = vcmask 156704   ;;  %vm479_vm0 = vcmask 747200  }
  0x8f   : > { %431 = vst.msk [vmem:[#allocation2 + $0x2] sm:$0x3] %vm430_vm1, %v6048_v0  ;;  %v452_v13 = vpop.permute.xlu0 %451  ;;  %v445_v14 = vpop.permute.xlu1 %444  ;;  %vm484_vm1 = vcmask 359424  }
  0x90   : > { %v453_v15 = vrot.slane %v452_v13, 2  ;;  %441 = vst.msk [vmem:[#allocation2 + $0x2] sm:$0xf] %vm440_vm2, %v436_v12  ;;  %vm487_vm2 = vcmask 878304  }
  0x91   : > { %443 = vst.msk [vmem:[#allocation2 + $0x4] sm:$0x3] %vm442_vm3, %v6048_v0  ;;  %vm507_vm3 = vcmask 189600  }
  0x92   : > { %v455_v16 = vsel %vm454_vm5, %v452_v13, %v453_v15  ;;  %448 = vst.msk [vmem:[#allocation2 + $0x4] sm:$0x3] %vm447_vm6, %v445_v14  ;;  %vm489_vm5 = vcmask 911200   ;;  %vm513_vm6 = vcmask 320704   ;;  %v735_v13 = vunpack.c.0.s8 %v734_v56 }
  0x93   : > { %450 = vst.msk [vmem:[#allocation2 + $0x4] sm:$0x3] %vm449_vm7, %v6048_v0  ;;  %v462_v17 = vpop.permute.xlu0 %461  ;;  %v472_v18 = vpop.permute.xlu1 %471  ;;  %vm494_vm7 = vcmask 392192  }
  0x94   : > { %458 = vst.msk [vmem:[#allocation2 + $0x4] sm:$0x3] %vm457_vm8, %v455_v16  ;;  %v463_v19 = vrot.slane %v462_v17, 2  ;;  %v473_v20 = vrot.slane %v472_v18, 2  ;;  %vm497_vm8 = vcmask 1042304  }
  0x95   : > { %460 = vst.msk [vmem:[#allocation2 + $0x4] sm:$0x3] %vm459_vm9, %v6048_v0  ;;  %vm515_vm9 = vcmask 353600  }
  0x96   : > { %v465_v21 = vsel %vm464_vm10, %v462_v17, %v463_v19  ;;  %v475_v22 = vsel %vm474_vm11, %v472_v18, %v473_v20  ;;  %vm521_vm10 = vcmask 484704  }
  0x97   : > { %468 = vst.msk [vmem:[#allocation2 + $0x4] sm:$0x3] %vm467_vm12, %v465_v21  ;;  %v502_v23 = vpop.permute.xlu0 %501  ;;  %v482_v24 = vpop.permute.xlu1 %481  ;;  %vm523_vm12 = vcmask 517600  }
  0x98   : > { %470 = vst.msk [vmem:[#allocation2 + $0x4] sm:$0x3] %vm469_vm13, %v6048_v0  ;;  %v503_v25 = vrot.slane %v502_v23, 2  ;;  %v483_v26 = vrot.slane %v482_v24, 2  ;;  %vm566_vm13 = vcmask 1041408  }
  0x99   : > { %478 = vst.msk [vmem:[#allocation2 + $0x4] sm:$0x3] %vm477_vm14, %v475_v22  ;;  %vm562_vm14 = vcmask 31744  }
  0x9a   : > { %506 = vst.msk [vmem:[#allocation2 + $0x6] sm:$0x3] %vm505_vm15, %v503_v25  ;;  %v485_v27 = vsel %vm484_vm1, %v482_v24, %v483_v26  ;;  %vm727_vm15 = vcmask 991744   ;;  %vm721_vm1 = vcmask 1043458   ;;  %v6240_v25 = vsub.s32 %v735_v13, %v6200_v39 }
  0x9b   : > { %480 = vst.msk [vmem:[#allocation2 + $0x4] sm:$0x3] %vm479_vm0, %v6048_v0  ;;  %v510_v28 = vpop.permute.xlu0 %509  ;;  %v492_v29 = vpop.permute.xlu1 %491  ;;  %vm668_vm0 = vcmask 519168  }
  0x9c   : > { %488 = vst.msk [vmem:[#allocation2 + $0x4] sm:$0x3] %vm487_vm2, %v485_v27  ;;  %v511_v30 = vrot.slane %v510_v28, 2  ;;  %v493_v31 = vrot.slane %v492_v29, 2  ;;  %vm722_vm2 = vmor %vm721_vm1, %vm566_vm13  ;;  %vm1023_vm1 = vcmask 154624  }
  0x9d   : > { %508 = vst.msk [vmem:[#allocation2 + $0x6] sm:$0x3] %vm507_vm3, %v6048_v0  ;;  %vm723_vm3 = vcmask 521220  }
  0x9e   : > { %490 = vst.msk [vmem:[#allocation2 + $0x4] sm:$0x3] %vm489_vm5, %v6048_v0  ;;  %v495_v32 = vsel %vm494_vm7, %v492_v29, %v493_v31  ;;  %vm756_vm5 = vcmask 1040384   ;;  %vm724_vm7 = vmor %vm723_vm3, %vm722_vm2  ;;  %vm1152_vm2 = vcmask 7168   ;;  %vm1394_vm3 = vcmask 1039360  }
  0x9f   : > { %514 = vst.msk [vmem:[#allocation2 + $0x6] sm:$0x3] %vm513_vm6, %v511_v30  ;;  %v518_v33 = vpop.permute.xlu0 %517  ;;  %vm757_vm6 = vcmask 1041409  }
  0xa0   : > { %498 = vst.msk [vmem:[#allocation2 + $0x4] sm:$0x3] %vm497_vm8, %v495_v32  ;;  %v519_v34 = vrot.slane %v518_v33, 2  ;;  %vm758_vm8 = vmor %vm757_vm6, %vm756_vm5  ;;  %vm1519_vm6 = vcmask 891904  }
  0xa1   : > { %516 = vst.msk [vmem:[#allocation2 + $0x6] sm:$0x3] %vm515_vm9, %v6048_v0  ;;  %vm759_vm9 = vcmask 518146  }
  0xa2   : > { %522 = vst.msk [vmem:[#allocation2 + $0x6] sm:$0x3] %vm521_vm10, %v519_v34  ;;  %vm760_vm10 = vmor %vm759_vm9, %vm758_vm8  ;;  %vm1769_vm8 = vcmask 875520   ;;  %vm1933_vm9 = vcmask 334848  }
  0xa3   : > { %524 = vst.msk [vmem:[#allocation2 + $0x6] sm:$0x3] %vm523_vm12, %v6048_v0  ;;  %vm792_vm12 = vcmask 162816  }
  0xa4   : > { %728 = vst.msk [vmem:[#allocation4 + $0x3] sm:$0x1] %vm727_vm15, %v6048_v0  ;;  %vm897_vm15 = vcmask 171008  }
  0xaa   : > { %v525_v41 = vld [vmem:[#allocation2 + $0x2] sm:$0x3f] }
  0xab   : > { %v553_v42 = vrot.slane %v525_v41, %v6203_v40  ;;  %v546_v43 = vcombine.high %v525_v41, %v525_v41 }
  0xac   : > { %v533_v50 = vpop.permute.xlu1 %532 }
  0xad   : > { %v561_v44 = vcombine.high %v553_v42, %v553_v42  ;;  %v560_v45 = vrot.slane %v546_v43, %v6203_v40  ;;  %v568_v46 = vsel %vm566_vm13, %v553_v42, 0 }
  0xaf   : > { %5521 = vmatprep.subr.msk.bf16.mxu0 %vm566_vm13, %v561_v44  ;;  %v574_v47 = vsel %vm566_vm13, %v560_v45, 0 }
  0xb0   : > { %577 = vmatpush1.bf16.msra.mxu0 %v568_v46  ;;  %5764 = vmatpush3.bf16.msra.mxu1 %v574_v47  ;;  %v538_v54 = vpop.permute.xlu0 %537 }
  0xb1   : > { %5769 = vmatprep.subr.bf16.mxu1 %v6064_v2 }
  0xb3   : > { %5522 = vmatmul.mubr.msk.bf16.vlgmr.msra.gmra.mrb[0].mxu0 %vm562_vm14, %v6033_v48  ;;  %5766 = vmatmul.mubr.msk.bf16.vlgmr.msra.gmra.mrb[0].mxu1 %vm562_vm14, %v6033_v48 }
  0xb4   : > { %840 = vmatprep.mubr.bf16.mxu0 %v6048_v0  ;;  %5771 = vmatprep.mubr.msk.bf16.mxu1 %vm6065_vm4, %v6064_v2 }
 0x186   : > { %v610_v57 = vpop.f32.mrb[0].mxu0  ;;  %v653_v58 = vpop.f32.mrb[0].mxu1 }
 0x187   : > { %v611_v59 = vadd.f32 %v610_v57, %v533_v50  ;;  %v654_v61 = vadd.f32 %v653_v58, %v533_v50  ;;  %v612_v63 = vpop.f32.mrb[1].mxu0  ;;  %v5767_v1 = vpop.f32.mrb[1].mxu1 }
 0x188   : > { %v613_v3 = vadd.f32 %v612_v63, %v533_v50  ;;  %v614_v5 = vpop.f32.mrb[2].mxu0  ;;  %v656_v6 = vpop.f32.mrb[2].mxu1 }
 0x189   : > { %v660_v7 = vmax.f32 %v611_v59, 0.0  ;;  %v662_v8 = vmax.f32 %v654_v61, 0.0  ;;  %v615_v9 = vadd.f32 %v614_v5, %v538_v54  ;;  %v657_v10 = vadd.f32 %v656_v6, %v538_v54  ;;  %v616_v11 = vpop.f32.mrb[3].mxu0  ;;  %v5768_v12 = vpop.f32.mrb[3].mxu1 }
 0x18a   : > { %v661_v14 = vmax.f32 %v613_v3, 0.0  ;;  %v617_v15 = vadd.f32 %v616_v11, %v538_v54 }
 0x18b   : > { %666 = vst [vmem:[%s6233_s14] sm:$0xf] %v660_v7  ;;  %v687_v16 = vmul.f32 %v675_v60, %v660_v7  ;;  %669 = vst.msk [vmem:[%s6233_s14 + $0x10] sm:$0xf] %vm668_vm0, %v662_v8  ;;  %v689_v17 = vmul.f32 %v683_v62, %v662_v8  ;;  %v663_v18 = vmax.f32 %v615_v9, 0.0  ;;  %v665_v19 = vmax.f32 %v657_v10, 0.0 }
 0x18c   : > { %667 = vst [vmem:[%s6233_s14 + $0x8] sm:$0xf] %v661_v14  ;;  %v688_v20 = vmul.f32 %v679_v4, %v661_v14  ;;  %v664_v21 = vmax.f32 %v617_v15, 0.0 }
 0x18d   : > { %v692_v22 = vpack.c.bf16 %v689_v17, %v689_v17  ;;  %v693_v23 = vmul.f32 %v675_v60, %v663_v18  ;;  %v695_v24 = vmul.f32 %v683_v62, %v665_v19  ;;  %v5684_v9 = vld.sshfl [vmem:[%s7013_s1] sm:$0x33 pattern:$0x75316420] }
 0x18e   : > { %v5524_v26 = vpack.c.bf16 %v688_v20, %v687_v16  ;;  %v694_v27 = vmul.f32 %v679_v4, %v664_v21  ;;  %v5228_v10 = vcombine.high %v5684_v9, %v5684_v9  ;;  %v5235_v11 = vrot.slane %v5684_v9, %v6240_v25 }
 0x18f   : > { %v718_v28 = vrot.slane %v692_v22, %v6203_v40  ;;  %v698_v29 = vpack.c.bf16 %v695_v24, %v695_v24 }
 0x190   : > { %v711_v30 = vrot.slane %v5524_v26, %v6203_v40  ;;  %v5525_v31 = vpack.c.bf16 %v694_v27, %v693_v23  ;;  %v5242_v12 = vrot.slane %v5228_v10, %v6240_v25  ;;  %v5243_v13 = vcombine.high %v5235_v11, %v5235_v11 }
 0x191   : > { %v746_v32 = vrot.slane %v698_v29, %v6240_v25  ;;  %v5246_v15 = vpack.i.b16 %v5235_v11, %v5235_v11 }
 0x192   : > { %v719_v33 = vcombine.high %v711_v30, %v718_v28  ;;  %v739_v34 = vrot.slane %v5525_v31, %v6240_v25  ;;  %v5244_v14 = vcombine.high %v5242_v12, %v5242_v12  ;;  %v5253_v16 = vpack.i.b16 %v5242_v12, %v5242_v12 }
 0x193   : > { %v5260_v17 = vpack.i.b16 %v5243_v13, %v5243_v13  ;;  %v5251_v19 = vrot.slane %v5246_v15, %v6227_v53  ;;  %v5537_v15 = vld [vmem:[%s7017_s5 + $0xc] sm:$0xf] }
 0x194   : > { %725 = vst.msk [vmem:[#allocation3 + $0x2] sm:$0x3f] %vm724_vm7, %v719_v33  ;;  %v747_v35 = vcombine.low %v739_v34, %v746_v32  ;;  %v5267_v18 = vpack.i.b16 %v5244_v14, %v5244_v14  ;;  %v5258_v20 = vrot.slane %v5253_v16, %v6227_v53  ;;  %vm1644_vm7 = vcmask 883712  }
 0x195   : > { %v5265_v21 = vrot.slane %v5260_v17, %v6227_v53 }
 0x196   : > { %v754_v36 = vrot.slane %v747_v35, %v6240_v25  ;;  %v5272_v22 = vrot.slane %v5267_v18, %v6227_v53  ;;  %v5277_v23 = vcombine.low %v5251_v19, %v5258_v20  ;;  %v5526_v35 = vld [vmem:[%s7017_s5 + $0x4] sm:$0xf] }
 0x198   : > { %761 = vst.msk [vmem:[#allocation4 + $0x1] sm:$0x7] %vm760_vm10, %v754_v36  ;;  %v5278_v24 = vcombine.low %v5265_v21, %v5272_v22  ;;  %v5285_v28 = vrot.slane %v5277_v23, %v6203_v40  ;;  %v5218_v36 = vld [vmem:[#allocation2] sm:$0xff]  ;;  %vm2039_vm10 = vcmask 343040  }
 0x19a   : > { %v5292_v53 = vrot.slane %v5278_v24, %v6203_v40 }
 0x19b   : > { %v763_v37 = vld [vmem:[#allocation3] sm:$0xff] }
 0x19c   : > { %v774_v38 = vrot.slane %v763_v37, %v6203_v40  ;;  %v767_v39 = vcombine.high %v763_v37, %v763_v37  ;;  %v1370_v44 = vld [vmem:[#allocation3 + $0x2] sm:$0x3f]  ;;  %v5293_v34 = vcombine.low %v5285_v28, %v5292_v53 }
 0x19d   : > { %v1379_v45 = vrot.slane %v1370_v44, %v6203_v40  ;;  %v1372_v46 = vcombine.high %v1370_v44, %v1370_v44  ;;  %v1495_v47 = vld [vmem:[#allocation3 + $0x2] sm:$0x3f] }
 0x19e   : > { %784 = vrot.lane.b32.xlu1 %v774_v38, %s6054_s28  ;;  %v781_v41 = vrot.slane %v767_v39, %v6203_v40  ;;  %v782_v42 = vcombine.high %v774_v38, %v774_v38  ;;  %v1504_v49 = vrot.slane %v1495_v47, %v6203_v40  ;;  %v1620_v52 = vld [vmem:[#allocation3 + $0x2] sm:$0x3f]  ;;  %v1497_v54 = vcombine.high %v1495_v47, %v1495_v47 }
 0x19f   : > { %v1386_v48 = vrot.slane %v1372_v46, %v6203_v40  ;;  %v1387_v50 = vcombine.high %v1379_v45, %v1379_v45  ;;  %v1629_v55 = vrot.slane %v1620_v52, %v6203_v40  ;;  %v1622_v56 = vcombine.high %v1620_v52, %v1620_v52  ;;  %v1745_v57 = vld [vmem:[#allocation3 + $0x2] sm:$0x3f]  ;;  %v5562_v63 = vld.sshfl [vmem:[#allocation4] sm:$0x33 pattern:$0x75316420] }
 0x1a0   : > { %788 = vrot.lane.b32.xlu0 %v781_v41, %s6054_s28  ;;  %v783_v43 = vcombine.high %v781_v41, %v781_v41  ;;  %v1512_v51 = vcombine.high %v1504_v49, %v1504_v49  ;;  %v1511_v58 = vrot.slane %v1497_v54, %v6203_v40  ;;  %v1754_v60 = vrot.slane %v1745_v57, %v6203_v40 }
 0x1a1   : > { %v1636_v59 = vrot.slane %v1622_v56, %v6203_v40  ;;  %v1637_v61 = vcombine.high %v1629_v55, %v1629_v55  ;;  %v1747_v1 = vcombine.high %v1745_v57, %v1745_v57  ;;  %v6287_v3 = vrot.slane %v5562_v63, %v6240_v25 }
 0x1a2   : > { %786 = vrot.lane.b32.xlu1 %v782_v42, %s6054_s28  ;;  %v1762_v62 = vcombine.high %v1754_v60, %v1754_v60  ;;  %v1908_v5 = vcombine.high %v5562_v63, %v5562_v63 }
 0x1a3   : > { %v1761_v4 = vrot.slane %v1747_v1, %v6203_v40  ;;  %v6299_v7 = vcombine.high %v6287_v3, %v6287_v3 }
 0x1a4   : > { %889 = vrot.lane.b32.xlu0 %v774_v38, %s6068_s15  ;;  %v6294_v6 = vrot.slane %v1908_v5, %v6240_v25 }
 0x1a6   : > { %790 = vrot.lane.b32.xlu1 %v783_v43, %s6054_s28  ;;  %v6307_v8 = vcombine.high %v6294_v6, %v6294_v6 }
 0x1a8   : > { %893 = vrot.lane.b32.xlu0 %v781_v41, %s6068_s15 }
 0x1aa   : > { %891 = vrot.lane.b32.xlu1 %v782_v42, %s6068_s15 }
 0x1ac   : > { %1015 = vrot.lane.b32.xlu0 %v774_v38, %s6069_s16 }
 0x1ae   : > { %895 = vrot.lane.b32.xlu1 %v783_v43, %s6068_s15 }
 0x1b0   : > { %1019 = vrot.lane.b32.xlu0 %v781_v41, %s6069_s16 }
 0x1b2   : > { %1017 = vrot.lane.b32.xlu1 %v782_v42, %s6069_s16 }
 0x1b4   : > { %1144 = vrot.lane.b32.xlu0 %v774_v38, %s6070_s19 }
 0x1b6   : > { %1021 = vrot.lane.b32.xlu1 %v783_v43, %s6069_s16 }
 0x1b8   : > { %1148 = vrot.lane.b32.xlu0 %v781_v41, %s6070_s19 }
 0x1ba   : > { %1146 = vrot.lane.b32.xlu1 %v782_v42, %s6070_s19  ;;  %v6373_v42 = vadd.bf16 %v5293_v34, %v5218_v36 }
 0x1bc   : > { %1388 = vrot.lane.b32.xlu0 %v1379_v45, %s6071_s20 }
 0x1be   : > { %1150 = vrot.lane.b32.xlu1 %v783_v43, %s6070_s19 }
 0x1c0   : > { %1392 = vrot.lane.b32.xlu0 %v1386_v48, %s6071_s20  ;;  %v762_v48 = vld [vmem:[%s7017_s5] sm:$0xf] }
 0x1c2   : > { %1390 = vrot.lane.b32.xlu1 %v1387_v50, %s6071_s20 }
 0x1c4   : > { %1515 = vrot.lane.b32.xlu0 %v1512_v51, %s6072_s21 }
 0x1c6   : > { %1513 = vrot.lane.b32.xlu1 %v1504_v49, %s6072_s21 }
 0x1c8   : > { %1638 = vrot.lane.b32.xlu0 %v1629_v55, %s6073_s22 }
 0x1ca   : > { %1517 = vrot.lane.b32.xlu1 %v1511_v58, %s6072_s21 }
 0x1cc   : > { %1642 = vrot.lane.b32.xlu0 %v1636_v59, %s6073_s22  ;;  %v5533_v59 = vld [vmem:[%s7017_s5 + $0x8] sm:$0xf] }
 0x1ce   : > { %1640 = vrot.lane.b32.xlu1 %v1637_v61, %s6073_s22 }
 0x1d0   : > { %1765 = vrot.lane.b32.xlu0 %v1762_v62, %s6074_s23 }
 0x1d2   : > { %1763 = vrot.lane.b32.xlu1 %v1754_v60, %s6074_s23  ;;  %v1254_v60 = vld [vmem:[#allocation3 + $0x2] sm:$0x3f] }
 0x1d3   : > { %v1256_v14 = vcombine.high %v1254_v60, %v1254_v60 }
 0x1d4   : > { %1925 = vrot.lane.b32.xlu0 %v6287_v3, %s6075_s24 }
 0x1d5   : > { %v1270_v20 = vrot.slane %v1256_v14, %v6203_v40 }
 0x1d6   : > { %1767 = vrot.lane.b32.xlu1 %v1761_v4, %s6074_s23  ;;  %v1263_v4 = vrot.slane %v1254_v60, %v6203_v40 }
 0x1d8   : > { %2031 = vrot.lane.b32.xlu0 %v6287_v3, %s6076_s25  ;;  %v1271_v13 = vcombine.high %v1263_v4, %v1263_v4  ;;  %v1276_v21 = vsel %vm566_vm13, %v1263_v4, 0 }
 0x1da   : > { %1927 = vrot.lane.b32.xlu1 %v6294_v6, %s6075_s24 }
 0x1dc   : > { %1929 = vrot.lane.b32.xlu0 %v6299_v7, %s6075_s24 }
 0x1de   : > { %2033 = vrot.lane.b32.xlu1 %v6294_v6, %s6076_s25 }
 0x1e0   : > { %2164 = vrot.lane.b32.xlu0 %v6287_v3, %s6058_s13 }
 0x1e2   : > { %1931 = vrot.lane.b32.xlu1 %v6307_v8, %s6075_s24 }
 0x1e4   : > { %2035 = vrot.lane.b32.xlu0 %v6299_v7, %s6076_s25 }
 0x1e6   : > { %2166 = vrot.lane.b32.xlu1 %v6294_v6, %s6058_s13 }
 0x1e8   : > { %2168 = vrot.lane.b32.xlu0 %v6299_v7, %s6058_s13 }
 0x1ea   : > { %2037 = vrot.lane.b32.xlu1 %v6307_v8, %s6076_s25 }
 0x1ec   : > { %2299 = vrot.lane.b32.xlu0 %v6287_v3, %s6077_s26 }
 0x1ee   : > { %2301 = vrot.lane.b32.xlu1 %v6294_v6, %s6077_s26 }
 0x1f0   : > { %2303 = vrot.lane.b32.xlu0 %v6299_v7, %s6077_s26 }
 0x1f2   : > { %2170 = vrot.lane.b32.xlu1 %v6307_v8, %s6058_s13 }
 0x1f4   : > { %2435 = vrot.lane.b32.xlu0 %v6287_v3, %s6078_s27 }
 0x1f6   : > { %2437 = vrot.lane.b32.xlu1 %v6294_v6, %s6078_s27 }
 0x1f8   : > { %2439 = vrot.lane.b32.xlu0 %v6299_v7, %s6078_s27 }
 0x1fa   : > { %2305 = vrot.lane.b32.xlu1 %v6307_v8, %s6077_s26  ;;  %s6081_s26 = smov 18  }
 0x1fc   : > { %2571 = vrot.lane.b32.xlu0 %v6287_v3, %s6079_s18 }
 0x1fe   : > { %2573 = vrot.lane.b32.xlu1 %v6294_v6, %s6079_s18 }
 0x200   : > { %2575 = vrot.lane.b32.xlu0 %v6299_v7, %s6079_s18 }
 0x202   : > { %2441 = vrot.lane.b32.xlu1 %v6307_v8, %s6078_s27  ;;  %s6088_s27 = smov 87  }
 0x204   : > { %2707 = vrot.lane.b32.xlu0 %v6287_v3, %s6068_s15 }
 0x206   : > { %2709 = vrot.lane.b32.xlu1 %v6294_v6, %s6068_s15 }
 0x208   : > { %2711 = vrot.lane.b32.xlu0 %v6299_v7, %s6068_s15 }
 0x20a   : > { %2577 = vrot.lane.b32.xlu1 %v6307_v8, %s6079_s18 }
 0x20c   : > { %2842 = vrot.lane.b32.xlu0 %v6287_v3, %s6054_s28 }
 0x20e   : > { %2844 = vrot.lane.b32.xlu1 %v6294_v6, %s6054_s28 }
 0x210   : > { %v785_v26 = vpop.permute.xlu1 %784  ;;  %2846 = vrot.lane.b32.xlu0 %v6299_v7, %s6054_s28 }
 0x212   : > { %v789_v27 = vpop.permute.xlu0 %788  ;;  %2713 = vrot.lane.b32.xlu1 %v6307_v8, %s6068_s15 }
 0x214   : > { %v787_v29 = vpop.permute.xlu1 %786  ;;  %2977 = vrot.lane.b32.xlu0 %v6287_v3, %s6069_s16 }
 0x215   : > { %v793_v30 = vsel %vm792_vm12, %v785_v26, %v787_v29  ;;  %v794_v31 = vsel %vm792_vm12, %v787_v29, %v789_v27  ;;  %v1282_v26 = vsel %vm566_vm13, %v1270_v20, 0 }
 0x216   : > { %5527 = vmatprep.subr.msk.bf16.mxu0 %vm566_vm13, %v794_v31  ;;  %v890_v32 = vpop.permute.xlu0 %889  ;;  %2979 = vrot.lane.b32.xlu1 %v6294_v6, %s6069_s16  ;;  %v800_v33 = vsel %vm566_vm13, %v793_v30, 0 }
 0x217   : > { %809 = vmatpush1.bf16.msra.mxu0 %v800_v33 }
 0x218   : > { %v791_v37 = vpop.permute.xlu1 %790  ;;  %2981 = vrot.lane.b32.xlu0 %v6299_v7, %s6069_s16 }
 0x219   : > { %v795_v38 = vsel %vm792_vm12, %v789_v27, %v791_v37  ;;  %v5545_v37 = vld [vmem:[%s7017_s5 + $0x14] sm:$0xf] }
 0x21a   : > { %v806_v39 = vsel %vm566_vm13, %v795_v38, 0  ;;  %5528 = vmatmul.mubr.msk.bf16.vlgmr.msra.gmra.mrb[4].mxu0 %vm562_vm14, %v5526_v35  ;;  %v894_v41 = vpop.permute.xlu0 %893  ;;  %2848 = vrot.lane.b32.xlu1 %v6307_v8, %s6054_s28  ;;  %s6080_s28 = smov 126  }
 0x21b   : > { %5770 = vmatpush3.bf16.msra.mxu1 %v806_v39  ;;  %945 = vmatprep.mubr.bf16.mxu0 %v6048_v0 }
 0x21c   : > { %v892_v43 = vpop.permute.xlu1 %891  ;;  %5297 = vrot.lane.b32.xlu0 %v6373_v42, %s6071_s20  ;;  %5775 = vmatprep.subr.bf16.mxu1 %v6064_v2 }
 0x21d   : > { %v898_v44 = vsel %vm897_vm15, %v890_v32, %v892_v43  ;;  %v899_v45 = vsel %vm897_vm15, %v892_v43, %v894_v41 }
 0x21e   : > { %v1016_v46 = vpop.permute.xlu0 %1015  ;;  %5772 = vmatmul.mubr.msk.bf16.vlgmr.msra.gmra.mrb[4].mxu1 %vm562_vm14, %v5526_v35  ;;  %5530 = vmatprep.subr.msk.bf16.mxu0 %vm566_vm13, %v899_v45  ;;  %v905_v47 = vsel %vm566_vm13, %v898_v44, 0 }
 0x21f   : > { %5303 = vrot.lane.b32.xlu1 %v6373_v42, %s6080_s28  ;;  %914 = vmatpush1.bf16.msra.mxu0 %v905_v47  ;;  %v5549_v47 = vld [vmem:[%s7017_s5 + $0x18] sm:$0xf] }
 0x220   : > { %v896_v49 = vpop.permute.xlu1 %895  ;;  %3112 = vrot.lane.b32.xlu0 %v6287_v3, %s6081_s26  ;;  %5777 = vmatprep.mubr.msk.bf16.mxu1 %vm6065_vm4, %v6064_v2 }
 0x221   : > { %v900_v50 = vsel %vm897_vm15, %v894_v41, %v896_v49 }
 0x222   : > { %v911_v51 = vsel %vm566_vm13, %v900_v50, 0  ;;  %v1020_v52 = vpop.permute.xlu0 %1019  ;;  %5531 = vmatmul.mubr.msk.bf16.vlgmr.msra.gmra.mrb[8].mxu0 %vm562_vm14, %v762_v48 }
 0x223   : > { %2983 = vrot.lane.b32.xlu1 %v6307_v8, %s6069_s16  ;;  %5776 = vmatpush3.bf16.msra.mxu1 %v911_v51 }
 0x224   : > { %v1018_v54 = vpop.permute.xlu1 %1017  ;;  %3116 = vrot.lane.b32.xlu0 %v6299_v7, %s6081_s26  ;;  %1071 = vmatprep.mubr.bf16.mxu0 %v6048_v0 }
 0x225   : > { %v1024_v55 = vsel %vm1023_vm1, %v1016_v46, %v1018_v54  ;;  %v1025_v56 = vsel %vm1023_vm1, %v1018_v54, %v1020_v52  ;;  %5781 = vmatprep.subr.bf16.mxu1 %v6064_v2 }
 0x226   : > { %v1145_v57 = vpop.permute.xlu0 %1144  ;;  %5778 = vmatmul.mubr.msk.bf16.vlgmr.msra.gmra.mrb[8].mxu1 %vm562_vm14, %v762_v48  ;;  %5534 = vmatprep.subr.msk.bf16.mxu0 %vm566_vm13, %v1025_v56  ;;  %v1031_v58 = vsel %vm566_vm13, %v1024_v55, 0 }
 0x227   : > { %3114 = vrot.lane.b32.xlu1 %v6294_v6, %s6081_s26  ;;  %1040 = vmatpush1.bf16.msra.mxu0 %v1031_v58 }
 0x228   : > { %v1022_v61 = vpop.permute.xlu1 %1021  ;;  %3248 = vrot.lane.b32.xlu0 %v6287_v3, %s6082_s29  ;;  %5783 = vmatprep.mubr.msk.bf16.mxu1 %vm6065_vm4, %v6064_v2 }
 0x229   : > { %v1026_v62 = vsel %vm1023_vm1, %v1020_v52, %v1022_v61 }
 0x22a   : > { %v1037_v63 = vsel %vm566_vm13, %v1026_v62, 0  ;;  %v1149_v1 = vpop.permute.xlu0 %1148  ;;  %5535 = vmatmul.mubr.msk.bf16.vlgmr.msra.gmra.mrb[12].mxu0 %vm562_vm14, %v5533_v59 }
 0x22b   : > { %3118 = vrot.lane.b32.xlu1 %v6307_v8, %s6081_s26  ;;  %5782 = vmatpush3.bf16.msra.mxu1 %v1037_v63  ;;  %s6087_s26 = smov 89  }
 0x22c   : > { %v1147_v5 = vpop.permute.xlu1 %1146  ;;  %3252 = vrot.lane.b32.xlu0 %v6299_v7, %s6082_s29  ;;  %1200 = vmatprep.mubr.bf16.mxu0 %v6048_v0 }
 0x22d   : > { %v1153_v9 = vsel %vm1152_vm2, %v1145_v57, %v1147_v5  ;;  %v1154_v10 = vsel %vm1152_vm2, %v1147_v5, %v1149_v1  ;;  %5787 = vmatprep.subr.bf16.mxu1 %v6064_v2  ;;  %v5553_v57 = vld [vmem:[%s7017_s5 + $0x1c] sm:$0xf]  ;;  %v5557_v5 = vld [vmem:[%s7017_s5 + $0x20] sm:$0xf] }
 0x22e   : > { %v1389_v11 = vpop.permute.xlu0 %1388  ;;  %5784 = vmatmul.mubr.msk.bf16.vlgmr.msra.gmra.mrb[12].mxu1 %vm562_vm14, %v5533_v59  ;;  %5538 = vmatprep.subr.msk.bf16.mxu0 %vm566_vm13, %v1154_v10  ;;  %v1160_v12 = vsel %vm566_vm13, %v1153_v9, 0 }
 0x22f   : > { %3250 = vrot.lane.b32.xlu1 %v6294_v6, %s6082_s29  ;;  %1169 = vmatpush1.bf16.msra.mxu0 %v1160_v12 }
 0x230   : > { %5542 = vmatprep.subr.msk.bf16.mxu0 %vm566_vm13, %v1271_v13  ;;  %v1151_v16 = vpop.permute.xlu1 %1150  ;;  %3384 = vrot.lane.b32.xlu0 %v6287_v3, %s6070_s19  ;;  %v5625_v3 = vld.sshfl [vmem:[#allocation4 + $0x1] sm:$0x13 pattern:$0x75316420] }
 0x231   : > { %v1155_v17 = vsel %vm1152_vm2, %v1149_v1, %v1151_v16  ;;  %5789 = vmatprep.mubr.msk.bf16.mxu1 %vm6065_vm4, %v6064_v2  ;;  %v6457_v27 = vrot.slane %v5625_v3, %v6240_v25  ;;  %v3625_v29 = vcombine.high %v5625_v3, %v5625_v3 }
 0x232   : > { %v1166_v18 = vsel %vm566_vm13, %v1155_v17, 0  ;;  %v1393_v19 = vpop.permute.xlu0 %1392  ;;  %5539 = vmatmul.mubr.msk.bf16.vlgmr.msra.gmra.mrb[16].mxu0 %vm562_vm14, %v5537_v15 }
 0x233   : > { %3254 = vrot.lane.b32.xlu1 %v6307_v8, %s6082_s29  ;;  %5788 = vmatpush3.bf16.msra.mxu1 %v1166_v18  ;;  %v6474_v31 = vcombine.high %v6457_v27, %v6457_v27  ;;  %v6483_v34 = vrot.slane %v3625_v29, %v6240_v25  ;;  %v1407_v36 = vsel %vm566_vm13, %v1393_v19, 0  ;;  %v5561_v18 = vld [vmem:[%s7019_s7 + $0x2] sm:$0x3] }
 0x234   : > { %1285 = vmatpush1.bf16.msra.mxu0 %v1276_v21  ;;  %v1391_v22 = vpop.permute.xlu1 %1390  ;;  %3388 = vrot.lane.b32.xlu0 %v6299_v7, %s6070_s19  ;;  %v5541_v7 = vld [vmem:[%s7017_s5 + $0x10] sm:$0xf] }
 0x235   : > { %5793 = vmatprep.subr.bf16.mxu1 %v6064_v2  ;;  %v1396_v23 = vsel %vm1394_vm3, %v1391_v22, %v1393_v19  ;;  %1316 = vmatprep.mubr.bf16.mxu0 %v6048_v0  ;;  %v1395_v28 = vsel %vm1394_vm3, %v1389_v11, %v1391_v22 }
 0x236   : > { %v1516_v24 = vpop.permute.xlu0 %1515  ;;  %5790 = vmatmul.mubr.msk.bf16.vlgmr.msra.gmra.mrb[16].mxu1 %vm562_vm14, %v5537_v15  ;;  %5546 = vmatprep.subr.msk.bf16.mxu0 %vm566_vm13, %v1396_v23 }
 0x237   : > { %3386 = vrot.lane.b32.xlu1 %v6294_v6, %s6070_s19  ;;  %5794 = vmatpush3.bf16.msra.mxu1 %v1282_v26  ;;  %v1401_v6 = vsel %vm566_vm13, %v1395_v28, 0 }
 0x238   : > { %v1514_v53 = vpop.permute.xlu1 %1513  ;;  %3641 = vrot.lane.b32.xlu0 %v6457_v27, %s6071_s20  ;;  %5795 = vmatprep.mubr.msk.bf16.mxu1 %vm6065_vm4, %v6064_v2 }
 0x239   : > { %5799 = vmatprep.subr.bf16.mxu1 %v6064_v2 }
 0x23a   : > { %v1639_v30 = vpop.permute.xlu0 %1638  ;;  %5543 = vmatmul.mubr.msk.bf16.vlgmr.msra.gmra.mrb[20].mxu0 %vm562_vm14, %v5541_v7 }
 0x23b   : > { %1410 = vmatpush1.bf16.msra.mxu0 %v1401_v6  ;;  %3390 = vrot.lane.b32.xlu1 %v6307_v8, %s6070_s19  ;;  %v1520_v8 = vsel %vm1519_vm6, %v1514_v53, %v1516_v24 }
 0x23c   : > { %v1518_v32 = vpop.permute.xlu1 %1517  ;;  %3645 = vrot.lane.b32.xlu0 %v6474_v31, %s6071_s20  ;;  %1441 = vmatprep.mubr.bf16.mxu0 %v6048_v0  ;;  %v1526_v39 = vsel %vm566_vm13, %v1520_v8, 0 }
 0x23d   : > { %v1521_v33 = vsel %vm1519_vm6, %v1516_v24, %v1518_v32  ;;  %v1532_v44 = vsel %vm566_vm13, %v1518_v32, 0 }
 0x23e   : > { %v1643_v35 = vpop.permute.xlu0 %1642  ;;  %5796 = vmatmul.mubr.msk.bf16.vlgmr.msra.gmra.mrb[20].mxu1 %vm562_vm14, %v5541_v7  ;;  %5550 = vmatprep.subr.msk.bf16.mxu0 %vm566_vm13, %v1521_v33  ;;  %v1896_v7 = vld [vmem:[%s7019_s7] sm:$0x3] }
 0x23f   : > { %5800 = vmatpush3.bf16.msra.mxu1 %v1407_v36  ;;  %3643 = vrot.lane.b32.xlu1 %v6483_v34, %s6071_s20  ;;  %s6083_s20 = smov 110   ;;  %v1657_v54 = vsel %vm566_vm13, %v1643_v35, 0 }
 0x240   : > { %v1641_v25 = vpop.permute.xlu1 %1640  ;;  %3774 = vrot.lane.b32.xlu0 %v6483_v34, %s6080_s28  ;;  %5801 = vmatprep.mubr.msk.bf16.mxu1 %vm6065_vm4, %v6064_v2 }
 0x241   : > { %v1646_v38 = vsel %vm1644_vm7, %v1641_v25, %v1643_v35  ;;  %5805 = vmatprep.subr.bf16.mxu1 %v6064_v2  ;;  %v1645_v46 = vsel %vm1644_vm7, %v1639_v30, %v1641_v25 }
 0x242   : > { %v1766_v41 = vpop.permute.xlu0 %1765  ;;  %5547 = vmatmul.mubr.msk.bf16.vlgmr.msra.gmra.mrb[24].mxu0 %vm562_vm14, %v5545_v37  ;;  %v1651_v50 = vsel %vm566_vm13, %v1645_v46, 0 }
 0x243   : > { %1535 = vmatpush1.bf16.msra.mxu0 %v1526_v39  ;;  %3772 = vrot.lane.b32.xlu1 %v6457_v27, %s6080_s28 }
 0x244   : > { %5554 = vmatprep.subr.msk.bf16.mxu0 %vm566_vm13, %v1646_v38  ;;  %v1764_v43 = vpop.permute.xlu1 %1763  ;;  %3904 = vrot.lane.b32.xlu0 %v6457_v27, %s6083_s20 }
 0x245   : > { %1566 = vmatprep.mubr.bf16.mxu0 %v6048_v0  ;;  %v1770_v56 = vsel %vm1769_vm8, %v1764_v43, %v1766_v41 }
 0x246   : > { %5802 = vmatmul.mubr.msk.bf16.vlgmr.msra.gmra.mrb[24].mxu1 %vm562_vm14, %v5545_v37  ;;  %v1926_v45 = vpop.permute.xlu0 %1925  ;;  %v1776_v59 = vsel %vm566_vm13, %v1770_v56, 0  ;;  %v5569_v37 = vld [vmem:[%s7019_s7 + $0x4] sm:$0x3] }
 0x247   : > { %5806 = vmatpush3.bf16.msra.mxu1 %v1532_v44  ;;  %3776 = vrot.lane.b32.xlu1 %v6474_v31, %s6080_s28 }
 0x248   : > { %v1768_v48 = vpop.permute.xlu1 %1767  ;;  %3908 = vrot.lane.b32.xlu0 %v6474_v31, %s6083_s20  ;;  %5807 = vmatprep.mubr.msk.bf16.mxu1 %vm6065_vm4, %v6064_v2 }
 0x249   : > { %v1771_v49 = vsel %vm1769_vm8, %v1766_v41, %v1768_v48  ;;  %5811 = vmatprep.subr.bf16.mxu1 %v6064_v2  ;;  %v1782_v63 = vsel %vm566_vm13, %v1768_v48, 0  ;;  %v5574_v48 = vld [vmem:[%s7019_s7 + $0x6] sm:$0x3] }
 0x24a   : > { %5551 = vmatmul.mubr.msk.bf16.vlgmr.msra.gmra.mrb[28].mxu0 %vm562_vm14, %v5549_v47  ;;  %v2032_v51 = vpop.permute.xlu0 %2031 }
 0x24b   : > { %1660 = vmatpush1.bf16.msra.mxu0 %v1651_v50  ;;  %3906 = vrot.lane.b32.xlu1 %v6483_v34, %s6083_s20 }
 0x24c   : > { %5558 = vmatprep.subr.msk.bf16.mxu0 %vm566_vm13, %v1771_v49  ;;  %4038 = vrot.lane.b32.xlu0 %v6483_v34, %s6072_s21  ;;  %v1928_v52 = vpop.permute.xlu1 %1927 }
 0x24d   : > { %1691 = vmatprep.mubr.bf16.mxu0 %v6048_v0  ;;  %v1934_v4 = vsel %vm1933_vm9, %v1926_v45, %v1928_v52 }
 0x24e   : > { %5808 = vmatmul.mubr.msk.bf16.vlgmr.msra.gmra.mrb[28].mxu1 %vm562_vm14, %v5549_v47  ;;  %v1930_v55 = vpop.permute.xlu0 %1929  ;;  %v1942_v10 = vsel %vm756_vm5, %v1934_v4, 0 }
 0x24f   : > { %5812 = vmatpush3.bf16.msra.mxu1 %v1657_v54  ;;  %4036 = vrot.lane.b32.xlu1 %v6457_v27, %s6072_s21  ;;  %v1935_v61 = vsel %vm1933_vm9, %v1928_v52, %v1930_v55 }
 0x250   : > { %v2034_v58 = vpop.permute.xlu1 %2033  ;;  %5813 = vmatprep.mubr.msk.bf16.mxu1 %vm6065_vm4, %v6064_v2  ;;  %5817 = vmatprep.subr.bf16.mxu1 %v6064_v2 }
 0x251   : > { %v2040_v17 = vsel %vm2039_vm10, %v2032_v51, %v2034_v58 }
 0x252   : > { %5555 = vmatmul.mubr.msk.bf16.vlgmr.msra.gmra.mrb[32].mxu0 %vm562_vm14, %v5553_v57  ;;  %v2165_v60 = vpop.permute.xlu0 %2164  ;;  %v2047_v20 = vsel %vm756_vm5, %v2040_v17, 0 }
 0x253   : > { %1785 = vmatpush1.bf16.msra.mxu0 %v1776_v59  ;;  %4040 = vrot.lane.b32.xlu1 %v6474_v31, %s6072_s21  ;;  %v5579_v59 = vld [vmem:[%s7019_s7 + $0x8] sm:$0x3]  ;;  %s6084_s21 = smov 88  }
 0x254   : > { %5563 = vmatprep.subr.msk.bf16.mxu0 %vm756_vm5, %v1935_v61  ;;  %v1932_v62 = vpop.permute.xlu1 %1931  ;;  %1816 = vmatprep.mubr.bf16.mxu0 %v6048_v0 }
 0x255   : > { %v1936_v12 = vsel %vm1933_vm9, %v1930_v55, %v1932_v62  ;;  %vm1937_vm9 = vcmask 15360  }
 0x256   : > { %5814 = vmatmul.mubr.msk.bf16.vlgmr.msra.gmra.mrb[32].mxu1 %vm562_vm14, %v5553_v57  ;;  %v2036_v1 = vpop.permute.xlu0 %2035  ;;  %v1948_v15 = vsel %vm756_vm5, %v1936_v12, 0 }
 0x257   : > { %5818 = vmatpush3.bf16.msra.mxu1 %v1782_v63  ;;  %5819 = vmatprep.mubr.msk.bf16.mxu1 %vm6065_vm4, %v6064_v2  ;;  %v2041_v13 = vsel %vm2039_vm10, %v2034_v58, %v2036_v1 }
 0x258   : > { %v2167_v9 = vpop.permute.xlu1 %2166  ;;  %5823 = vmatprep.subr.bf16.mxu1 %v6064_v2 }
 0x259   : > { %v2172_v28 = vsel %vm474_vm11, %v2165_v60, %v2167_v9 }
 0x25a   : > { %5559 = vmatmul.mubr.msk.bf16.vlgmr.msra.gmra.mrb[36].mxu0 %vm562_vm14, %v5557_v5  ;;  %v2169_v11 = vpop.permute.xlu0 %2168  ;;  %v2179_v29 = vsel %vm756_vm5, %v2172_v28, 0 }
 0x25b   : > { %1951 = vmatpush1.bf16.msra.mxu0 %v1942_v10  ;;  %1982 = vmatprep.mubr.bf16.mxu0 %v6048_v0  ;;  %v2173_v3 = vsel %vm474_vm11, %v2167_v9, %v2169_v11 }
 0x25c   : > { %5566 = vmatprep.subr.msk.bf16.mxu0 %vm756_vm5, %v2041_v13  ;;  %v2038_v14 = vpop.permute.xlu1 %2037 }
 0x25d   : > { %v2042_v22 = vsel %vm2039_vm10, %v2036_v1, %v2038_v14  ;;  %vm2307_vm10 = vcmask 318464  }
 0x25e   : > { %5820 = vmatmul.mubr.msk.bf16.vlgmr.msra.gmra.mrb[36].mxu1 %vm562_vm14, %v5557_v5  ;;  %v2300_v16 = vpop.permute.xlu0 %2299  ;;  %v2053_v24 = vsel %vm756_vm5, %v2042_v22, 0 }
 0x25f   : > { %5824 = vmatpush3.bf16.msra.mxu1 %v1948_v15  ;;  %5825 = vmatprep.mubr.msk.bf16.mxu1 %vm6065_vm4, %v6064_v2 }
 0x260   : > { %v2302_v19 = vpop.permute.xlu1 %2301  ;;  %5829 = vmatprep.subr.bf16.mxu1 %v6064_v2 }
 0x261   : > { %v2308_v8 = vsel %vm2307_vm10, %v2300_v16, %v2302_v19 }
 0x262   : > { %v2304_v21 = vpop.permute.xlu0 %2303  ;;  %5564 = vmatmul.mubr.msk.bf16.vlgmr.msra.gmra.mrb[40].mxu0 %vm1937_vm9, %v5561_v18  ;;  %v2315_v38 = vsel %vm756_vm5, %v2308_v8, 0 }
 0x263   : > { %2056 = vmatpush1.bf16.msra.mxu0 %v2047_v20  ;;  %2087 = vmatprep.mubr.bf16.mxu0 %v6048_v0  ;;  %v2309_v6 = vsel %vm2307_vm10, %v2302_v19, %v2304_v21 }
 0x264   : > { %5571 = vmatprep.subr.msk.bf16.mxu0 %vm756_vm5, %v2173_v3  ;;  %v2171_v23 = vpop.permute.xlu1 %2170  ;;  %v5589_v3 = vld [vmem:[%s7019_s7 + $0xc] sm:$0x3] }
 0x265   : > { %v2174_v32 = vsel %vm474_vm11, %v2169_v11, %v2171_v23  ;;  %vm2443_vm11 = vcmask 310272   ;;  %v5584_v11 = vld [vmem:[%s7019_s7 + $0xa] sm:$0x3] }
 0x266   : > { %v2436_v26 = vpop.permute.xlu0 %2435  ;;  %5826 = vmatmul.mubr.msk.bf16.vlgmr.msra.gmra.mrb[40].mxu1 %vm1937_vm9, %v5561_v18  ;;  %v2185_v35 = vsel %vm756_vm5, %v2174_v32, 0 }
 0x267   : > { %5830 = vmatpush3.bf16.msra.mxu1 %v2053_v24  ;;  %5831 = vmatprep.mubr.msk.bf16.mxu1 %vm6065_vm4, %v6064_v2 }
 0x268   : > { %v2438_v53 = vpop.permute.xlu1 %2437  ;;  %5835 = vmatprep.subr.bf16.mxu1 %v6064_v2 }
 0x269   : > { %v2444_v47 = vsel %vm2443_vm11, %v2436_v26, %v2438_v53 }
 0x26a   : > { %v2440_v30 = vpop.permute.xlu0 %2439  ;;  %5567 = vmatmul.mubr.msk.bf16.vlgmr.msra.gmra.mrb[44].mxu0 %vm1937_vm9, %v1896_v7  ;;  %v2451_v50 = vsel %vm756_vm5, %v2444_v47, 0 }
 0x26b   : > { %2188 = vmatpush1.bf16.msra.mxu0 %v2179_v29  ;;  %2219 = vmatprep.mubr.bf16.mxu0 %v6048_v0  ;;  %v2445_v41 = vsel %vm2443_vm11, %v2438_v53, %v2440_v30 }
 0x26c   : > { %5576 = vmatprep.subr.msk.bf16.mxu0 %vm756_vm5, %v2309_v6  ;;  %v2306_v33 = vpop.permute.xlu1 %2305 }
 0x26d   : > { %v2310_v43 = vsel %vm2307_vm10, %v2304_v21, %v2306_v33  ;;  %vm2579_vm10 = vcmask 179200  }
 0x26e   : > { %v2572_v36 = vpop.permute.xlu0 %2571  ;;  %5832 = vmatmul.mubr.msk.bf16.vlgmr.msra.gmra.mrb[44].mxu1 %vm1937_vm9, %v1896_v7  ;;  %v2321_v45 = vsel %vm756_vm5, %v2310_v43, 0 }
 0x26f   : > { %5836 = vmatpush3.bf16.msra.mxu1 %v2185_v35  ;;  %5837 = vmatprep.mubr.msk.bf16.mxu1 %vm6065_vm4, %v6064_v2 }
 0x270   : > { %v2574_v25 = vpop.permute.xlu1 %2573  ;;  %5841 = vmatprep.subr.bf16.mxu1 %v6064_v2 }
 0x271   : > { %v2580_v58 = vsel %vm2579_vm10, %v2572_v36, %v2574_v25  ;;  %v5594_v36 = vld [vmem:[%s7019_s7 + $0xe] sm:$0x3] }
 0x272   : > { %v2576_v39 = vpop.permute.xlu0 %2575  ;;  %5572 = vmatmul.mubr.msk.bf16.vlgmr.msra.gmra.mrb[48].mxu0 %vm1937_vm9, %v5569_v37  ;;  %v2587_v61 = vsel %vm756_vm5, %v2580_v58, 0 }
 0x273   : > { %2324 = vmatpush1.bf16.msra.mxu0 %v2315_v38  ;;  %2355 = vmatprep.mubr.bf16.mxu0 %v6048_v0  ;;  %v2581_v52 = vsel %vm2579_vm10, %v2574_v25, %v2576_v39 }
 0x274   : > { %5581 = vmatprep.subr.msk.bf16.mxu0 %vm756_vm5, %v2445_v41  ;;  %v2442_v44 = vpop.permute.xlu1 %2441 }
 0x275   : > { %v2446_v54 = vsel %vm2443_vm11, %v2440_v30, %v2442_v44  ;;  %vm3778_vm11 = vcmask 1031168  }
 0x276   : > { %v2708_v46 = vpop.permute.xlu0 %2707  ;;  %5838 = vmatmul.mubr.msk.bf16.vlgmr.msra.gmra.mrb[48].mxu1 %vm1937_vm9, %v5569_v37  ;;  %v2457_v56 = vsel %vm756_vm5, %v2446_v54, 0 }
 0x277   : > { %5842 = vmatpush3.bf16.msra.mxu1 %v2321_v45  ;;  %5843 = vmatprep.mubr.msk.bf16.mxu1 %vm6065_vm4, %v6064_v2 }
 0x278   : > { %v2710_v49 = vpop.permute.xlu1 %2709  ;;  %5847 = vmatprep.subr.bf16.mxu1 %v6064_v2 }
 0x279   : > { %v2715_v10 = vsel %vm897_vm15, %v2708_v46, %v2710_v49  ;;  %v5599_v46 = vld [vmem:[%s7019_s7 + $0x10] sm:$0x3] }
 0x27a   : > { %v2712_v51 = vpop.permute.xlu0 %2711  ;;  %5577 = vmatmul.mubr.msk.bf16.vlgmr.msra.gmra.mrb[52].mxu0 %vm1937_vm9, %v5574_v48  ;;  %v2722_v13 = vsel %vm756_vm5, %v2715_v10, 0 }
 0x27b   : > { %2460 = vmatpush1.bf16.msra.mxu0 %v2451_v50  ;;  %2491 = vmatprep.mubr.bf16.mxu0 %v6048_v0  ;;  %v2716_v63 = vsel %vm897_vm15, %v2710_v49, %v2712_v51 }
 0x27c   : > { %5586 = vmatprep.subr.msk.bf16.mxu0 %vm756_vm5, %v2581_v52  ;;  %v2578_v55 = vpop.permute.xlu1 %2577 }
 0x27d   : > { %v2582_v1 = vsel %vm2579_vm10, %v2576_v39, %v2578_v55  ;;  %vm5095_vm10 = vcmask 703488  }
 0x27e   : > { %v2843_v57 = vpop.permute.xlu0 %2842  ;;  %5844 = vmatmul.mubr.msk.bf16.vlgmr.msra.gmra.mrb[52].mxu1 %vm1937_vm9, %v5574_v48  ;;  %v2593_v5 = vsel %vm756_vm5, %v2582_v1, 0 }
 0x27f   : > { %5848 = vmatpush3.bf16.msra.mxu1 %v2457_v56  ;;  %5849 = vmatprep.mubr.msk.bf16.mxu1 %vm6065_vm4, %v6064_v2  ;;  %v5604_v56 = vld [vmem:[%s7019_s7 + $0x12] sm:$0x3] }
 0x280   : > { %v2845_v60 = vpop.permute.xlu1 %2844  ;;  %5853 = vmatprep.subr.bf16.mxu1 %v6064_v2 }
 0x281   : > { %v2850_v20 = vsel %vm792_vm12, %v2843_v57, %v2845_v60 }
 0x282   : > { %v2847_v62 = vpop.permute.xlu0 %2846  ;;  %5582 = vmatmul.mubr.msk.bf16.vlgmr.msra.gmra.mrb[56].mxu0 %vm1937_vm9, %v5579_v59  ;;  %v2857_v24 = vsel %vm756_vm5, %v2850_v20, 0  ;;  %v3528_v20 = vsel %vm756_vm5, %v6474_v31, 0 }
 0x283   : > { %2596 = vmatpush1.bf16.msra.mxu0 %v2587_v61  ;;  %2627 = vmatprep.mubr.bf16.mxu0 %v6048_v0  ;;  %v2851_v15 = vsel %vm792_vm12, %v2845_v60, %v2847_v62 }
 0x284   : > { %5591 = vmatprep.subr.msk.bf16.mxu0 %vm756_vm5, %v2716_v63  ;;  %v2714_v4 = vpop.permute.xlu1 %2713 }
 0x285   : > { %v2717_v16 = vsel %vm897_vm15, %v2712_v51, %v2714_v4  ;;  %v5609_v4 = vld [vmem:[%s7019_s7 + $0x14] sm:$0x3] }
 0x286   : > { %v2978_v9 = vpop.permute.xlu0 %2977  ;;  %5850 = vmatmul.mubr.msk.bf16.vlgmr.msra.gmra.mrb[56].mxu1 %vm1937_vm9, %v5579_v59  ;;  %v2728_v18 = vsel %vm756_vm5, %v2717_v16, 0  ;;  %v3522_v16 = vsel %vm756_vm5, %v6457_v27, 0 }
 0x287   : > { %5854 = vmatpush3.bf16.msra.mxu1 %v2593_v5  ;;  %5855 = vmatprep.mubr.msk.bf16.mxu1 %vm6065_vm4, %v6064_v2 }
 0x288   : > { %v2980_v12 = vpop.permute.xlu1 %2979  ;;  %5859 = vmatprep.subr.bf16.mxu1 %v6064_v2 }
 0x289   : > { %v2985_v35 = vsel %vm1023_vm1, %v2978_v9, %v2980_v12 }
 0x28a   : > { %v2982_v14 = vpop.permute.xlu0 %2981  ;;  %5587 = vmatmul.mubr.msk.bf16.vlgmr.msra.gmra.mrb[60].mxu0 %vm1937_vm9, %v5584_v11  ;;  %v2992_v37 = vsel %vm756_vm5, %v2985_v35, 0 }
 0x28b   : > { %2731 = vmatpush1.bf16.msra.mxu0 %v2722_v13  ;;  %2762 = vmatprep.mubr.bf16.mxu0 %v6048_v0  ;;  %v2986_v53 = vsel %vm1023_vm1, %v2980_v12, %v2982_v14  ;;  %v5614_v13 = vld [vmem:[%s7019_s7 + $0x16] sm:$0x3] }
 0x28c   : > { %5596 = vmatprep.subr.msk.bf16.mxu0 %vm756_vm5, %v2851_v15  ;;  %v2849_v17 = vpop.permute.xlu1 %2848 }
 0x28d   : > { %v2852_v29 = vsel %vm792_vm12, %v2847_v62, %v2849_v17  ;;  %vm3120_vm12 = vcmask 146432  }
 0x28e   : > { %v5298_v19 = vpop.permute.xlu0 %5297  ;;  %5856 = vmatmul.mubr.msk.bf16.vlgmr.msra.gmra.mrb[60].mxu1 %vm1937_vm9, %v5584_v11 }
 0x28f   : > { %v5299_v21 = vrot.slane %v5298_v19, 2  ;;  %5860 = vmatpush3.bf16.msra.mxu1 %v2728_v18  ;;  %5861 = vmatprep.mubr.msk.bf16.mxu1 %vm6065_vm4, %v6064_v2 }
 0x290   : > { %5865 = vmatprep.subr.bf16.mxu1 %v6064_v2 }
 0x291   : > { %v5300_v22 = vsel %vm1394_vm3, %v5298_v19, %v5299_v21  ;;  %v5304_v23 = vpop.permute.xlu1 %5303 }
 0x292   : > { %v5302_v26 = vmax.bf16 %v5300_v22, %v6373_v42  ;;  %v5305_v28 = vrot.slane %v5304_v23, 2  ;;  %v3113_v7 = vpop.permute.xlu0 %3112  ;;  %5592 = vmatmul.mubr.msk.bf16.vlgmr.msra.gmra.mrb[64].mxu0 %vm1937_vm9, %v5589_v3  ;;  %v2863_v42 = vsel %vm756_vm5, %v2852_v29, 0 }
 0x293   : > { %2866 = vmatpush1.bf16.msra.mxu0 %v2857_v24  ;;  %2897 = vmatprep.mubr.bf16.mxu0 %v6048_v0 }
 0x294   : > { %v5306_v30 = vsel %vm3778_vm11, %v5304_v23, %v5305_v28  ;;  %5601 = vmatprep.subr.msk.bf16.mxu0 %vm756_vm5, %v2986_v53 }
 0x295   : > { %v6668_v6 = vmax.bf16 %v5306_v30, %v5302_v26  ;;  %v2984_v32 = vpop.permute.xlu1 %2983 }
 0x296   : > { %v3117_v33 = vpop.permute.xlu0 %3116  ;;  %5862 = vmatmul.mubr.msk.bf16.vlgmr.msra.gmra.mrb[64].mxu1 %vm1937_vm9, %v5589_v3  ;;  %v2987_v39 = vsel %vm1023_vm1, %v2982_v14, %v2984_v32  ;;  %v5619_v3 = vld [vmem:[%s7019_s7 + $0x18] sm:$0x3]  ;;  %vm3910_vm1 = vcmask 900096  }
 0x297   : > { %5866 = vmatpush3.bf16.msra.mxu1 %v2863_v42  ;;  %5316 = vrot.lane.b32.xlu1 %v6668_v6, %s6084_s21  ;;  %v2998_v43 = vsel %vm756_vm5, %v2987_v39, 0  ;;  %v5629_v42 = vld [vmem:[%s7019_s7 + $0x1c] sm:$0x3] }
 0x298   : > { %5310 = vrot.lane.b32.xlu0 %v6668_v6, %s6073_s22  ;;  %5867 = vmatprep.mubr.msk.bf16.mxu1 %vm6065_vm4, %v6064_v2 }
 0x299   : > { %v3115_v8 = vpop.permute.xlu1 %3114  ;;  %5871 = vmatprep.subr.bf16.mxu1 %v6064_v2 }
 0x29a   : > { %v3122_v25 = vsel %vm3120_vm12, %v3115_v8, %v3117_v33  ;;  %v3249_v38 = vpop.permute.xlu0 %3248  ;;  %5597 = vmatmul.mubr.msk.bf16.vlgmr.msra.gmra.mrb[68].mxu0 %vm1937_vm9, %v5594_v36  ;;  %v3121_v45 = vsel %vm3120_vm12, %v3113_v7, %v3115_v8 }
 0x29b   : > { %3001 = vmatpush1.bf16.msra.mxu0 %v2992_v37  ;;  %4169 = vrot.lane.b32.xlu1 %v6483_v34, %s6073_s22  ;;  %v3128_v48 = vsel %vm756_vm5, %v3121_v45, 0 }
 0x29c   : > { %4167 = vrot.lane.b32.xlu0 %v6457_v27, %s6073_s22  ;;  %5606 = vmatprep.subr.msk.bf16.mxu0 %vm756_vm5, %v3122_v25 }
 0x29d   : > { %v3119_v41 = vpop.permute.xlu1 %3118  ;;  %3032 = vmatprep.mubr.bf16.mxu0 %v6048_v0 }
 0x29e   : > { %v3253_v44 = vpop.permute.xlu0 %3252  ;;  %5868 = vmatmul.mubr.msk.bf16.vlgmr.msra.gmra.mrb[68].mxu1 %vm1937_vm9, %v5594_v36  ;;  %v3123_v50 = vsel %vm3120_vm12, %v3117_v33, %v3119_v41 }
 0x29f   : > { %4298 = vrot.lane.b32.xlu1 %v6457_v27, %s6074_s23  ;;  %5872 = vmatpush3.bf16.msra.mxu1 %v2998_v43  ;;  %v3134_v54 = vsel %vm756_vm5, %v3123_v50, 0  ;;  %v5639_v43 = vld [vmem:[%s7019_s7 + $0x20] sm:$0x3] }
 0x2a0   : > { %4171 = vrot.lane.b32.xlu0 %v6474_v31, %s6073_s22  ;;  %5873 = vmatprep.mubr.msk.bf16.mxu1 %vm6065_vm4, %v6064_v2  ;;  %s6085_s22 = smov 106  }
 0x2a1   : > { %v3251_v47 = vpop.permute.xlu1 %3250  ;;  %5877 = vmatprep.subr.bf16.mxu1 %v6064_v2 }
 0x2a2   : > { %v3258_v49 = vsel %vm1937_vm9, %v3251_v47, %v3253_v44  ;;  %5602 = vmatmul.mubr.msk.bf16.vlgmr.msra.gmra.mrb[72].mxu0 %vm1937_vm9, %v5599_v46  ;;  %v3385_v51 = vpop.permute.xlu0 %3384  ;;  %v3257_v55 = vsel %vm1937_vm9, %v3249_v38, %v3251_v47  ;;  %v5634_v38 = vld [vmem:[%s7019_s7 + $0x1e] sm:$0x3] }
 0x2a3   : > { %4302 = vrot.lane.b32.xlu1 %v6474_v31, %s6074_s23  ;;  %3137 = vmatpush1.bf16.msra.mxu0 %v3128_v48  ;;  %v3264_v59 = vsel %vm756_vm5, %v3257_v55, 0 }
 0x2a4   : > { %4300 = vrot.lane.b32.xlu0 %v6483_v34, %s6074_s23  ;;  %5611 = vmatprep.subr.msk.bf16.mxu0 %vm756_vm5, %v3258_v49  ;;  %s6086_s23 = smov 90  }
 0x2a5   : > { %v3255_v52 = vpop.permute.xlu1 %3254  ;;  %3168 = vmatprep.mubr.bf16.mxu0 %v6048_v0 }
 0x2a6   : > { %5874 = vmatmul.mubr.msk.bf16.vlgmr.msra.gmra.mrb[72].mxu1 %vm1937_vm9, %v5599_v46  ;;  %v3389_v57 = vpop.permute.xlu0 %3388  ;;  %v3259_v61 = vsel %vm1937_vm9, %v3253_v44, %v3255_v52 }
 0x2a7   : > { %4431 = vrot.lane.b32.xlu1 %v6483_v34, %s6085_s22  ;;  %5878 = vmatpush3.bf16.msra.mxu1 %v3134_v54  ;;  %v3270_v63 = vsel %vm756_vm5, %v3259_v61, 0 }
 0x2a8   : > { %4429 = vrot.lane.b32.xlu0 %v6457_v27, %s6085_s22  ;;  %5879 = vmatprep.mubr.msk.bf16.mxu1 %vm6065_vm4, %v6064_v2 }
 0x2a9   : > { %v3387_v58 = vpop.permute.xlu1 %3386  ;;  %5883 = vmatprep.subr.bf16.mxu1 %v6064_v2 }
 0x2aa   : > { %v3393_v60 = vsel %vm1152_vm2, %v3387_v58, %v3389_v57  ;;  %5607 = vmatmul.mubr.msk.bf16.vlgmr.msra.gmra.mrb[76].mxu0 %vm1937_vm9, %v5604_v56  ;;  %v3392_v1 = vsel %vm1152_vm2, %v3385_v51, %v3387_v58  ;;  %v3642_v9 = vpop.permute.xlu0 %3641 }
 0x2ab   : > { %4561 = vrot.lane.b32.xlu1 %v6457_v27, %s6086_s23  ;;  %3273 = vmatpush1.bf16.msra.mxu0 %v3264_v59  ;;  %v3399_v5 = vsel %vm756_vm5, %v3392_v1, 0 }
 0x2ac   : > { %4433 = vrot.lane.b32.xlu0 %v6474_v31, %s6085_s22  ;;  %5616 = vmatprep.subr.msk.bf16.mxu0 %vm756_vm5, %v3393_v60 }
 0x2ad   : > { %v3391_v62 = vpop.permute.xlu1 %3390  ;;  %3304 = vmatprep.mubr.bf16.mxu0 %v6048_v0 }
 0x2ae   : > { %5880 = vmatmul.mubr.msk.bf16.vlgmr.msra.gmra.mrb[76].mxu1 %vm1937_vm9, %v5604_v56  ;;  %v3394_v11 = vsel %vm1152_vm2, %v3389_v57, %v3391_v62  ;;  %v3646_v14 = vpop.permute.xlu0 %3645  ;;  %vm4831_vm2 = vcmask 719872  }
 0x2af   : > { %4565 = vrot.lane.b32.xlu1 %v6474_v31, %s6086_s23  ;;  %5884 = vmatpush3.bf16.msra.mxu1 %v3270_v63  ;;  %v3405_v12 = vsel %vm756_vm5, %v3394_v11, 0  ;;  %v3659_v28 = vsel %vm756_vm5, %v3646_v14, 0 }
 0x2b0   : > { %4563 = vrot.lane.b32.xlu0 %v6483_v34, %s6086_s23  ;;  %5885 = vmatprep.mubr.msk.bf16.mxu1 %vm6065_vm4, %v6064_v2 }
 0x2b1   : > { %5889 = vmatprep.subr.bf16.mxu1 %v6064_v2  ;;  %v3644_v10 = vpop.permute.xlu1 %3643 }
 0x2b2   : > { %5612 = vmatmul.mubr.msk.bf16.vlgmr.msra.gmra.mrb[80].mxu0 %vm1937_vm9, %v5609_v4  ;;  %v3648_v17 = vsel %vm1394_vm3, %v3644_v10, %v3646_v14  ;;  %v3775_v18 = vpop.permute.xlu0 %3774  ;;  %v3647_v21 = vsel %vm1394_vm3, %v3642_v9, %v3644_v10  ;;  %vm4435_vm3 = vcmask 867328  }
 0x2b3   : > { %4695 = vrot.lane.b32.xlu1 %v6483_v34, %s6087_s26  ;;  %3408 = vmatpush1.bf16.msra.mxu0 %v3399_v5  ;;  %v3653_v22 = vsel %vm756_vm5, %v3647_v21, 0 }
 0x2b4   : > { %4693 = vrot.lane.b32.xlu0 %v6457_v27, %s6087_s26  ;;  %5621 = vmatprep.subr.msk.bf16.mxu0 %vm756_vm5, %v6483_v34 }
 0x2b5   : > { %3439 = vmatprep.mubr.bf16.mxu0 %v6048_v0  ;;  %v3773_v15 = vpop.permute.xlu1 %3772 }
 0x2b6   : > { %5886 = vmatmul.mubr.msk.bf16.vlgmr.msra.gmra.mrb[80].mxu1 %vm1937_vm9, %v5609_v4  ;;  %v3905_v24 = vpop.permute.xlu0 %3904  ;;  %v3779_v7 = vsel %vm3778_vm11, %v3773_v15, %v3775_v18 }
 0x2b7   : > { %4825 = vrot.lane.b32.xlu1 %v6457_v27, %s6084_s21  ;;  %5890 = vmatpush3.bf16.msra.mxu1 %v3405_v12  ;;  %v3785_v53 = vsel %vm756_vm5, %v3779_v7, 0 }
 0x2b8   : > { %4697 = vrot.lane.b32.xlu0 %v6474_v31, %s6087_s26  ;;  %5891 = vmatprep.mubr.msk.bf16.mxu1 %vm6065_vm4, %v6064_v2 }
 0x2b9   : > { %5895 = vmatprep.subr.bf16.mxu1 %v6064_v2  ;;  %v3777_v19 = vpop.permute.xlu1 %3776 }
 0x2ba   : > { %5617 = vmatmul.mubr.msk.bf16.vlgmr.msra.gmra.mrb[84].mxu0 %vm1937_vm9, %v5614_v13  ;;  %v3780_v23 = vsel %vm3778_vm11, %v3775_v18, %v3777_v19  ;;  %v3909_v29 = vpop.permute.xlu0 %3908  ;;  %v3791_v32 = vsel %vm756_vm5, %v3777_v19, 0 }
 0x2bb   : > { %4829 = vrot.lane.b32.xlu1 %v6474_v31, %s6084_s21  ;;  %3531 = vmatpush1.bf16.msra.mxu0 %v3522_v16  ;;  %v3923_v37 = vsel %vm756_vm5, %v3909_v29, 0 }
 0x2bc   : > { %4827 = vrot.lane.b32.xlu0 %v6483_v34, %s6084_s21  ;;  %5626 = vmatprep.subr.msk.bf16.mxu0 %vm756_vm5, %v3648_v17  ;;  %s6089_s21 = smov 86  }
 0x2bd   : > { %3562 = vmatprep.mubr.bf16.mxu0 %v6048_v0  ;;  %v3907_v26 = vpop.permute.xlu1 %3906 }
 0x2be   : > { %5892 = vmatmul.mubr.msk.bf16.vlgmr.msra.gmra.mrb[84].mxu1 %vm1937_vm9, %v5614_v13  ;;  %v4039_v36 = vpop.permute.xlu0 %4038 }
 0x2bf   : > { %4959 = vrot.lane.b32.xlu1 %v6483_v34, %s6088_s27  ;;  %5896 = vmatpush3.bf16.msra.mxu1 %v3528_v20 }
 0x2c0   : > { %4957 = vrot.lane.b32.xlu0 %v6457_v27, %s6088_s27  ;;  %5897 = vmatprep.mubr.msk.bf16.mxu1 %vm6065_vm4, %v6064_v2 }
 0x2c1   : > { %5901 = vmatprep.subr.bf16.mxu1 %v6064_v2  ;;  %v4037_v30 = vpop.permute.xlu1 %4036 }
 0x2c2   : > { %5622 = vmatmul.mubr.msk.bf16.vlgmr.msra.gmra.mrb[88].mxu0 %vm1937_vm9, %v5619_v3  ;;  %v4042_v25 = vsel %vm1519_vm6, %v4037_v30, %v4039_v36 }
 0x2c3   : > { %5089 = vrot.lane.b32.xlu1 %v6457_v27, %s6089_s21  ;;  %3662 = vmatpush1.bf16.msra.mxu0 %v3653_v22  ;;  %v5624_v27 = vld [vmem:[%s7019_s7 + $0x1a] sm:$0x3]  ;;  %v4048_v39 = vsel %vm756_vm5, %v4042_v25, 0 }
 0x2c4   : > { %4961 = vrot.lane.b32.xlu0 %v6474_v31, %s6088_s27  ;;  %5631 = vmatprep.subr.msk.bf16.mxu0 %vm756_vm5, %v3780_v23 }
 0x2c5   : > { %3693 = vmatprep.mubr.bf16.mxu0 %v6048_v0  ;;  %v4041_v33 = vpop.permute.xlu1 %4040 }
 0x2c6   : > { %5898 = vmatmul.mubr.msk.bf16.vlgmr.msra.gmra.mrb[88].mxu1 %vm1937_vm9, %v5619_v3  ;;  %v4043_v8 = vsel %vm1519_vm6, %v4039_v36, %v4041_v33  ;;  %v4054_v41 = vsel %vm756_vm5, %v4041_v33, 0  ;;  %vm4567_vm6 = vcmask 736256  }
 0x2c7   : > { %5093 = vrot.lane.b32.xlu1 %v6474_v31, %s6089_s21  ;;  %5902 = vmatpush3.bf16.msra.mxu1 %v3659_v28  ;;  %v3912_v31 = vsel %vm3910_vm1, %v3907_v26, %v3909_v29 }
 0x2c8   : > { %5091 = vrot.lane.b32.xlu0 %v6483_v34, %s6089_s21  ;;  %5903 = vmatprep.mubr.msk.bf16.mxu1 %vm6065_vm4, %v6064_v2  ;;  %v3911_v34 = vsel %vm3910_vm1, %v3905_v24, %v3907_v26 }
 0x2c9   : > { %5907 = vmatprep.subr.bf16.mxu1 %v6064_v2  ;;  %v3917_v35 = vsel %vm756_vm5, %v3911_v34, 0 }
 0x2ca   : > { %5627 = vmatmul.mubr.msk.bf16.vlgmr.msra.gmra.mrb[92].mxu0 %vm1937_vm9, %v5624_v27 }
 0x2cb   : > { %3794 = vmatpush1.bf16.msra.mxu0 %v3785_v53  ;;  %3825 = vmatprep.mubr.bf16.mxu0 %v6048_v0 }
 0x2cc   : > { %5636 = vmatprep.subr.msk.bf16.mxu0 %vm756_vm5, %v3912_v31 }
 0x2ce   : > { %5904 = vmatmul.mubr.msk.bf16.vlgmr.msra.gmra.mrb[92].mxu1 %vm1937_vm9, %v5624_v27 }
 0x2cf   : > { %5908 = vmatpush3.bf16.msra.mxu1 %v3791_v32  ;;  %5909 = vmatprep.mubr.msk.bf16.mxu1 %vm6065_vm4, %v6064_v2 }
 0x2d0   : > { %5913 = vmatprep.subr.bf16.mxu1 %v6064_v2 }
 0x2d2   : > { %5632 = vmatmul.mubr.msk.bf16.vlgmr.msra.gmra.mrb[96].mxu0 %vm1937_vm9, %v5629_v42 }
 0x2d3   : > { %3926 = vmatpush1.bf16.msra.mxu0 %v3917_v35  ;;  %3957 = vmatprep.mubr.bf16.mxu0 %v6048_v0 }
 0x2d4   : > { %5641 = vmatprep.subr.msk.bf16.mxu0 %vm756_vm5, %v4043_v8 }
 0x2d6   : > { %5910 = vmatmul.mubr.msk.bf16.vlgmr.msra.gmra.mrb[96].mxu1 %vm1937_vm9, %v5629_v42 }
 0x2d7   : > { %5914 = vmatpush3.bf16.msra.mxu1 %v3923_v37  ;;  %5915 = vmatprep.mubr.msk.bf16.mxu1 %vm6065_vm4, %v6064_v2 }
 0x2d8   : > { %5919 = vmatprep.subr.bf16.mxu1 %v6064_v2 }
 0x2da   : > { %5637 = vmatmul.mubr.msk.bf16.vlgmr.msra.gmra.mrb[100].mxu0 %vm1937_vm9, %v5634_v38 }
 0x2db   : > { %4057 = vmatpush1.bf16.msra.mxu0 %v4048_v39  ;;  %4088 = vmatprep.mubr.bf16.mxu0 %v6048_v0 }
 0x2de   : > { %5916 = vmatmul.mubr.msk.bf16.vlgmr.msra.gmra.mrb[100].mxu1 %vm1937_vm9, %v5634_v38 }
 0x2df   : > { %5920 = vmatpush3.bf16.msra.mxu1 %v4054_v41  ;;  %5921 = vmatprep.mubr.msk.bf16.mxu1 %vm6065_vm4, %v6064_v2 }
 0x2e0   : > { %5925 = vmatprep.subr.bf16.mxu1 %v6064_v2 }
 0x2e2   : > { %5642 = vmatmul.mubr.msk.bf16.vlgmr.msra.gmra.mrb[104].mxu0 %vm1937_vm9, %v5639_v43 }
 0x2e3   : > { %4219 = vmatprep.mubr.bf16.mxu0 %v6048_v0 }
 0x2e6   : > { %5922 = vmatmul.mubr.msk.bf16.vlgmr.msra.gmra.mrb[104].mxu1 %vm1937_vm9, %v5639_v43 }
 0x2e7   : > { %5927 = vmatprep.mubr.msk.bf16.mxu1 %vm6065_vm4, %v6064_v2 }
 0x2ed   : > { %v842_v44 = vpop.f32.mrb[4].mxu0 }
 0x2ee   : > { %v844_v45 = vpop.f32.mrb[5].mxu0 }
 0x2ef   : > { %v846_v46 = vpop.f32.mrb[6].mxu0 }
 0x2f0   : > { %v847_v47 = vpop.f32.mrb[7].mxu0 }
 0x2f1   : > { %v883_v48 = vpop.f32.mrb[4].mxu1 }
 0x2f2   : > { %v5773_v49 = vpop.f32.mrb[5].mxu1 }
 0x2f3   : > { %v886_v50 = vpop.f32.mrb[6].mxu1 }
 0x2f4   : > { %v5774_v51 = vpop.f32.mrb[7].mxu1 }
 0x2f5   : > { %v947_v52 = vpop.f32.mrb[8].mxu0 }
 0x2f6   : > { %v948_v54 = vadd.f32 %v947_v52, %v842_v44  ;;  %v949_v55 = vpop.f32.mrb[9].mxu0 }
 0x2f7   : > { %v950_v56 = vadd.f32 %v949_v55, %v844_v45  ;;  %v951_v57 = vpop.f32.mrb[10].mxu0 }
 0x2f8   : > { %v952_v58 = vpop.f32.mrb[11].mxu0 }
 0x2f9   : > { %v988_v59 = vpop.f32.mrb[8].mxu1 }
 0x2fa   : > { %v989_v60 = vadd.f32 %v988_v59, %v883_v48  ;;  %v5779_v61 = vpop.f32.mrb[9].mxu1 }
 0x2fb   : > { %v991_v62 = vpop.f32.mrb[10].mxu1 }
 0x2fc   : > { %v5780_v63 = vpop.f32.mrb[11].mxu1 }
 0x2fd   : > { %v1073_v1 = vpop.f32.mrb[12].mxu0 }
 0x2fe   : > { %v1120_v4 = vadd.f32 %v1073_v1, %v948_v54  ;;  %v1075_v5 = vpop.f32.mrb[13].mxu0  ;;  %v5644_v54 = vld [vmem:[%s7019_s7 + $0x22] sm:$0x3] }
 0x2ff   : > { %v1121_v9 = vadd.f32 %v1075_v5, %v950_v56  ;;  %v1077_v10 = vpop.f32.mrb[14].mxu0 }
 0x300   : > { %v1078_v11 = vpop.f32.mrb[15].mxu0 }
 0x301   : > { %v1114_v12 = vpop.f32.mrb[12].mxu1 }
 0x302   : > { %v1122_v13 = vadd.f32 %v1114_v12, %v989_v60  ;;  %v5785_v14 = vpop.f32.mrb[13].mxu1  ;;  %v1868_v12 = vld [vmem:[%s7018_s6] sm:$0xff] }
 0x303   : > { %v1117_v15 = vpop.f32.mrb[14].mxu1 }
 0x304   : > { %v5786_v16 = vpop.f32.mrb[15].mxu1 }
 0x305   : > { %v1202_v17 = vpop.f32.mrb[16].mxu0 }
 0x306   : > { %v1249_v18 = vadd.f32 %v1202_v17, %v1120_v4  ;;  %v1204_v19 = vpop.f32.mrb[17].mxu0  ;;  %v5194_v17 = vld [vmem:[%s7020_s8] sm:$0xf] }
 0x307   : > { %v1250_v20 = vadd.f32 %v1204_v19, %v1121_v9  ;;  %v1206_v21 = vpop.f32.mrb[18].mxu0  ;;  %v5649_v19 = vld [vmem:[%s7019_s7 + $0x24] sm:$0x3] }
 0x308   : > { %v1207_v3 = vpop.f32.mrb[19].mxu0 }
 0x309   : > { %v5317_v22 = vpop.permute.xlu1 %5316  ;;  %v1243_v23 = vpop.f32.mrb[16].mxu1  ;;  %v5323_v3 = vld [vmem:[%s7022_s10] sm:$0xf] }
 0x30a   : > { %v5311_v24 = vpop.permute.xlu0 %5310  ;;  %v1251_v26 = vadd.f32 %v1243_v23, %v1122_v13  ;;  %v5791_v28 = vpop.f32.mrb[17].mxu1  ;;  %v5318_v27 = vrot.slane %v5317_v22, 2 }
 0x30b   : > { %v5312_v7 = vrot.slane %v5311_v24, 2  ;;  %v1246_v53 = vpop.f32.mrb[18].mxu1 }
 0x30c   : > { %v5792_v29 = vpop.f32.mrb[19].mxu1  ;;  %v5319_v36 = vsel %vm4831_vm2, %v5317_v22, %v5318_v27 }
 0x30d   : > { %v5313_v30 = vsel %vm1644_vm7, %v5311_v24, %v5312_v7  ;;  %v4170_v31 = vpop.permute.xlu1 %4169  ;;  %v1318_v32 = vpop.f32.mrb[20].mxu0 }
 0x30e   : > { %v5315_v34 = vmax.bf16 %v5313_v30, %v6668_v6  ;;  %v4168_v42 = vpop.permute.xlu0 %4167  ;;  %v1365_v33 = vadd.f32 %v1318_v32, %v1249_v18  ;;  %v1320_v35 = vpop.f32.mrb[21].mxu0 }
 0x30f   : > { %v1366_v8 = vadd.f32 %v1320_v35, %v1250_v20  ;;  %v1322_v37 = vpop.f32.mrb[22].mxu0  ;;  %v4173_v45 = vsel %vm1644_vm7, %v4168_v42, %v4170_v31 }
 0x310   : > { %v5321_v25 = vmax.bf16 %v5319_v36, %v5315_v34  ;;  %v1323_v38 = vpop.f32.mrb[23].mxu0  ;;  %v4179_v56 = vsel %vm756_vm5, %v4173_v45, 0  ;;  %v5654_v37 = vld [vmem:[%s7019_s7 + $0x26] sm:$0x3] }
 0x311   : > { %v4299_v39 = vpop.permute.xlu1 %4298  ;;  %v1359_v41 = vpop.f32.mrb[20].mxu1 }
 0x312   : > { %v5330_v43 = vcombine.high %v5321_v25, %v5321_v25  ;;  %v5337_v44 = vrot.slane %v5321_v25, %v6203_v40  ;;  %v4172_v46 = vpop.permute.xlu0 %4171  ;;  %v1367_v47 = vadd.f32 %v1359_v41, %v1251_v26  ;;  %v5797_v48 = vpop.f32.mrb[21].mxu1 }
 0x313   : > { %v4174_v6 = vsel %vm1644_vm7, %v4170_v31, %v4172_v46  ;;  %v4185_v49 = vsel %vm756_vm5, %v4172_v46, 0  ;;  %v1362_v50 = vpop.f32.mrb[22].mxu1  ;;  %vm4699_vm7 = vcmask 728064  }
 0x314   : > { %v5344_v51 = vrot.slane %v5330_v43, %v6203_v40  ;;  %v5345_v52 = vcombine.high %v5337_v44, %v5337_v44  ;;  %5926 = vmatpush3.bf16.msra.mxu1 %v4185_v49  ;;  %5347 = vrot.lane.b32.xlu0 %v5337_v44, %s6068_s15  ;;  %v5798_v55 = vpop.f32.mrb[23].mxu1 }
 0x315   : > { %5646 = vmatprep.subr.msk.bf16.mxu0 %vm756_vm5, %v4174_v6  ;;  %v4303_v57 = vpop.permute.xlu1 %4302  ;;  %5931 = vmatprep.subr.bf16.mxu1 %v6064_v2  ;;  %v1443_v58 = vpop.f32.mrb[24].mxu0 }
 0x316   : > { %4188 = vmatpush1.bf16.msra.mxu0 %v4179_v56  ;;  %v4301_v59 = vpop.permute.xlu0 %4300  ;;  %5349 = vrot.lane.b32.xlu1 %v5345_v52, %s6068_s15  ;;  %v4316_v40 = vsel %vm756_vm5, %v4303_v57, 0  ;;  %v1490_v60 = vadd.f32 %v1443_v58, %v1365_v33  ;;  %v1445_v61 = vpop.f32.mrb[25].mxu0  ;;  %v5346_v9 = vcombine.high %v5344_v51, %v5344_v51  ;;  %v5659_v58 = vld [vmem:[%s7019_s7 + $0x28] sm:$0x3] }
 0x317   : > { %v4304_v62 = vsel %vm1769_vm8, %v4299_v39, %v4301_v59  ;;  %v4305_v63 = vsel %vm1769_vm8, %v4301_v59, %v4303_v57  ;;  %5928 = vmatmul.mubr.msk.bf16.vlgmr.msra.gmra.mrb[108].mxu1 %vm1937_vm9, %v5644_v54  ;;  %v1491_v1 = vadd.f32 %v1445_v61, %v1366_v8  ;;  %v1447_v4 = vpop.f32.mrb[26].mxu0  ;;  %vm4963_vm8 = vcmask 711680  }
 0x318   : > { %v4310_v5 = vsel %vm756_vm5, %v4304_v62, 0  ;;  %5351 = vrot.lane.b32.xlu0 %v5344_v51, %s6068_s15  ;;  %5651 = vmatprep.subr.msk.bf16.mxu0 %vm756_vm5, %v4305_v63  ;;  %v1448_v10 = vpop.f32.mrb[27].mxu0 }
 0x319   : > { %5647 = vmatmul.mubr.msk.bf16.vlgmr.msra.gmra.mrb[108].mxu0 %vm1937_vm9, %v5644_v54  ;;  %5932 = vmatpush3.bf16.msra.mxu1 %v4316_v40  ;;  %v4432_v11 = vpop.permute.xlu1 %4431  ;;  %v1484_v13 = vpop.f32.mrb[24].mxu1 }
 0x31a   : > { %4319 = vmatpush1.bf16.msra.mxu0 %v4310_v5  ;;  %v4430_v14 = vpop.permute.xlu0 %4429  ;;  %5353 = vrot.lane.b32.xlu1 %v5346_v9, %s6068_s15  ;;  %v1492_v15 = vadd.f32 %v1484_v13, %v1367_v47  ;;  %v5803_v16 = vpop.f32.mrb[25].mxu1 }
 0x31b   : > { %5933 = vmatprep.mubr.msk.bf16.mxu1 %vm6065_vm4, %v6064_v2  ;;  %4350 = vmatprep.mubr.bf16.mxu0 %v6048_v0  ;;  %v1487_v18 = vpop.f32.mrb[26].mxu1  ;;  %v4436_v23 = vsel %vm4435_vm3, %v4430_v14, %v4432_v11 }
 0x31c   : > { %1871 = vperm.xlu0 %6031, %v1868_v12   ;;  %5937 = vmatprep.subr.bf16.mxu1 %v6064_v2  ;;  %v5804_v20 = vpop.f32.mrb[27].mxu1  ;;  %v4442_v31 = vsel %vm756_vm5, %v4436_v23, 0 }
 0x31d   : > { %v4562_v21 = vpop.permute.xlu1 %4561  ;;  %v1568_v22 = vpop.f32.mrb[28].mxu0 }
 0x31e   : > { %v4434_v24 = vpop.permute.xlu0 %4433  ;;  %5197 = vperm.xlu1 %6030, %v5194_v17   ;;  %v1615_v26 = vadd.f32 %v1568_v22, %v1490_v60  ;;  %v1570_v28 = vpop.f32.mrb[29].mxu0 }
 0x31f   : > { %v4437_v7 = vsel %vm4435_vm3, %v4432_v11, %v4434_v24  ;;  %v4448_v27 = vsel %vm756_vm5, %v4434_v24, 0  ;;  %5934 = vmatmul.mubr.msk.bf16.vlgmr.msra.gmra.mrb[112].mxu1 %vm1937_vm9, %v5649_v19  ;;  %v1616_v53 = vadd.f32 %v1570_v28, %v1491_v1  ;;  %v1572_v29 = vpop.f32.mrb[30].mxu0 }
 0x320   : > { %5326 = vperm.xlu0 %6031, %v5323_v3   ;;  %5656 = vmatprep.subr.msk.bf16.mxu0 %vm756_vm5, %v4437_v7  ;;  %v1573_v30 = vpop.f32.mrb[31].mxu0 }
 0x321   : > { %5652 = vmatmul.mubr.msk.bf16.vlgmr.msra.gmra.mrb[112].mxu0 %vm1937_vm9, %v5649_v19  ;;  %5938 = vmatpush3.bf16.msra.mxu1 %v4448_v27  ;;  %v4566_v32 = vpop.permute.xlu1 %4565  ;;  %v1609_v34 = vpop.f32.mrb[28].mxu1  ;;  %v5664_v19 = vld [vmem:[%s7019_s7 + $0x2a] sm:$0x3] }
 0x322   : > { %4451 = vmatpush1.bf16.msra.mxu0 %v4442_v31  ;;  %v4564_v42 = vpop.permute.xlu0 %4563  ;;  %5939 = vmatprep.mubr.msk.bf16.mxu1 %vm6065_vm4, %v6064_v2  ;;  %v1617_v33 = vadd.f32 %v1609_v34, %v1492_v15  ;;  %v5809_v35 = vpop.f32.mrb[29].mxu1  ;;  %v4580_v46 = vsel %vm756_vm5, %v4566_v32, 0 }
 0x323   : > { %v4569_v36 = vsel %vm4567_vm6, %v4564_v42, %v4566_v32  ;;  %5943 = vmatprep.subr.bf16.mxu1 %v6064_v2  ;;  %4482 = vmatprep.mubr.bf16.mxu0 %v6048_v0  ;;  %v1612_v8 = vpop.f32.mrb[30].mxu1  ;;  %v4568_v41 = vsel %vm4567_vm6, %v4562_v21, %v4564_v42  ;;  %v5669_v32 = vld [vmem:[%s7019_s7 + $0x2c] sm:$0x3] }
 0x324   : > { %5661 = vmatprep.subr.msk.bf16.mxu0 %vm756_vm5, %v4569_v36  ;;  %v5810_v25 = vpop.f32.mrb[31].mxu1  ;;  %v4574_v49 = vsel %vm756_vm5, %v4568_v41, 0 }
 0x325   : > { %v4696_v38 = vpop.permute.xlu1 %4695  ;;  %v1693_v39 = vpop.f32.mrb[32].mxu0 }
 0x326   : > { %v4694_v43 = vpop.permute.xlu0 %4693  ;;  %v1740_v44 = vadd.f32 %v1693_v39, %v1615_v26  ;;  %v1695_v45 = vpop.f32.mrb[33].mxu0 }
 0x327   : > { %5940 = vmatmul.mubr.msk.bf16.vlgmr.msra.gmra.mrb[116].mxu1 %vm1937_vm9, %v5654_v37  ;;  %v1741_v47 = vadd.f32 %v1695_v45, %v1616_v53  ;;  %v1697_v48 = vpop.f32.mrb[34].mxu0  ;;  %v4700_v61 = vsel %vm4699_vm7, %v4694_v43, %v4696_v38 }
 0x328   : > { %5944 = vmatpush3.bf16.msra.mxu1 %v4580_v46  ;;  %5945 = vmatprep.mubr.msk.bf16.mxu1 %vm6065_vm4, %v6064_v2  ;;  %v1698_v6 = vpop.f32.mrb[35].mxu0  ;;  %v4706_v12 = vsel %vm756_vm5, %v4700_v61, 0 }
 0x329   : > { %5657 = vmatmul.mubr.msk.bf16.vlgmr.msra.gmra.mrb[116].mxu0 %vm1937_vm9, %v5654_v37  ;;  %v4826_v50 = vpop.permute.xlu1 %4825  ;;  %5949 = vmatprep.subr.bf16.mxu1 %v6064_v2  ;;  %v1734_v51 = vpop.f32.mrb[32].mxu1  ;;  %v5674_v6 = vld [vmem:[%s7019_s7 + $0x2e] sm:$0x3] }
 0x32a   : > { %4583 = vmatpush1.bf16.msra.mxu0 %v4574_v49  ;;  %v4698_v52 = vpop.permute.xlu0 %4697  ;;  %4614 = vmatprep.mubr.bf16.mxu0 %v6048_v0  ;;  %v1742_v54 = vadd.f32 %v1734_v51, %v1617_v33  ;;  %v5815_v55 = vpop.f32.mrb[33].mxu1 }
 0x32b   : > { %v4701_v56 = vsel %vm4699_vm7, %v4696_v38, %v4698_v52  ;;  %v1737_v57 = vpop.f32.mrb[34].mxu1  ;;  %v4712_v4 = vsel %vm756_vm5, %v4698_v52, 0 }
 0x32c   : > { %5666 = vmatprep.subr.msk.bf16.mxu0 %vm756_vm5, %v4701_v56  ;;  %v5816_v59 = vpop.f32.mrb[35].mxu1 }
 0x32d   : > { %v4830_v40 = vpop.permute.xlu1 %4829  ;;  %v1818_v60 = vpop.f32.mrb[36].mxu0 }
 0x32e   : > { %v4828_v62 = vpop.permute.xlu0 %4827  ;;  %v6917_v63 = vadd.f32 %v1818_v60, %v1740_v44  ;;  %v1820_v1 = vpop.f32.mrb[37].mxu0  ;;  %v4844_v24 = vsel %vm756_vm5, %v4830_v40, 0 }
 0x32f   : > { %5946 = vmatmul.mubr.msk.bf16.vlgmr.msra.gmra.mrb[120].mxu1 %vm1937_vm9, %v5659_v58  ;;  %v6921_v5 = vadd.f32 %v1820_v1, %v1741_v47  ;;  %v1822_v9 = vpop.f32.mrb[38].mxu0  ;;  %v4833_v10 = vsel %vm4831_vm2, %v4828_v62, %v4830_v40  ;;  %v4832_v3 = vsel %vm4831_vm2, %v4826_v50, %v4828_v62  ;;  %v5679_v1 = vld [vmem:[%s7019_s7 + $0x30] sm:$0x3] }
 0x330   : > { %5950 = vmatpush3.bf16.msra.mxu1 %v4712_v4  ;;  %5951 = vmatprep.mubr.msk.bf16.mxu1 %vm6065_vm4, %v6064_v2  ;;  %v1823_v11 = vpop.f32.mrb[39].mxu0  ;;  %v4838_v53 = vsel %vm756_vm5, %v4832_v3, 0 }
 0x331   : > { %5662 = vmatmul.mubr.msk.bf16.vlgmr.msra.gmra.mrb[120].mxu0 %vm1937_vm9, %v5659_v58  ;;  %v4960_v13 = vpop.permute.xlu1 %4959  ;;  %5955 = vmatprep.subr.bf16.mxu1 %v6064_v2  ;;  %v1859_v14 = vpop.f32.mrb[36].mxu1 }
 0x332   : > { %4715 = vmatpush1.bf16.msra.mxu0 %v4706_v12  ;;  %v4958_v15 = vpop.permute.xlu0 %4957  ;;  %4746 = vmatprep.mubr.bf16.mxu0 %v6048_v0  ;;  %v6930_v16 = vadd.f32 %v1859_v14, %v1742_v54  ;;  %v5821_v17 = vpop.f32.mrb[37].mxu1 }
 0x333   : > { %5671 = vmatprep.subr.msk.bf16.mxu0 %vm756_vm5, %v4833_v10  ;;  %v1862_v18 = vpop.f32.mrb[38].mxu1  ;;  %v4964_v33 = vsel %vm4963_vm8, %v4958_v15, %v4960_v13 }
 0x334   : > { %v5822_v20 = vpop.f32.mrb[39].mxu1  ;;  %v4970_v43 = vsel %vm756_vm5, %v4964_v33, 0 }
 0x335   : > { %v1984_v21 = vpop.f32.mrb[40].mxu0  ;;  %v5090_v7 = vpop.permute.xlu1 %5089 }
 0x336   : > { %v4962_v22 = vpop.permute.xlu0 %4961  ;;  %v1986_v23 = vpop.f32.mrb[41].mxu0 }
 0x337   : > { %5952 = vmatmul.mubr.msk.bf16.vlgmr.msra.gmra.mrb[124].mxu1 %vm1937_vm9, %v5664_v19  ;;  %v1988_v26 = vpop.f32.mrb[42].mxu0  ;;  %v4965_v28 = vsel %vm4963_vm8, %v4960_v13, %v4962_v22  ;;  %v4976_v37 = vsel %vm756_vm5, %v4962_v22, 0 }
 0x338   : > { %5956 = vmatpush3.bf16.msra.mxu1 %v4844_v24  ;;  %5957 = vmatprep.mubr.msk.bf16.mxu1 %vm6065_vm4, %v6064_v2  ;;  %v1989_v27 = vpop.f32.mrb[43].mxu0 }
 0x339   : > { %5667 = vmatmul.mubr.msk.bf16.vlgmr.msra.gmra.mrb[124].mxu0 %vm1937_vm9, %v5664_v19  ;;  %5961 = vmatprep.subr.bf16.mxu1 %v6064_v2  ;;  %v2025_v29 = vpop.f32.mrb[40].mxu1  ;;  %v5094_v35 = vpop.permute.xlu1 %5093 }
 0x33a   : > { %4847 = vmatpush1.bf16.msra.mxu0 %v4838_v53  ;;  %4878 = vmatprep.mubr.bf16.mxu0 %v6048_v0  ;;  %v5827_v30 = vpop.f32.mrb[41].mxu1  ;;  %v5092_v25 = vpop.permute.xlu0 %5091  ;;  %v5108_v55 = vsel %vm756_vm5, %v5094_v35, 0 }
 0x33b   : > { %5676 = vmatprep.subr.msk.bf16.mxu0 %vm756_vm5, %v4965_v28  ;;  %v2028_v31 = vpop.f32.mrb[42].mxu1  ;;  %v5097_v45 = vsel %vm5095_vm10, %v5092_v25, %v5094_v35  ;;  %v5096_v51 = vsel %vm5095_vm10, %v5090_v7, %v5092_v25 }
 0x33c   : > { %v5828_v34 = vpop.f32.mrb[43].mxu1  ;;  %v5102_v59 = vsel %vm756_vm5, %v5096_v51, 0 }
 0x33d   : > { %v2089_v42 = vpop.f32.mrb[44].mxu0 }
 0x33e   : > { %v2090_v36 = vadd.f32 %v2089_v42, %v1984_v21  ;;  %v2091_v8 = vpop.f32.mrb[45].mxu0 }
 0x33f   : > { %5958 = vmatmul.mubr.msk.bf16.vlgmr.msra.gmra.mrb[128].mxu1 %vm1937_vm9, %v5669_v32  ;;  %v2092_v38 = vadd.f32 %v2091_v8, %v1986_v23  ;;  %v2093_v39 = vpop.f32.mrb[46].mxu0 }
 0x340   : > { %5962 = vmatpush3.bf16.msra.mxu1 %v4976_v37  ;;  %5963 = vmatprep.mubr.msk.bf16.mxu1 %vm6065_vm4, %v6064_v2  ;;  %v2094_v41 = vpop.f32.mrb[47].mxu0 }
 0x341   : > { %5672 = vmatmul.mubr.msk.bf16.vlgmr.msra.gmra.mrb[128].mxu0 %vm1937_vm9, %v5669_v32  ;;  %5967 = vmatprep.subr.bf16.mxu1 %v6064_v2  ;;  %v2130_v44 = vpop.f32.mrb[44].mxu1 }
 0x342   : > { %4979 = vmatpush1.bf16.msra.mxu0 %v4970_v43  ;;  %5010 = vmatprep.mubr.bf16.mxu0 %v6048_v0  ;;  %v2131_v46 = vadd.f32 %v2130_v44, %v2025_v29  ;;  %v5833_v47 = vpop.f32.mrb[45].mxu1 }
 0x343   : > { %5681 = vmatprep.subr.msk.bf16.mxu0 %vm756_vm5, %v5097_v45  ;;  %v2133_v48 = vpop.f32.mrb[46].mxu1 }
 0x344   : > { %v5834_v49 = vpop.f32.mrb[47].mxu1 }
 0x345   : > { %v2221_v50 = vpop.f32.mrb[48].mxu0 }
 0x346   : > { %v2268_v52 = vadd.f32 %v2221_v50, %v2090_v36  ;;  %v2223_v54 = vpop.f32.mrb[49].mxu0 }
 0x347   : > { %5964 = vmatmul.mubr.msk.bf16.vlgmr.msra.gmra.mrb[132].mxu1 %vm1937_vm9, %v5674_v6  ;;  %v2269_v56 = vadd.f32 %v2223_v54, %v2092_v38  ;;  %v2225_v57 = vpop.f32.mrb[50].mxu0 }
 0x348   : > { %5968 = vmatpush3.bf16.msra.mxu1 %v5108_v55  ;;  %5969 = vmatprep.mubr.msk.bf16.mxu1 %vm6065_vm4, %v6064_v2  ;;  %v2226_v58 = vpop.f32.mrb[51].mxu0 }
 0x349   : > { %5677 = vmatmul.mubr.msk.bf16.vlgmr.msra.gmra.mrb[132].mxu0 %vm1937_vm9, %v5674_v6  ;;  %v2262_v40 = vpop.f32.mrb[48].mxu1  ;;  %5973 = vmatprep.subr.bf16.mxu1 %v6064_v2 }
 0x34a   : > { %5111 = vmatpush1.bf16.msra.mxu0 %v5102_v59  ;;  %5142 = vmatprep.mubr.bf16.mxu0 %v6048_v0  ;;  %v2270_v60 = vadd.f32 %v2262_v40, %v2131_v46  ;;  %v5839_v61 = vpop.f32.mrb[49].mxu1 }
 0x34b   : > { %v2265_v62 = vpop.f32.mrb[50].mxu1 }
 0x34c   : > { %v5840_v4 = vpop.f32.mrb[51].mxu1 }
 0x34d   : > { %v2357_v9 = vpop.f32.mrb[52].mxu0 }
 0x34e   : > { %v2404_v10 = vadd.f32 %v2357_v9, %v2268_v52  ;;  %v2359_v11 = vpop.f32.mrb[53].mxu0 }
 0x34f   : > { %5970 = vmatmul.mubr.msk.bf16.vlgmr.msra.gmra.mrb[136].mxu1 %vm1937_vm9, %v5679_v1  ;;  %v2405_v12 = vadd.f32 %v2359_v11, %v2269_v56  ;;  %v2361_v13 = vpop.f32.mrb[54].mxu0 }
 0x350   : > { %v2362_v14 = vpop.f32.mrb[55].mxu0  ;;  %5975 = vmatprep.mubr.msk.bf16.mxu1 %vm6065_vm4, %v6064_v2  ;;  %vm1891_vm4 = vcmask 523268  }
 0x351   : > { %5682 = vmatmul.mubr.msk.bf16.vlgmr.msra.gmra.mrb[136].mxu0 %vm1937_vm9, %v5679_v1  ;;  %v2398_v15 = vpop.f32.mrb[52].mxu1 }
 0x352   : > { %v2406_v17 = vadd.f32 %v2398_v15, %v2270_v60  ;;  %v5845_v18 = vpop.f32.mrb[53].mxu1  ;;  %5402 = vmatprep.mubr.bf16.mxu0 %v6048_v0 }
 0x353   : > { %v2401_v19 = vpop.f32.mrb[54].mxu1 }
 0x354   : > { %v5846_v20 = vpop.f32.mrb[55].mxu1 }
 0x355   : > { %v2493_v21 = vpop.f32.mrb[56].mxu0 }
 0x356   : > { %v2540_v3 = vadd.f32 %v2493_v21, %v2404_v10  ;;  %v2495_v22 = vpop.f32.mrb[57].mxu0 }
 0x357   : > { %v2541_v23 = vadd.f32 %v2495_v22, %v2405_v12  ;;  %v2497_v24 = vpop.f32.mrb[58].mxu0 }
 0x358   : > { %v2498_v26 = vpop.f32.mrb[59].mxu0 }
 0x359   : > { %v2534_v28 = vpop.f32.mrb[56].mxu1 }
 0x35a   : > { %v2542_v7 = vadd.f32 %v2534_v28, %v2406_v17  ;;  %v5851_v27 = vpop.f32.mrb[57].mxu1 }
 0x35b   : > { %v2537_v53 = vpop.f32.mrb[58].mxu1 }
 0x35c   : > { %v5852_v2 = vpop.f32.mrb[59].mxu1 }
 0x35d   : > { %v2629_v29 = vpop.f32.mrb[60].mxu0 }
 0x35e   : > { %v2676_v30 = vadd.f32 %v2629_v29, %v2540_v3  ;;  %v2631_v31 = vpop.f32.mrb[61].mxu0 }
 0x35f   : > { %v2677_v32 = vadd.f32 %v2631_v31, %v2541_v23  ;;  %v2633_v34 = vpop.f32.mrb[62].mxu0 }
 0x360   : > { %v2634_v42 = vpop.f32.mrb[63].mxu0 }
 0x361   : > { %v2670_v0 = vpop.f32.mrb[60].mxu1 }
 0x362   : > { %v2678_v33 = vadd.f32 %v2670_v0, %v2542_v7  ;;  %v5857_v35 = vpop.f32.mrb[61].mxu1 }
 0x363   : > { %v2673_v36 = vpop.f32.mrb[62].mxu1 }
 0x364   : > { %v5858_v8 = vpop.f32.mrb[63].mxu1 }
 0x365   : > { %v2764_v37 = vpop.f32.mrb[64].mxu0 }
 0x366   : > { %v2811_v25 = vadd.f32 %v2764_v37, %v2676_v30  ;;  %v2766_v38 = vpop.f32.mrb[65].mxu0 }
 0x367   : > { %v2812_v39 = vadd.f32 %v2766_v38, %v2677_v32  ;;  %v2768_v41 = vpop.f32.mrb[66].mxu0  ;;  %v5322_v38 = vld [vmem:[%s7021_s9] sm:$0x3] }
 0x368   : > { %v2769_v43 = vpop.f32.mrb[67].mxu0 }
 0x369   : > { %v2805_v44 = vpop.f32.mrb[64].mxu1 }
 0x36a   : > { %v2813_v45 = vadd.f32 %v2805_v44, %v2678_v33  ;;  %v5863_v46 = vpop.f32.mrb[65].mxu1 }
 0x36b   : > { %v2808_v47 = vpop.f32.mrb[66].mxu1 }
 0x36c   : > { %v5864_v48 = vpop.f32.mrb[67].mxu1 }
 0x36d   : > { %v2899_v6 = vpop.f32.mrb[68].mxu0 }
 0x36e   : > { %v2946_v49 = vadd.f32 %v2899_v6, %v2811_v25  ;;  %v2901_v50 = vpop.f32.mrb[69].mxu0 }
 0x36f   : > { %v2947_v51 = vadd.f32 %v2901_v50, %v2812_v39  ;;  %v2903_v52 = vpop.f32.mrb[70].mxu0 }
 0x370   : > { %v2904_v54 = vpop.f32.mrb[71].mxu0 }
 0x371   : > { %v2940_v55 = vpop.f32.mrb[68].mxu1 }
 0x372   : > { %v2948_v56 = vadd.f32 %v2940_v55, %v2813_v45  ;;  %v5869_v57 = vpop.f32.mrb[69].mxu1 }
 0x373   : > { %v2943_v58 = vpop.f32.mrb[70].mxu1 }
 0x374   : > { %v5870_v59 = vpop.f32.mrb[71].mxu1 }
 0x375   : > { %v3034_v40 = vpop.f32.mrb[72].mxu0 }
 0x376   : > { %v3081_v60 = vadd.f32 %v3034_v40, %v2946_v49  ;;  %v3036_v61 = vpop.f32.mrb[73].mxu0 }
 0x377   : > { %v3082_v62 = vadd.f32 %v3036_v61, %v2947_v51  ;;  %v3038_v1 = vpop.f32.mrb[74].mxu0 }
 0x378   : > { %v3039_v4 = vpop.f32.mrb[75].mxu0 }
 0x379   : > { %v3075_v9 = vpop.f32.mrb[72].mxu1 }
 0x37a   : > { %v3083_v10 = vadd.f32 %v3075_v9, %v2948_v56  ;;  %v5875_v11 = vpop.f32.mrb[73].mxu1 }
 0x37b   : > { %v3078_v12 = vpop.f32.mrb[74].mxu1 }
 0x37c   : > { %v5876_v13 = vpop.f32.mrb[75].mxu1 }
 0x37d   : > { %v3170_v14 = vpop.f32.mrb[76].mxu0 }
 0x37e   : > { %v3217_v15 = vadd.f32 %v3170_v14, %v3081_v60  ;;  %v3172_v17 = vpop.f32.mrb[77].mxu0 }
 0x37f   : > { %v3218_v18 = vadd.f32 %v3172_v17, %v3082_v62  ;;  %v3174_v19 = vpop.f32.mrb[78].mxu0 }
 0x380   : > { %v3175_v20 = vpop.f32.mrb[79].mxu0 }
 0x381   : > { %v3211_v21 = vpop.f32.mrb[76].mxu1 }
 0x382   : > { %v3219_v3 = vadd.f32 %v3211_v21, %v3083_v10  ;;  %v5881_v22 = vpop.f32.mrb[77].mxu1 }
 0x383   : > { %v3214_v23 = vpop.f32.mrb[78].mxu1 }
 0x384   : > { %v5882_v24 = vpop.f32.mrb[79].mxu1 }
 0x385   : > { %v3306_v26 = vpop.f32.mrb[80].mxu0 }
 0x386   : > { %v5348_v28 = vpop.permute.xlu0 %5347  ;;  %v3353_v7 = vadd.f32 %v3306_v26, %v3217_v15  ;;  %v3308_v27 = vpop.f32.mrb[81].mxu0 }
 0x387   : > { %v3354_v53 = vadd.f32 %v3308_v27, %v3218_v18  ;;  %v3310_v2 = vpop.f32.mrb[82].mxu0 }
 0x388   : > { %v5350_v29 = vpop.permute.xlu1 %5349  ;;  %v3311_v30 = vpop.f32.mrb[83].mxu0 }
 0x389   : > { %v5355_v31 = vsel %vm897_vm15, %v5348_v28, %v5350_v29  ;;  %v3347_v32 = vpop.f32.mrb[80].mxu1 }
 0x38a   : > { %v5352_v34 = vpop.permute.xlu0 %5351  ;;  %v3355_v42 = vadd.f32 %v3347_v32, %v3219_v3  ;;  %v5887_v0 = vpop.f32.mrb[81].mxu1  ;;  %v5362_v36 = vsel %vm566_vm13, %v5355_v31, 0 }
 0x38b   : > { %v5356_v33 = vsel %vm897_vm15, %v5350_v29, %v5352_v34  ;;  %v3350_v35 = vpop.f32.mrb[82].mxu1 }
 0x38c   : > { %5685 = vmatprep.subr.msk.bf16.mxu0 %vm566_vm13, %v5356_v33  ;;  %v5354_v8 = vpop.permute.xlu1 %5353  ;;  %v5888_v37 = vpop.f32.mrb[83].mxu1 }
 0x38d   : > { %v5357_v25 = vsel %vm897_vm15, %v5352_v34, %v5354_v8  ;;  %5371 = vmatpush1.bf16.msra.mxu0 %v5362_v36  ;;  %v3441_v39 = vpop.f32.mrb[84].mxu0 }
 0x38e   : > { %v5368_v41 = vsel %vm566_vm13, %v5357_v25, 0  ;;  %v3488_v43 = vadd.f32 %v3441_v39, %v3353_v7  ;;  %v3443_v44 = vpop.f32.mrb[85].mxu0 }
 0x38f   : > { %5974 = vmatpush3.bf16.msra.mxu1 %v5368_v41  ;;  %v3489_v45 = vadd.f32 %v3443_v44, %v3354_v53  ;;  %v3445_v46 = vpop.f32.mrb[86].mxu0 }
 0x390   : > { %5686 = vmatmul.mubr.msk.bf16.vlgmr.msra.gmra.mrb[140].mxu0 %vm562_vm14, %v5322_v38  ;;  %v3446_v47 = vpop.f32.mrb[87].mxu0 }
 0x391   : > { %v3482_v48 = vpop.f32.mrb[84].mxu1 }
 0x392   : > { %5976 = vmatmul.mubr.msk.bf16.vlgmr.msra.gmra.mrb[140].mxu1 %vm562_vm14, %v5322_v38  ;;  %v3490_v6 = vadd.f32 %v3482_v48, %v3355_v42  ;;  %v5893_v49 = vpop.f32.mrb[85].mxu1 }
 0x393   : > { %v3485_v50 = vpop.f32.mrb[86].mxu1 }
 0x394   : > { %v5894_v51 = vpop.f32.mrb[87].mxu1 }
 0x395   : > { %v3564_v52 = vpop.f32.mrb[88].mxu0 }
 0x396   : > { %v3611_v54 = vadd.f32 %v3564_v52, %v3488_v43  ;;  %v3566_v55 = vpop.f32.mrb[89].mxu0 }
 0x397   : > { %v3612_v56 = vadd.f32 %v3566_v55, %v3489_v45  ;;  %v3568_v57 = vpop.f32.mrb[90].mxu0 }
 0x398   : > { %v3569_v58 = vpop.f32.mrb[91].mxu0 }
 0x399   : > { %v3605_v59 = vpop.f32.mrb[88].mxu1 }
 0x39a   : > { %v3613_v40 = vadd.f32 %v3605_v59, %v3490_v6  ;;  %v5899_v60 = vpop.f32.mrb[89].mxu1 }
 0x39b   : > { %v1872_v61 = vpop.permute.xlu0 %1871  ;;  %v3608_v62 = vpop.f32.mrb[90].mxu1 }
 0x39c   : > { %v1874_v1 = vadd.f32 %v1872_v61, %v6917_v63  ;;  %v1875_v4 = vadd.f32 %v1872_v61, %v6921_v5  ;;  %v1876_v9 = vadd.f32 %v1872_v61, %v6930_v16  ;;  %v5900_v10 = vpop.f32.mrb[91].mxu1 }
 0x39d   : > { %v3695_v11 = vpop.f32.mrb[92].mxu0 }
 0x39e   : > { %v1877_v12 = vmax.f32 %v1874_v1, 0.0  ;;  %v1878_v13 = vmax.f32 %v1875_v4, 0.0  ;;  %v1879_v14 = vmax.f32 %v1876_v9, 0.0  ;;  %v3742_v15 = vadd.f32 %v3695_v11, %v3611_v54  ;;  %v3697_v17 = vpop.f32.mrb[93].mxu0 }
 0x39f   : > { %v3743_v18 = vadd.f32 %v3697_v17, %v3612_v56  ;;  %v3699_v19 = vpop.f32.mrb[94].mxu0 }
 0x3a0   : > { %v1883_v20 = vrot.slane %v1877_v12, 4  ;;  %v1884_v63 = vrot.slane %v1878_v13, 4  ;;  %v1885_v21 = vrot.slane %v1879_v14, 4  ;;  %v3700_v5 = vpop.f32.mrb[95].mxu0 }
 0x3a1   : > { %v3736_v3 = vpop.f32.mrb[92].mxu1 }
 0x3a2   : > { %1889 = vst [vmem:[%s6233_s14 + $0x18] ss:$-20 sps:$4 sm:$0xff] %v1883_v20   ;;  %1890 = vst [vmem:[%s6233_s14 + $0x20] ss:$-20 sps:$4 sm:$0xff] %v1884_v63   ;;  %v3744_v16 = vadd.f32 %v3736_v3, %v3613_v40  ;;  %v5905_v22 = vpop.f32.mrb[93].mxu1 }
 0x3a3   : > { %1892 = vst.msk [vmem:[%s6233_s14 + $0x10] sm:$0xf0] %vm1891_vm4, %v1885_v21  ;;  %v3739_v23 = vpop.f32.mrb[94].mxu1 }
 0x3a4   : > { %1895 = vst.msk [vmem:[%s6233_s14 + $0x28] sm:$0xf] %vm668_vm0, %v1885_v21  ;;  %v5906_v24 = vpop.f32.mrb[95].mxu1 }
 0x3a5   : > { %v3827_v26 = vpop.f32.mrb[96].mxu0 }
 0x3a6   : > { %v3874_v28 = vadd.f32 %v3827_v26, %v3742_v15  ;;  %v3829_v7 = vpop.f32.mrb[97].mxu0 }
 0x3a7   : > { %v3875_v27 = vadd.f32 %v3829_v7, %v3743_v18  ;;  %v3831_v53 = vpop.f32.mrb[98].mxu0 }
 0x3a8   : > { %v3832_v2 = vpop.f32.mrb[99].mxu0 }
 0x3a9   : > { %v3868_v29 = vpop.f32.mrb[96].mxu1 }
 0x3aa   : > { %v3876_v30 = vadd.f32 %v3868_v29, %v3744_v16  ;;  %v5911_v31 = vpop.f32.mrb[97].mxu1 }
 0x3ab   : > { %v3871_v32 = vpop.f32.mrb[98].mxu1 }
 0x3ac   : > { %v5912_v34 = vpop.f32.mrb[99].mxu1 }
 0x3ad   : > { %v3959_v42 = vpop.f32.mrb[100].mxu0 }
 0x3ae   : > { %v4006_v0 = vadd.f32 %v3959_v42, %v3874_v28  ;;  %v3961_v33 = vpop.f32.mrb[101].mxu0 }
 0x3af   : > { %v4007_v35 = vadd.f32 %v3961_v33, %v3875_v27  ;;  %v3963_v36 = vpop.f32.mrb[102].mxu0 }
 0x3b0   : > { %v3964_v8 = vpop.f32.mrb[103].mxu0 }
 0x3b1   : > { %v4000_v37 = vpop.f32.mrb[100].mxu1 }
 0x3b2   : > { %v4008_v25 = vadd.f32 %v4000_v37, %v3876_v30  ;;  %v5917_v38 = vpop.f32.mrb[101].mxu1 }
 0x3b3   : > { %v4003_v39 = vpop.f32.mrb[102].mxu1 }
 0x3b4   : > { %v5918_v41 = vpop.f32.mrb[103].mxu1 }
 0x3b5   : > { %v4090_v43 = vpop.f32.mrb[104].mxu0 }
 0x3b6   : > { %v4137_v44 = vadd.f32 %v4090_v43, %v4006_v0  ;;  %v4092_v45 = vpop.f32.mrb[105].mxu0 }
 0x3b7   : > { %v4138_v46 = vadd.f32 %v4092_v45, %v4007_v35  ;;  %v4094_v47 = vpop.f32.mrb[106].mxu0 }
 0x3b8   : > { %v4095_v48 = vpop.f32.mrb[107].mxu0 }
 0x3b9   : > { %v4131_v6 = vpop.f32.mrb[104].mxu1 }
 0x3ba   : > { %v4139_v49 = vadd.f32 %v4131_v6, %v4008_v25  ;;  %v5923_v50 = vpop.f32.mrb[105].mxu1 }
 0x3bb   : > { %v4134_v51 = vpop.f32.mrb[106].mxu1 }
 0x3bc   : > { %v5924_v52 = vpop.f32.mrb[107].mxu1 }
 0x3ea   : > { %v4262_v54 = vpop.f32.mrb[108].mxu1 }
 0x3eb   : > { %v4270_v55 = vadd.f32 %v4262_v54, %v4139_v49  ;;  %v5929_v56 = vpop.f32.mrb[109].mxu1 }
 0x3ec   : > { %v4221_v57 = vpop.f32.mrb[108].mxu0  ;;  %v4265_v58 = vpop.f32.mrb[110].mxu1 }
 0x3ed   : > { %v4268_v59 = vadd.f32 %v4221_v57, %v4137_v44  ;;  %v4223_v40 = vpop.f32.mrb[109].mxu0  ;;  %v5930_v60 = vpop.f32.mrb[111].mxu1 }
 0x3ee   : > { %v4269_v61 = vadd.f32 %v4223_v40, %v4138_v46  ;;  %v4225_v62 = vpop.f32.mrb[110].mxu0 }
 0x3ef   : > { %v4226_v1 = vpop.f32.mrb[111].mxu0 }
 0x3f2   : > { %v4393_v4 = vpop.f32.mrb[112].mxu1 }
 0x3f3   : > { %v4401_v9 = vadd.f32 %v4393_v4, %v4270_v55  ;;  %v5935_v10 = vpop.f32.mrb[113].mxu1 }
 0x3f4   : > { %v4352_v11 = vpop.f32.mrb[112].mxu0  ;;  %v4396_v12 = vpop.f32.mrb[114].mxu1 }
 0x3f5   : > { %v4399_v13 = vadd.f32 %v4352_v11, %v4268_v59  ;;  %v4354_v14 = vpop.f32.mrb[113].mxu0  ;;  %v5936_v15 = vpop.f32.mrb[115].mxu1 }
 0x3f6   : > { %v4400_v17 = vadd.f32 %v4354_v14, %v4269_v61  ;;  %v4356_v18 = vpop.f32.mrb[114].mxu0  ;;  %v5198_v11 = vpop.permute.xlu1 %5197 }
 0x3f7   : > { %v4357_v19 = vpop.f32.mrb[115].mxu0 }
 0x3fa   : > { %v4525_v20 = vpop.f32.mrb[116].mxu1 }
 0x3fb   : > { %v4533_v63 = vadd.f32 %v4525_v20, %v4401_v9  ;;  %v5941_v21 = vpop.f32.mrb[117].mxu1 }
 0x3fc   : > { %v4484_v5 = vpop.f32.mrb[116].mxu0  ;;  %v4528_v3 = vpop.f32.mrb[118].mxu1 }
 0x3fd   : > { %v4531_v16 = vadd.f32 %v4484_v5, %v4399_v13  ;;  %v4486_v22 = vpop.f32.mrb[117].mxu0  ;;  %v5942_v23 = vpop.f32.mrb[119].mxu1 }
 0x3fe   : > { %v4532_v24 = vadd.f32 %v4486_v22, %v4400_v17  ;;  %v4488_v26 = vpop.f32.mrb[118].mxu0 }
 0x3ff   : > { %v4489_v28 = vpop.f32.mrb[119].mxu0 }
 0x402   : > { %v4657_v7 = vpop.f32.mrb[120].mxu1 }
 0x403   : > { %v4665_v27 = vadd.f32 %v4657_v7, %v4533_v63  ;;  %v5947_v53 = vpop.f32.mrb[121].mxu1 }
 0x404   : > { %v4616_v2 = vpop.f32.mrb[120].mxu0  ;;  %v4660_v29 = vpop.f32.mrb[122].mxu1 }
 0x405   : > { %v4663_v30 = vadd.f32 %v4616_v2, %v4531_v16  ;;  %v4618_v31 = vpop.f32.mrb[121].mxu0  ;;  %v5948_v32 = vpop.f32.mrb[123].mxu1 }
 0x406   : > { %v4664_v34 = vadd.f32 %v4618_v31, %v4532_v24  ;;  %v4620_v42 = vpop.f32.mrb[122].mxu0 }
 0x407   : > { %v4621_v0 = vpop.f32.mrb[123].mxu0 }
 0x40a   : > { %v4789_v33 = vpop.f32.mrb[124].mxu1 }
 0x40b   : > { %v4797_v35 = vadd.f32 %v4789_v33, %v4665_v27  ;;  %v5953_v36 = vpop.f32.mrb[125].mxu1  ;;  %v5327_v27 = vpop.permute.xlu0 %5326 }
 0x40c   : > { %v4748_v8 = vpop.f32.mrb[124].mxu0  ;;  %v4792_v37 = vpop.f32.mrb[126].mxu1 }
 0x40d   : > { %v4795_v25 = vadd.f32 %v4748_v8, %v4663_v30  ;;  %v4750_v38 = vpop.f32.mrb[125].mxu0  ;;  %v5954_v39 = vpop.f32.mrb[127].mxu1 }
 0x40e   : > { %v4796_v41 = vadd.f32 %v4750_v38, %v4664_v34  ;;  %v4752_v43 = vpop.f32.mrb[126].mxu0 }
 0x40f   : > { %v4753_v44 = vpop.f32.mrb[127].mxu0 }
 0x412   : > { %v4921_v45 = vpop.f32.mrb[128].mxu1 }
 0x413   : > { %v4929_v46 = vadd.f32 %v4921_v45, %v4797_v35  ;;  %v5959_v47 = vpop.f32.mrb[129].mxu1 }
 0x414   : > { %v4880_v48 = vpop.f32.mrb[128].mxu0  ;;  %v4924_v6 = vpop.f32.mrb[130].mxu1 }
 0x415   : > { %v4927_v49 = vadd.f32 %v4880_v48, %v4795_v25  ;;  %v4882_v50 = vpop.f32.mrb[129].mxu0  ;;  %v5960_v51 = vpop.f32.mrb[131].mxu1 }
 0x416   : > { %v4928_v52 = vadd.f32 %v4882_v50, %v4796_v41  ;;  %v4884_v54 = vpop.f32.mrb[130].mxu0 }
 0x417   : > { %v4885_v55 = vpop.f32.mrb[131].mxu0 }
 0x41a   : > { %v5053_v56 = vpop.f32.mrb[132].mxu1 }
 0x41b   : > { %v5061_v57 = vadd.f32 %v5053_v56, %v4929_v46  ;;  %v5965_v58 = vpop.f32.mrb[133].mxu1 }
 0x41c   : > { %v5012_v59 = vpop.f32.mrb[132].mxu0  ;;  %v5056_v40 = vpop.f32.mrb[134].mxu1 }
 0x41d   : > { %v5059_v60 = vadd.f32 %v5012_v59, %v4927_v49  ;;  %v5014_v61 = vpop.f32.mrb[133].mxu0  ;;  %v5966_v62 = vpop.f32.mrb[135].mxu1 }
 0x41e   : > { %v5060_v1 = vadd.f32 %v5014_v61, %v4928_v52  ;;  %v5016_v4 = vpop.f32.mrb[134].mxu0 }
 0x41f   : > { %v5017_v9 = vpop.f32.mrb[135].mxu0 }
 0x422   : > { %v5185_v10 = vpop.f32.mrb[136].mxu1 }
 0x423   : > { %v5193_v12 = vadd.f32 %v5185_v10, %v5061_v57  ;;  %v5971_v13 = vpop.f32.mrb[137].mxu1 }
 0x424   : > { %v5144_v14 = vpop.f32.mrb[136].mxu0  ;;  %v5188_v15 = vpop.f32.mrb[138].mxu1 }
 0x425   : > { %v5202_v17 = vadd.f32 %v5198_v11, %v5193_v12  ;;  %v5191_v18 = vadd.f32 %v5144_v14, %v5059_v60  ;;  %v5146_v19 = vpop.f32.mrb[137].mxu0  ;;  %v5972_v20 = vpop.f32.mrb[139].mxu1 }
 0x426   : > { %v5192_v63 = vadd.f32 %v5146_v19, %v5060_v1  ;;  %v5148_v21 = vpop.f32.mrb[138].mxu0 }
 0x427   : > { %v5205_v5 = vmax.f32 %v5202_v17, 0.0  ;;  %v5200_v3 = vadd.f32 %v5198_v11, %v5191_v18  ;;  %v5149_v16 = vpop.f32.mrb[139].mxu0 }
 0x428   : > { %v5201_v22 = vadd.f32 %v5198_v11, %v5192_v63 }
 0x429   : > { %v5211_v23 = vrot.slane %v5205_v5, 4  ;;  %v5203_v24 = vmax.f32 %v5200_v3, 0.0 }
 0x42a   : > { %v5204_v26 = vmax.f32 %v5201_v22, 0.0 }
 0x42b   : > { %5217 = vst.msk [vmem:[%s6233_s14 + $0x28] sm:$0xf0] %vm1891_vm4, %v5211_v23  ;;  %v5209_v28 = vrot.slane %v5203_v24, 4 }
 0x42c   : > { %v5210_v7 = vrot.slane %v5204_v26, 4 }
 0x42d   : > { %5215 = vst [vmem:[%s6233_s14 + $0x18] sm:$0xf0] %v5209_v28 }
 0x42e   : > { %5216 = vst [vmem:[%s6233_s14 + $0x20] sm:$0xf0] %v5210_v7 }
 0x463   : > { %v5404_v53 = vpop.f32.mrb[140].mxu0 }
 0x464   : > { %v5405_v2 = vadd.f32 %v5404_v53, %v5327_v27  ;;  %v5406_v29 = vpop.f32.mrb[141].mxu0 }
 0x465   : > { %v5407_v30 = vadd.f32 %v5406_v29, %v5327_v27  ;;  %v5445_v31 = vpop.f32.mrb[140].mxu1  ;;  %v5408_v32 = vpop.f32.mrb[142].mxu0 }
 0x466   : > { %v5451_v34 = vmax.f32 %v5405_v2, 0.0  ;;  %v5446_v42 = vadd.f32 %v5445_v31, %v5327_v27  ;;  %v5977_v0 = vpop.f32.mrb[141].mxu1  ;;  %v5409_v33 = vpop.f32.mrb[143].mxu0 }
 0x467   : > { %v5452_v35 = vmax.f32 %v5407_v30, 0.0  ;;  %v5448_v36 = vpop.f32.mrb[142].mxu1 }
 0x468   : > { %5454 = vst [vmem:[%s6233_s14 + $0x30] sm:$0xf] %v5451_v34  ;;  %v5453_v8 = vmax.f32 %v5446_v42, 0.0  ;;  %v5978_v37 = vpop.f32.mrb[143].mxu1 }
 0x469   : > { %5455 = vst [vmem:[%s6233_s14 + $0x38] sm:$0xf] %v5452_v35 }
 0x46a   : > { %5456 = vst.msk [vmem:[%s6233_s14 + $0x40] sm:$0xf] %vm668_vm0, %v5453_v8 }
 0x46b PF: > { %s21_s17 = sadd.s32 1, %s6046_s17  }
 0x46c   : > { %p18_p4 = scmp.ge.s32.totalorder %s21_s17, 4  }
 0x46e   :  { %20 = sbr.rel (!%p18_p4) target bundleno = 1 (0x1), region = 126 }

</bundles_post_ra>
